<compile_context>
chip_gen: v6e
topology: v6e:2x2x1
jax: 0.10.0
libtpu: 0.0.40
codegen_flags: <defaults>
</compile_context>

<pallas_src>
import functools

import jax
import jax.numpy as jnp
from jax import lax
from jax.experimental import pallas as pl
from jax.experimental.pallas import tpu as pltpu

EPS = 1e-5
LANES = 128


def _round_up(x, m):
    return ((x + m - 1) // m) * m


def gru_module_kernel(x_ref, wih_ref, whh_ref, bgi_ref, bhn_ref, wfc_ref, bfc_ref,
                      o_ref, *, num_layers, L, H, B, GP):
    # ---- bn_in over each IQ channel (stats over batch x seq, identity affine) ----
    xi = x_ref[0]  # (B, L)
    xq = x_ref[1]  # (B, L)

    def bn_all(v):
        m = jnp.mean(v)
        var = jnp.mean((v - m) ** 2)
        return (v - m) * lax.rsqrt(var + EPS)

    xi_n = bn_all(xi)
    xq_n = bn_all(xq)

    # ---- amp^2 scaling, then fuse the two streams along the feature axis ----
    amp2 = xi_n * xi_n + xq_n * xq_n
    inp0 = jnp.concatenate([amp2 * xi_n, amp2 * xq_n], axis=1)  # (B, 2L)

    def fast_sigmoid(v):
        # exact sigmoid via a single EUP tanh pass (sigmoid = exp + reciprocal = 2 passes)
        return 0.5 * (jnp.tanh(0.5 * v) + 1.0)

    # ---- stacked GRU, fused I/Q streams, wavefront schedule across layers ----
    rows_prev = None  # per-step hidden rows of the previous layer, each (1, GP)
    for layer in range(num_layers):
        d_in = 2 * L if layer == 0 else GP
        w = wih_ref[layer][:d_in, :]   # (d_in, 3*GP)   gate blocks lane-padded to GP
        u = whh_ref[layer]             # (GP, 3*GP)     block-diag over I/Q, zero pad
        bg = bgi_ref[layer]            # (1, 3*GP)      b_ih (+ b_hh for r/z) folded
        bn_n = bhn_ref[layer]          # (1, 3*GP)      nonzero only in the n block

        if layer == 0:
            # one-shot batched input projection for every timestep (off the chain)
            gi_all = jnp.dot(inp0, w, preferred_element_type=jnp.float32) + bg  # (B,3GP)
            gi_rows = [gi_all[t:t + 1, :] for t in range(B)]

        h = jnp.zeros((1, GP), jnp.float32)
        rows = []
        for t in range(B):  # fully unrolled serial recurrence (time axis = B)
            if layer == 0:
                gi = gi_rows[t]
            else:
                # wavefront: depends only on previous layer's step-t output
                gi = jnp.dot(rows_prev[t], w, preferred_element_type=jnp.float32) + bg
            gh = jnp.dot(h, u, preferred_element_type=jnp.float32) + bn_n  # one MXU push
            r = fast_sigmoid(gi[:, 0:GP] + gh[:, 0:GP])
            z = fast_sigmoid(gi[:, GP:2 * GP] + gh[:, GP:2 * GP])
            n = jnp.tanh(gi[:, 2 * GP:3 * GP] + r * gh[:, 2 * GP:3 * GP])
            h = (1.0 - z) * n + z * h
            rows.append(h)
        rows_prev = rows

    # ---- fused FC head (block-diagonal, zero pad rows) + bn_out, one store ----
    hidden = jnp.concatenate(rows_prev, axis=0)  # (B, GP), pad lanes identically zero
    y = jnp.dot(hidden, wfc_ref[...], preferred_element_type=jnp.float32) + bfc_ref[...]
    ym = jnp.mean(y, axis=0, keepdims=True)
    yv = jnp.mean((y - ym) ** 2, axis=0, keepdims=True)
    o_ref[...] = (y - ym) * lax.rsqrt(yv + EPS)


def make_params(key, input_size, hidden_size, output_size, num_layers):
    """Deterministic synthetic per-stream params (PyTorch uniform(-1/sqrt(H), 1/sqrt(H))).
    Weights stored pre-transposed as (in_features, 3H) with gate order [r | z | n]."""
    H = hidden_size
    L = input_size
    dmax = max(L, H)
    kout = output_size // 2
    k = 1.0 / (H ** 0.5)
    keys = jax.random.split(key, 6)
    return dict(
        wih=jax.random.uniform(keys[0], (2, num_layers, dmax, 3 * H), jnp.float32, -k, k),
        whh=jax.random.uniform(keys[1], (2, num_layers, H, 3 * H), jnp.float32, -k, k),
        bih=jax.random.uniform(keys[2], (2, num_layers, 1, 3 * H), jnp.float32, -k, k),
        bhh=jax.random.uniform(keys[3], (2, num_layers, 1, 3 * H), jnp.float32, -k, k),
        wfc=jax.random.uniform(keys[4], (2, H, kout), jnp.float32, -k, k),
        bfc=jax.random.uniform(keys[5], (2, 1, kout), jnp.float32, -k, k),
    )


def fuse_params(params, *, num_layers, input_size, hidden_size, output_size):
    """Build stream-fused, lane-aligned (128-padded gate blocks) weights.

    Runs ONCE at init — hoisted out of the per-call jitted path."""
    L, H = input_size, hidden_size
    H2 = 2 * H
    GP = _round_up(H2, LANES)          # padded fused-hidden width (lane-aligned)
    kout = output_size // 2
    dmax = max(2 * L, GP)

    wih = jnp.zeros((num_layers, dmax, 3 * GP), jnp.float32)
    whh = jnp.zeros((num_layers, GP, 3 * GP), jnp.float32)
    bgi = jnp.zeros((num_layers, 1, 3 * GP), jnp.float32)
    bhn = jnp.zeros((num_layers, 1, 3 * GP), jnp.float32)

    for layer in range(num_layers):
        d_in = L if layer == 0 else H   # per-stream input width of this layer
        for g in range(3):              # gate order r, z, n
            c0, c1 = g * H, (g + 1) * H
            base = g * GP
            # block-diagonal input weights: rows [0:d_in]=I stream, [d_in:2d_in]=Q stream
            wih = wih.at[layer, 0:d_in, base:base + H].set(
                params["wih"][0, layer, :d_in, c0:c1])
            wih = wih.at[layer, d_in:2 * d_in, base + H:base + H2].set(
                params["wih"][1, layer, :d_in, c0:c1])
            # block-diagonal recurrent weights over the fused (I|Q) hidden
            whh = whh.at[layer, 0:H, base:base + H].set(
                params["whh"][0, layer, :, c0:c1])
            whh = whh.at[layer, H:H2, base + H:base + H2].set(
                params["whh"][1, layer, :, c0:c1])
            b = jnp.concatenate([params["bih"][0, layer, 0, c0:c1],
                                 params["bih"][1, layer, 0, c0:c1]])
            if g < 2:  # fold b_hh of the r/z gates into the input projection bias
                b = b + jnp.concatenate([params["bhh"][0, layer, 0, c0:c1],
                                         params["bhh"][1, layer, 0, c0:c1]])
            bgi = bgi.at[layer, 0, base:base + H2].set(b)
        # b_hn must stay inside r*(.)  => separate bias, only in the n block
        bhn = bhn.at[layer, 0, 2 * GP:2 * GP + H2].set(
            jnp.concatenate([params["bhh"][0, layer, 0, 2 * H:3 * H],
                             params["bhh"][1, layer, 0, 2 * H:3 * H]]))

    wfc = jnp.zeros((GP, 2 * kout), jnp.float32)
    wfc = wfc.at[0:H, 0:kout].set(params["wfc"][0])
    wfc = wfc.at[H:H2, kout:2 * kout].set(params["wfc"][1])
    bfc = jnp.concatenate([params["bfc"][0], params["bfc"][1]], axis=1)  # (1, 2*kout)

    return dict(wih=wih, whh=whh, bgi=bgi, bhn=bhn, wfc=wfc, bfc=bfc)


@functools.partial(jax.jit, static_argnames=("num_layers", "hidden_size", "output_size"))
def gru_forward(x, h_0, fused, *, num_layers, hidden_size, output_size):
    # h_0 is accepted but ignored — the reference module never forwards it to the GRUs.
    del h_0
    B, L, C = x.shape
    assert C == 2, "expects IQ input with 2 channels on the last axis"
    H = hidden_size
    GP = _round_up(2 * H, LANES)
    kout = output_size // 2

    x_streams = jnp.transpose(x, (2, 0, 1)).astype(jnp.float32)  # (2, B, L)

    kernel = functools.partial(gru_module_kernel, num_layers=num_layers,
                               L=L, H=H, B=B, GP=GP)
    vm = pl.BlockSpec(memory_space=pltpu.MemorySpace.VMEM)

    flops = (2 * B * (2 * L) * 3 * GP                      # layer-0 batched projection
             + num_layers * B * 2 * GP * 3 * GP            # recurrent gate matmuls
             + max(num_layers - 1, 0) * B * 2 * GP * 3 * GP  # per-step gi (layers > 0)
             + 2 * B * GP * 2 * kout)                      # FC head
    transcendentals = num_layers * B * 3 * GP
    bytes_accessed = 4 * (x_streams.size + fused["wih"].size + fused["whh"].size
                          + fused["bgi"].size + fused["bhn"].size + fused["wfc"].size
                          + fused["bfc"].size + B * 2 * kout)

    out = pl.pallas_call(
        kernel,
        out_shape=jax.ShapeDtypeStruct((B, 2 * kout), jnp.float32),
        in_specs=[vm] * 7,
        out_specs=vm,
        cost_estimate=pl.CostEstimate(flops=flops, transcendentals=transcendentals,
                                      bytes_accessed=bytes_accessed),
    )(x_streams, fused["wih"], fused["whh"], fused["bgi"], fused["bhn"],
      fused["wfc"], fused["bfc"])
    return out


if __name__ == "__main__":
    input_size = 16    # = seq length of the 2-D GRU input (unbatched mode)
    hidden_size = 32
    output_size = 2    # bn_out has num_features=2 => output_size must be 2
    num_layers = 2
    batch_size = 8

    key = jax.random.PRNGKey(0)
    kx, kp = jax.random.split(key, 2)
    x = jax.random.normal(kx, (batch_size, input_size, 2), jnp.float32)
    h_0 = jnp.zeros((num_layers, hidden_size), jnp.float32)  # ignored, mirrors reference
    params = make_params(kp, input_size, hidden_size, output_size, num_layers)

    # Parameter fusion hoisted out of the per-call path: done once at init.
    fused = fuse_params(params, num_layers=num_layers, input_size=input_size,
                        hidden_size=hidden_size, output_size=output_size)
    fused = jax.block_until_ready(fused)

    out = gru_forward(x, h_0, fused, num_layers=num_layers,
                      hidden_size=hidden_size, output_size=output_size)
    jax.block_until_ready(out)
    assert out.shape == (batch_size, output_size)
    assert jnp.all(jnp.isfinite(out))
    print("KERNEL_OK")
</pallas_src>

<mosaic_0001>
module attributes {stable_mosaic.version = 11 : i64} {
  func.func @gru_module_kernel(%arg0: memref<2x8x16xf32, #tpu.memory_space<vmem>>, %arg1: memref<2x128x384xf32, #tpu.memory_space<vmem>>, %arg2: memref<2x128x384xf32, #tpu.memory_space<vmem>>, %arg3: memref<2x1x384xf32, #tpu.memory_space<vmem>>, %arg4: memref<2x1x384xf32, #tpu.memory_space<vmem>>, %arg5: memref<128x2xf32, #tpu.memory_space<vmem>>, %arg6: memref<1x2xf32, #tpu.memory_space<vmem>>, %arg7: memref<8x2xf32, #tpu.memory_space<vmem>>) attributes {dimension_semantics = [], scalar_prefetch = 0 : i64, scratch_operands = 0 : i64, tpu.core_type = #tpu.core_type<tc>} {
    %c0 = arith.constant 0 : index
    %c0_0 = arith.constant 0 : index
    %c0_1 = arith.constant 0 : index
    %0 = vector.load %arg0[%c0, %c0_0, %c0_1] : memref<2x8x16xf32, #tpu.memory_space<vmem>>, vector<1x8x16xf32>
    %1 = vector.shape_cast %0 : vector<1x8x16xf32> to vector<8x16xf32>
    %c1 = arith.constant 1 : index
    %c0_2 = arith.constant 0 : index
    %c0_3 = arith.constant 0 : index
    %2 = vector.load %arg0[%c1, %c0_2, %c0_3] : memref<2x8x16xf32, #tpu.memory_space<vmem>>, vector<1x8x16xf32>
    %3 = vector.shape_cast %2 : vector<1x8x16xf32> to vector<8x16xf32>
    %4 = vector.shape_cast %1 : vector<8x16xf32> to vector<1x8x16xf32>
    %cst = arith.constant dense<0.000000e+00> : vector<1xf32>
    %5 = vector.multi_reduction <add>, %4, %cst [1, 2] : vector<1x8x16xf32> to vector<1xf32>
    %6 = vector.shape_cast %5 : vector<1xf32> to vector<1x1x1xf32>
    %7 = vector.extract %6[0, 0, 0] : f32 from vector<1x1x1xf32>
    %cst_4 = arith.constant 1.280000e+02 : f32
    %8 = arith.divf %7, %cst_4 : f32
    %9 = vector.broadcast %8 : f32 to vector<8x16xf32>
    %10 = arith.subf %1, %9 : vector<8x16xf32>
    %11 = arith.mulf %10, %10 : vector<8x16xf32>
    %12 = vector.shape_cast %11 : vector<8x16xf32> to vector<1x8x16xf32>
    %cst_5 = arith.constant dense<0.000000e+00> : vector<1xf32>
    %13 = vector.multi_reduction <add>, %12, %cst_5 [1, 2] : vector<1x8x16xf32> to vector<1xf32>
    %14 = vector.shape_cast %13 : vector<1xf32> to vector<1x1x1xf32>
    %15 = vector.extract %14[0, 0, 0] : f32 from vector<1x1x1xf32>
    %cst_6 = arith.constant 1.280000e+02 : f32
    %16 = arith.divf %15, %cst_6 : f32
    %17 = vector.broadcast %8 : f32 to vector<8x16xf32>
    %18 = arith.subf %1, %17 : vector<8x16xf32>
    %cst_7 = arith.constant 9.99999974E-6 : f32
    %19 = arith.addf %16, %cst_7 : f32
    %20 = math.rsqrt %19 : f32
    %21 = vector.broadcast %20 : f32 to vector<8x16xf32>
    %22 = arith.mulf %18, %21 : vector<8x16xf32>
    %23 = vector.shape_cast %3 : vector<8x16xf32> to vector<1x8x16xf32>
    %cst_8 = arith.constant dense<0.000000e+00> : vector<1xf32>
    %24 = vector.multi_reduction <add>, %23, %cst_8 [1, 2] : vector<1x8x16xf32> to vector<1xf32>
    %25 = vector.shape_cast %24 : vector<1xf32> to vector<1x1x1xf32>
    %26 = vector.extract %25[0, 0, 0] : f32 from vector<1x1x1xf32>
    %cst_9 = arith.constant 1.280000e+02 : f32
    %27 = arith.divf %26, %cst_9 : f32
    %28 = vector.broadcast %27 : f32 to vector<8x16xf32>
    %29 = arith.subf %3, %28 : vector<8x16xf32>
    %30 = arith.mulf %29, %29 : vector<8x16xf32>
    %31 = vector.shape_cast %30 : vector<8x16xf32> to vector<1x8x16xf32>
    %cst_10 = arith.constant dense<0.000000e+00> : vector<1xf32>
    %32 = vector.multi_reduction <add>, %31, %cst_10 [1, 2] : vector<1x8x16xf32> to vector<1xf32>
    %33 = vector.shape_cast %32 : vector<1xf32> to vector<1x1x1xf32>
    %34 = vector.extract %33[0, 0, 0] : f32 from vector<1x1x1xf32>
    %cst_11 = arith.constant 1.280000e+02 : f32
    %35 = arith.divf %34, %cst_11 : f32
    %36 = vector.broadcast %27 : f32 to vector<8x16xf32>
    %37 = arith.subf %3, %36 : vector<8x16xf32>
    %cst_12 = arith.constant 9.99999974E-6 : f32
    %38 = arith.addf %35, %cst_12 : f32
    %39 = math.rsqrt %38 : f32
    %40 = vector.broadcast %39 : f32 to vector<8x16xf32>
    %41 = arith.mulf %37, %40 : vector<8x16xf32>
    %42 = arith.mulf %22, %22 : vector<8x16xf32>
    %43 = arith.mulf %41, %41 : vector<8x16xf32>
    %44 = arith.addf %42, %43 : vector<8x16xf32>
    %45 = arith.mulf %44, %22 : vector<8x16xf32>
    %46 = arith.mulf %44, %41 : vector<8x16xf32>
    %47 = tpu.concatenate %45, %46 in 1 : vector<8x16xf32>, vector<8x16xf32> -> vector<8x32xf32>
    %c0_13 = arith.constant 0 : index
    %c0_14 = arith.constant 0 : index
    %c0_15 = arith.constant 0 : index
    %48 = vector.load %arg1[%c0_13, %c0_14, %c0_15] : memref<2x128x384xf32, #tpu.memory_space<vmem>>, vector<1x128x384xf32>
    %49 = vector.shape_cast %48 : vector<1x128x384xf32> to vector<128x384xf32>
    %50 = vector.extract_strided_slice %49 {offsets = [0, 0], sizes = [32, 384], strides = [1, 1]} : vector<128x384xf32> to vector<32x384xf32>
    %c0_16 = arith.constant 0 : index
    %c0_17 = arith.constant 0 : index
    %c0_18 = arith.constant 0 : index
    %51 = vector.load %arg2[%c0_16, %c0_17, %c0_18] : memref<2x128x384xf32, #tpu.memory_space<vmem>>, vector<1x128x384xf32>
    %52 = vector.shape_cast %51 : vector<1x128x384xf32> to vector<128x384xf32>
    %c0_19 = arith.constant 0 : index
    %c0_20 = arith.constant 0 : index
    %c0_21 = arith.constant 0 : index
    %53 = vector.load %arg3[%c0_19, %c0_20, %c0_21] : memref<2x1x384xf32, #tpu.memory_space<vmem>>, vector<1x1x384xf32>
    %54 = vector.shape_cast %53 : vector<1x1x384xf32> to vector<1x384xf32>
    %c0_22 = arith.constant 0 : index
    %c0_23 = arith.constant 0 : index
    %c0_24 = arith.constant 0 : index
    %55 = vector.load %arg4[%c0_22, %c0_23, %c0_24] : memref<2x1x384xf32, #tpu.memory_space<vmem>>, vector<1x1x384xf32>
    %56 = vector.shape_cast %55 : vector<1x1x384xf32> to vector<1x384xf32>
    %cst_25 = arith.constant dense<0.000000e+00> : vector<8x384xf32>
    %57 = tpu.matmul %47, %50, %cst_25 {dimension_numbers = #tpu.dot_dimension_numbers<[1], [0], [0], [1], [0, 0, 1, 1], [], []>} : vector<8x32xf32>, vector<32x384xf32>, vector<8x384xf32> -> vector<8x384xf32>
    %58 = vector.broadcast %54 : vector<1x384xf32> to vector<8x384xf32>
    %59 = arith.addf %57, %58 : vector<8x384xf32>
    %60 = vector.extract_strided_slice %59 {offsets = [0, 0], sizes = [1, 384], strides = [1, 1]} : vector<8x384xf32> to vector<1x384xf32>
    %61 = vector.extract_strided_slice %59 {offsets = [1, 0], sizes = [1, 384], strides = [1, 1]} : vector<8x384xf32> to vector<1x384xf32>
    %62 = vector.extract_strided_slice %59 {offsets = [2, 0], sizes = [1, 384], strides = [1, 1]} : vector<8x384xf32> to vector<1x384xf32>
    %63 = vector.extract_strided_slice %59 {offsets = [3, 0], sizes = [1, 384], strides = [1, 1]} : vector<8x384xf32> to vector<1x384xf32>
    %64 = vector.extract_strided_slice %59 {offsets = [4, 0], sizes = [1, 384], strides = [1, 1]} : vector<8x384xf32> to vector<1x384xf32>
    %65 = vector.extract_strided_slice %59 {offsets = [5, 0], sizes = [1, 384], strides = [1, 1]} : vector<8x384xf32> to vector<1x384xf32>
    %66 = vector.extract_strided_slice %59 {offsets = [6, 0], sizes = [1, 384], strides = [1, 1]} : vector<8x384xf32> to vector<1x384xf32>
    %67 = vector.extract_strided_slice %59 {offsets = [7, 0], sizes = [1, 384], strides = [1, 1]} : vector<8x384xf32> to vector<1x384xf32>
    %cst_26 = arith.constant 0.000000e+00 : f32
    %68 = vector.broadcast %cst_26 : f32 to vector<1x128xf32>
    %cst_27 = arith.constant dense<0.000000e+00> : vector<1x384xf32>
    %69 = tpu.matmul %68, %52, %cst_27 {dimension_numbers = #tpu.dot_dimension_numbers<[1], [0], [0], [1], [0, 0, 1, 1], [], []>} : vector<1x128xf32>, vector<128x384xf32>, vector<1x384xf32> -> vector<1x384xf32>
    %70 = arith.addf %69, %56 : vector<1x384xf32>
    %71 = vector.extract_strided_slice %60 {offsets = [0, 0], sizes = [1, 128], strides = [1, 1]} : vector<1x384xf32> to vector<1x128xf32>
    %72 = vector.extract_strided_slice %70 {offsets = [0, 0], sizes = [1, 128], strides = [1, 1]} : vector<1x384xf32> to vector<1x128xf32>
    %73 = arith.addf %71, %72 : vector<1x128xf32>
    %cst_28 = arith.constant 5.000000e-01 : f32
    %74 = vector.broadcast %cst_28 : f32 to vector<1x128xf32>
    %75 = arith.mulf %74, %73 : vector<1x128xf32>
    %76 = math.tanh %75 : vector<1x128xf32>
    %cst_29 = arith.constant 1.000000e+00 : f32
    %77 = vector.broadcast %cst_29 : f32 to vector<1x128xf32>
    %78 = arith.addf %76, %77 : vector<1x128xf32>
    %cst_30 = arith.constant 5.000000e-01 : f32
    %79 = vector.broadcast %cst_30 : f32 to vector<1x128xf32>
    %80 = arith.mulf %79, %78 : vector<1x128xf32>
    %81 = vector.extract_strided_slice %60 {offsets = [0, 128], sizes = [1, 128], strides = [1, 1]} : vector<1x384xf32> to vector<1x128xf32>
    %82 = vector.extract_strided_slice %70 {offsets = [0, 128], sizes = [1, 128], strides = [1, 1]} : vector<1x384xf32> to vector<1x128xf32>
    %83 = arith.addf %81, %82 : vector<1x128xf32>
    %cst_31 = arith.constant 5.000000e-01 : f32
    %84 = vector.broadcast %cst_31 : f32 to vector<1x128xf32>
    %85 = arith.mulf %84, %83 : vector<1x128xf32>
    %86 = math.tanh %85 : vector<1x128xf32>
    %cst_32 = arith.constant 1.000000e+00 : f32
    %87 = vector.broadcast %cst_32 : f32 to vector<1x128xf32>
    %88 = arith.addf %86, %87 : vector<1x128xf32>
    %cst_33 = arith.constant 5.000000e-01 : f32
    %89 = vector.broadcast %cst_33 : f32 to vector<1x128xf32>
    %90 = arith.mulf %89, %88 : vector<1x128xf32>
    %91 = vector.extract_strided_slice %60 {offsets = [0, 256], sizes = [1, 128], strides = [1, 1]} : vector<1x384xf32> to vector<1x128xf32>
    %92 = vector.extract_strided_slice %70 {offsets = [0, 256], sizes = [1, 128], strides = [1, 1]} : vector<1x384xf32> to vector<1x128xf32>
    %93 = arith.mulf %80, %92 : vector<1x128xf32>
    %94 = arith.addf %91, %93 : vector<1x128xf32>
    %95 = math.tanh %94 : vector<1x128xf32>
    %cst_34 = arith.constant 1.000000e+00 : f32
    %96 = vector.broadcast %cst_34 : f32 to vector<1x128xf32>
    %97 = arith.subf %96, %90 : vector<1x128xf32>
    %98 = arith.mulf %97, %95 : vector<1x128xf32>
    %99 = arith.mulf %90, %68 : vector<1x128xf32>
    %100 = arith.addf %98, %99 : vector<1x128xf32>
    %cst_35 = arith.constant dense<0.000000e+00> : vector<1x384xf32>
    %101 = tpu.matmul %100, %52, %cst_35 {dimension_numbers = #tpu.dot_dimension_numbers<[1], [0], [0], [1], [0, 0, 1, 1], [], []>} : vector<1x128xf32>, vector<128x384xf32>, vector<1x384xf32> -> vector<1x384xf32>
    %102 = arith.addf %101, %56 : vector<1x384xf32>
    %103 = vector.extract_strided_slice %61 {offsets = [0, 0], sizes = [1, 128], strides = [1, 1]} : vector<1x384xf32> to vector<1x128xf32>
    %104 = vector.extract_strided_slice %102 {offsets = [0, 0], sizes = [1, 128], strides = [1, 1]} : vector<1x384xf32> to vector<1x128xf32>
    %105 = arith.addf %103, %104 : vector<1x128xf32>
    %cst_36 = arith.constant 5.000000e-01 : f32
    %106 = vector.broadcast %cst_36 : f32 to vector<1x128xf32>
    %107 = arith.mulf %106, %105 : vector<1x128xf32>
    %108 = math.tanh %107 : vector<1x128xf32>
    %cst_37 = arith.constant 1.000000e+00 : f32
    %109 = vector.broadcast %cst_37 : f32 to vector<1x128xf32>
    %110 = arith.addf %108, %109 : vector<1x128xf32>
    %cst_38 = arith.constant 5.000000e-01 : f32
    %111 = vector.broadcast %cst_38 : f32 to vector<1x128xf32>
    %112 = arith.mulf %111, %110 : vector<1x128xf32>
    %113 = vector.extract_strided_slice %61 {offsets = [0, 128], sizes = [1, 128], strides = [1, 1]} : vector<1x384xf32> to vector<1x128xf32>
    %114 = vector.extract_strided_slice %102 {offsets = [0, 128], sizes = [1, 128], strides = [1, 1]} : vector<1x384xf32> to vector<1x128xf32>
    %115 = arith.addf %113, %114 : vector<1x128xf32>
    %cst_39 = arith.constant 5.000000e-01 : f32
    %116 = vector.broadcast %cst_39 : f32 to vector<1x128xf32>
    %117 = arith.mulf %116, %115 : vector<1x128xf32>
    %118 = math.tanh %117 : vector<1x128xf32>
    %cst_40 = arith.constant 1.000000e+00 : f32
    %119 = vector.broadcast %cst_40 : f32 to vector<1x128xf32>
    %120 = arith.addf %118, %119 : vector<1x128xf32>
    %cst_41 = arith.constant 5.000000e-01 : f32
    %121 = vector.broadcast %cst_41 : f32 to vector<1x128xf32>
    %122 = arith.mulf %121, %120 : vector<1x128xf32>
    %123 = vector.extract_strided_slice %61 {offsets = [0, 256], sizes = [1, 128], strides = [1, 1]} : vector<1x384xf32> to vector<1x128xf32>
    %124 = vector.extract_strided_slice %102 {offsets = [0, 256], sizes = [1, 128], strides = [1, 1]} : vector<1x384xf32> to vector<1x128xf32>
    %125 = arith.mulf %112, %124 : vector<1x128xf32>
    %126 = arith.addf %123, %125 : vector<1x128xf32>
    %127 = math.tanh %126 : vector<1x128xf32>
    %cst_42 = arith.constant 1.000000e+00 : f32
    %128 = vector.broadcast %cst_42 : f32 to vector<1x128xf32>
    %129 = arith.subf %128, %122 : vector<1x128xf32>
    %130 = arith.mulf %129, %127 : vector<1x128xf32>
    %131 = arith.mulf %122, %100 : vector<1x128xf32>
    %132 = arith.addf %130, %131 : vector<1x128xf32>
    %cst_43 = arith.constant dense<0.000000e+00> : vector<1x384xf32>
    %133 = tpu.matmul %132, %52, %cst_43 {dimension_numbers = #tpu.dot_dimension_numbers<[1], [0], [0], [1], [0, 0, 1, 1], [], []>} : vector<1x128xf32>, vector<128x384xf32>, vector<1x384xf32> -> vector<1x384xf32>
    %134 = arith.addf %133, %56 : vector<1x384xf32>
    %135 = vector.extract_strided_slice %62 {offsets = [0, 0], sizes = [1, 128], strides = [1, 1]} : vector<1x384xf32> to vector<1x128xf32>
    %136 = vector.extract_strided_slice %134 {offsets = [0, 0], sizes = [1, 128], strides = [1, 1]} : vector<1x384xf32> to vector<1x128xf32>
    %137 = arith.addf %135, %136 : vector<1x128xf32>
    %cst_44 = arith.constant 5.000000e-01 : f32
    %138 = vector.broadcast %cst_44 : f32 to vector<1x128xf32>
    %139 = arith.mulf %138, %137 : vector<1x128xf32>
    %140 = math.tanh %139 : vector<1x128xf32>
    %cst_45 = arith.constant 1.000000e+00 : f32
    %141 = vector.broadcast %cst_45 : f32 to vector<1x128xf32>
    %142 = arith.addf %140, %141 : vector<1x128xf32>
    %cst_46 = arith.constant 5.000000e-01 : f32
    %143 = vector.broadcast %cst_46 : f32 to vector<1x128xf32>
    %144 = arith.mulf %143, %142 : vector<1x128xf32>
    %145 = vector.extract_strided_slice %62 {offsets = [0, 128], sizes = [1, 128], strides = [1, 1]} : vector<1x384xf32> to vector<1x128xf32>
    %146 = vector.extract_strided_slice %134 {offsets = [0, 128], sizes = [1, 128], strides = [1, 1]} : vector<1x384xf32> to vector<1x128xf32>
    %147 = arith.addf %145, %146 : vector<1x128xf32>
    %cst_47 = arith.constant 5.000000e-01 : f32
    %148 = vector.broadcast %cst_47 : f32 to vector<1x128xf32>
    %149 = arith.mulf %148, %147 : vector<1x128xf32>
    %150 = math.tanh %149 : vector<1x128xf32>
    %cst_48 = arith.constant 1.000000e+00 : f32
    %151 = vector.broadcast %cst_48 : f32 to vector<1x128xf32>
    %152 = arith.addf %150, %151 : vector<1x128xf32>
    %cst_49 = arith.constant 5.000000e-01 : f32
    %153 = vector.broadcast %cst_49 : f32 to vector<1x128xf32>
    %154 = arith.mulf %153, %152 : vector<1x128xf32>
    %155 = vector.extract_strided_slice %62 {offsets = [0, 256], sizes = [1, 128], strides = [1, 1]} : vector<1x384xf32> to vector<1x128xf32>
    %156 = vector.extract_strided_slice %134 {offsets = [0, 256], sizes = [1, 128], strides = [1, 1]} : vector<1x384xf32> to vector<1x128xf32>
    %157 = arith.mulf %144, %156 : vector<1x128xf32>
    %158 = arith.addf %155, %157 : vector<1x128xf32>
    %159 = math.tanh %158 : vector<1x128xf32>
    %cst_50 = arith.constant 1.000000e+00 : f32
    %160 = vector.broadcast %cst_50 : f32 to vector<1x128xf32>
    %161 = arith.subf %160, %154 : vector<1x128xf32>
    %162 = arith.mulf %161, %159 : vector<1x128xf32>
    %163 = arith.mulf %154, %132 : vector<1x128xf32>
    %164 = arith.addf %162, %163 : vector<1x128xf32>
    %cst_51 = arith.constant dense<0.000000e+00> : vector<1x384xf32>
    %165 = tpu.matmul %164, %52, %cst_51 {dimension_numbers = #tpu.dot_dimension_numbers<[1], [0], [0], [1], [0, 0, 1, 1], [], []>} : vector<1x128xf32>, vector<128x384xf32>, vector<1x384xf32> -> vector<1x384xf32>
    %166 = arith.addf %165, %56 : vector<1x384xf32>
    %167 = vector.extract_strided_slice %63 {offsets = [0, 0], sizes = [1, 128], strides = [1, 1]} : vector<1x384xf32> to vector<1x128xf32>
    %168 = vector.extract_strided_slice %166 {offsets = [0, 0], sizes = [1, 128], strides = [1, 1]} : vector<1x384xf32> to vector<1x128xf32>
    %169 = arith.addf %167, %168 : vector<1x128xf32>
    %cst_52 = arith.constant 5.000000e-01 : f32
    %170 = vector.broadcast %cst_52 : f32 to vector<1x128xf32>
    %171 = arith.mulf %170, %169 : vector<1x128xf32>
    %172 = math.tanh %171 : vector<1x128xf32>
    %cst_53 = arith.constant 1.000000e+00 : f32
    %173 = vector.broadcast %cst_53 : f32 to vector<1x128xf32>
    %174 = arith.addf %172, %173 : vector<1x128xf32>
    %cst_54 = arith.constant 5.000000e-01 : f32
    %175 = vector.broadcast %cst_54 : f32 to vector<1x128xf32>
    %176 = arith.mulf %175, %174 : vector<1x128xf32>
    %177 = vector.extract_strided_slice %63 {offsets = [0, 128], sizes = [1, 128], strides = [1, 1]} : vector<1x384xf32> to vector<1x128xf32>
    %178 = vector.extract_strided_slice %166 {offsets = [0, 128], sizes = [1, 128], strides = [1, 1]} : vector<1x384xf32> to vector<1x128xf32>
    %179 = arith.addf %177, %178 : vector<1x128xf32>
    %cst_55 = arith.constant 5.000000e-01 : f32
    %180 = vector.broadcast %cst_55 : f32 to vector<1x128xf32>
    %181 = arith.mulf %180, %179 : vector<1x128xf32>
    %182 = math.tanh %181 : vector<1x128xf32>
    %cst_56 = arith.constant 1.000000e+00 : f32
    %183 = vector.broadcast %cst_56 : f32 to vector<1x128xf32>
    %184 = arith.addf %182, %183 : vector<1x128xf32>
    %cst_57 = arith.constant 5.000000e-01 : f32
    %185 = vector.broadcast %cst_57 : f32 to vector<1x128xf32>
    %186 = arith.mulf %185, %184 : vector<1x128xf32>
    %187 = vector.extract_strided_slice %63 {offsets = [0, 256], sizes = [1, 128], strides = [1, 1]} : vector<1x384xf32> to vector<1x128xf32>
    %188 = vector.extract_strided_slice %166 {offsets = [0, 256], sizes = [1, 128], strides = [1, 1]} : vector<1x384xf32> to vector<1x128xf32>
    %189 = arith.mulf %176, %188 : vector<1x128xf32>
    %190 = arith.addf %187, %189 : vector<1x128xf32>
    %191 = math.tanh %190 : vector<1x128xf32>
    %cst_58 = arith.constant 1.000000e+00 : f32
    %192 = vector.broadcast %cst_58 : f32 to vector<1x128xf32>
    %193 = arith.subf %192, %186 : vector<1x128xf32>
    %194 = arith.mulf %193, %191 : vector<1x128xf32>
    %195 = arith.mulf %186, %164 : vector<1x128xf32>
    %196 = arith.addf %194, %195 : vector<1x128xf32>
    %cst_59 = arith.constant dense<0.000000e+00> : vector<1x384xf32>
    %197 = tpu.matmul %196, %52, %cst_59 {dimension_numbers = #tpu.dot_dimension_numbers<[1], [0], [0], [1], [0, 0, 1, 1], [], []>} : vector<1x128xf32>, vector<128x384xf32>, vector<1x384xf32> -> vector<1x384xf32>
    %198 = arith.addf %197, %56 : vector<1x384xf32>
    %199 = vector.extract_strided_slice %64 {offsets = [0, 0], sizes = [1, 128], strides = [1, 1]} : vector<1x384xf32> to vector<1x128xf32>
    %200 = vector.extract_strided_slice %198 {offsets = [0, 0], sizes = [1, 128], strides = [1, 1]} : vector<1x384xf32> to vector<1x128xf32>
    %201 = arith.addf %199, %200 : vector<1x128xf32>
    %cst_60 = arith.constant 5.000000e-01 : f32
    %202 = vector.broadcast %cst_60 : f32 to vector<1x128xf32>
    %203 = arith.mulf %202, %201 : vector<1x128xf32>
    %204 = math.tanh %203 : vector<1x128xf32>
    %cst_61 = arith.constant 1.000000e+00 : f32
    %205 = vector.broadcast %cst_61 : f32 to vector<1x128xf32>
    %206 = arith.addf %204, %205 : vector<1x128xf32>
    %cst_62 = arith.constant 5.000000e-01 : f32
    %207 = vector.broadcast %cst_62 : f32 to vector<1x128xf32>
    %208 = arith.mulf %207, %206 : vector<1x128xf32>
    %209 = vector.extract_strided_slice %64 {offsets = [0, 128], sizes = [1, 128], strides = [1, 1]} : vector<1x384xf32> to vector<1x128xf32>
    %210 = vector.extract_strided_slice %198 {offsets = [0, 128], sizes = [1, 128], strides = [1, 1]} : vector<1x384xf32> to vector<1x128xf32>
    %211 = arith.addf %209, %210 : vector<1x128xf32>
    %cst_63 = arith.constant 5.000000e-01 : f32
    %212 = vector.broadcast %cst_63 : f32 to vector<1x128xf32>
    %213 = arith.mulf %212, %211 : vector<1x128xf32>
    %214 = math.tanh %213 : vector<1x128xf32>
    %cst_64 = arith.constant 1.000000e+00 : f32
    %215 = vector.broadcast %cst_64 : f32 to vector<1x128xf32>
    %216 = arith.addf %214, %215 : vector<1x128xf32>
    %cst_65 = arith.constant 5.000000e-01 : f32
    %217 = vector.broadcast %cst_65 : f32 to vector<1x128xf32>
    %218 = arith.mulf %217, %216 : vector<1x128xf32>
    %219 = vector.extract_strided_slice %64 {offsets = [0, 256], sizes = [1, 128], strides = [1, 1]} : vector<1x384xf32> to vector<1x128xf32>
    %220 = vector.extract_strided_slice %198 {offsets = [0, 256], sizes = [1, 128], strides = [1, 1]} : vector<1x384xf32> to vector<1x128xf32>
    %221 = arith.mulf %208, %220 : vector<1x128xf32>
    %222 = arith.addf %219, %221 : vector<1x128xf32>
    %223 = math.tanh %222 : vector<1x128xf32>
    %cst_66 = arith.constant 1.000000e+00 : f32
    %224 = vector.broadcast %cst_66 : f32 to vector<1x128xf32>
    %225 = arith.subf %224, %218 : vector<1x128xf32>
    %226 = arith.mulf %225, %223 : vector<1x128xf32>
    %227 = arith.mulf %218, %196 : vector<1x128xf32>
    %228 = arith.addf %226, %227 : vector<1x128xf32>
    %cst_67 = arith.constant dense<0.000000e+00> : vector<1x384xf32>
    %229 = tpu.matmul %228, %52, %cst_67 {dimension_numbers = #tpu.dot_dimension_numbers<[1], [0], [0], [1], [0, 0, 1, 1], [], []>} : vector<1x128xf32>, vector<128x384xf32>, vector<1x384xf32> -> vector<1x384xf32>
    %230 = arith.addf %229, %56 : vector<1x384xf32>
    %231 = vector.extract_strided_slice %65 {offsets = [0, 0], sizes = [1, 128], strides = [1, 1]} : vector<1x384xf32> to vector<1x128xf32>
    %232 = vector.extract_strided_slice %230 {offsets = [0, 0], sizes = [1, 128], strides = [1, 1]} : vector<1x384xf32> to vector<1x128xf32>
    %233 = arith.addf %231, %232 : vector<1x128xf32>
    %cst_68 = arith.constant 5.000000e-01 : f32
    %234 = vector.broadcast %cst_68 : f32 to vector<1x128xf32>
    %235 = arith.mulf %234, %233 : vector<1x128xf32>
    %236 = math.tanh %235 : vector<1x128xf32>
    %cst_69 = arith.constant 1.000000e+00 : f32
    %237 = vector.broadcast %cst_69 : f32 to vector<1x128xf32>
    %238 = arith.addf %236, %237 : vector<1x128xf32>
    %cst_70 = arith.constant 5.000000e-01 : f32
    %239 = vector.broadcast %cst_70 : f32 to vector<1x128xf32>
    %240 = arith.mulf %239, %238 : vector<1x128xf32>
    %241 = vector.extract_strided_slice %65 {offsets = [0, 128], sizes = [1, 128], strides = [1, 1]} : vector<1x384xf32> to vector<1x128xf32>
    %242 = vector.extract_strided_slice %230 {offsets = [0, 128], sizes = [1, 128], strides = [1, 1]} : vector<1x384xf32> to vector<1x128xf32>
    %243 = arith.addf %241, %242 : vector<1x128xf32>
    %cst_71 = arith.constant 5.000000e-01 : f32
    %244 = vector.broadcast %cst_71 : f32 to vector<1x128xf32>
    %245 = arith.mulf %244, %243 : vector<1x128xf32>
    %246 = math.tanh %245 : vector<1x128xf32>
    %cst_72 = arith.constant 1.000000e+00 : f32
    %247 = vector.broadcast %cst_72 : f32 to vector<1x128xf32>
    %248 = arith.addf %246, %247 : vector<1x128xf32>
    %cst_73 = arith.constant 5.000000e-01 : f32
    %249 = vector.broadcast %cst_73 : f32 to vector<1x128xf32>
    %250 = arith.mulf %249, %248 : vector<1x128xf32>
    %251 = vector.extract_strided_slice %65 {offsets = [0, 256], sizes = [1, 128], strides = [1, 1]} : vector<1x384xf32> to vector<1x128xf32>
    %252 = vector.extract_strided_slice %230 {offsets = [0, 256], sizes = [1, 128], strides = [1, 1]} : vector<1x384xf32> to vector<1x128xf32>
    %253 = arith.mulf %240, %252 : vector<1x128xf32>
    %254 = arith.addf %251, %253 : vector<1x128xf32>
    %255 = math.tanh %254 : vector<1x128xf32>
    %cst_74 = arith.constant 1.000000e+00 : f32
    %256 = vector.broadcast %cst_74 : f32 to vector<1x128xf32>
    %257 = arith.subf %256, %250 : vector<1x128xf32>
    %258 = arith.mulf %257, %255 : vector<1x128xf32>
    %259 = arith.mulf %250, %228 : vector<1x128xf32>
    %260 = arith.addf %258, %259 : vector<1x128xf32>
    %cst_75 = arith.constant dense<0.000000e+00> : vector<1x384xf32>
    %261 = tpu.matmul %260, %52, %cst_75 {dimension_numbers = #tpu.dot_dimension_numbers<[1], [0], [0], [1], [0, 0, 1, 1], [], []>} : vector<1x128xf32>, vector<128x384xf32>, vector<1x384xf32> -> vector<1x384xf32>
    %262 = arith.addf %261, %56 : vector<1x384xf32>
    %263 = vector.extract_strided_slice %66 {offsets = [0, 0], sizes = [1, 128], strides = [1, 1]} : vector<1x384xf32> to vector<1x128xf32>
    %264 = vector.extract_strided_slice %262 {offsets = [0, 0], sizes = [1, 128], strides = [1, 1]} : vector<1x384xf32> to vector<1x128xf32>
    %265 = arith.addf %263, %264 : vector<1x128xf32>
    %cst_76 = arith.constant 5.000000e-01 : f32
    %266 = vector.broadcast %cst_76 : f32 to vector<1x128xf32>
    %267 = arith.mulf %266, %265 : vector<1x128xf32>
    %268 = math.tanh %267 : vector<1x128xf32>
    %cst_77 = arith.constant 1.000000e+00 : f32
    %269 = vector.broadcast %cst_77 : f32 to vector<1x128xf32>
    %270 = arith.addf %268, %269 : vector<1x128xf32>
    %cst_78 = arith.constant 5.000000e-01 : f32
    %271 = vector.broadcast %cst_78 : f32 to vector<1x128xf32>
    %272 = arith.mulf %271, %270 : vector<1x128xf32>
    %273 = vector.extract_strided_slice %66 {offsets = [0, 128], sizes = [1, 128], strides = [1, 1]} : vector<1x384xf32> to vector<1x128xf32>
    %274 = vector.extract_strided_slice %262 {offsets = [0, 128], sizes = [1, 128], strides = [1, 1]} : vector<1x384xf32> to vector<1x128xf32>
    %275 = arith.addf %273, %274 : vector<1x128xf32>
    %cst_79 = arith.constant 5.000000e-01 : f32
    %276 = vector.broadcast %cst_79 : f32 to vector<1x128xf32>
    %277 = arith.mulf %276, %275 : vector<1x128xf32>
    %278 = math.tanh %277 : vector<1x128xf32>
    %cst_80 = arith.constant 1.000000e+00 : f32
    %279 = vector.broadcast %cst_80 : f32 to vector<1x128xf32>
    %280 = arith.addf %278, %279 : vector<1x128xf32>
    %cst_81 = arith.constant 5.000000e-01 : f32
    %281 = vector.broadcast %cst_81 : f32 to vector<1x128xf32>
    %282 = arith.mulf %281, %280 : vector<1x128xf32>
    %283 = vector.extract_strided_slice %66 {offsets = [0, 256], sizes = [1, 128], strides = [1, 1]} : vector<1x384xf32> to vector<1x128xf32>
    %284 = vector.extract_strided_slice %262 {offsets = [0, 256], sizes = [1, 128], strides = [1, 1]} : vector<1x384xf32> to vector<1x128xf32>
    %285 = arith.mulf %272, %284 : vector<1x128xf32>
    %286 = arith.addf %283, %285 : vector<1x128xf32>
    %287 = math.tanh %286 : vector<1x128xf32>
    %cst_82 = arith.constant 1.000000e+00 : f32
    %288 = vector.broadcast %cst_82 : f32 to vector<1x128xf32>
    %289 = arith.subf %288, %282 : vector<1x128xf32>
    %290 = arith.mulf %289, %287 : vector<1x128xf32>
    %291 = arith.mulf %282, %260 : vector<1x128xf32>
    %292 = arith.addf %290, %291 : vector<1x128xf32>
    %cst_83 = arith.constant dense<0.000000e+00> : vector<1x384xf32>
    %293 = tpu.matmul %292, %52, %cst_83 {dimension_numbers = #tpu.dot_dimension_numbers<[1], [0], [0], [1], [0, 0, 1, 1], [], []>} : vector<1x128xf32>, vector<128x384xf32>, vector<1x384xf32> -> vector<1x384xf32>
    %294 = arith.addf %293, %56 : vector<1x384xf32>
    %295 = vector.extract_strided_slice %67 {offsets = [0, 0], sizes = [1, 128], strides = [1, 1]} : vector<1x384xf32> to vector<1x128xf32>
    %296 = vector.extract_strided_slice %294 {offsets = [0, 0], sizes = [1, 128], strides = [1, 1]} : vector<1x384xf32> to vector<1x128xf32>
    %297 = arith.addf %295, %296 : vector<1x128xf32>
    %cst_84 = arith.constant 5.000000e-01 : f32
    %298 = vector.broadcast %cst_84 : f32 to vector<1x128xf32>
    %299 = arith.mulf %298, %297 : vector<1x128xf32>
    %300 = math.tanh %299 : vector<1x128xf32>
    %cst_85 = arith.constant 1.000000e+00 : f32
    %301 = vector.broadcast %cst_85 : f32 to vector<1x128xf32>
    %302 = arith.addf %300, %301 : vector<1x128xf32>
    %cst_86 = arith.constant 5.000000e-01 : f32
    %303 = vector.broadcast %cst_86 : f32 to vector<1x128xf32>
    %304 = arith.mulf %303, %302 : vector<1x128xf32>
    %305 = vector.extract_strided_slice %67 {offsets = [0, 128], sizes = [1, 128], strides = [1, 1]} : vector<1x384xf32> to vector<1x128xf32>
    %306 = vector.extract_strided_slice %294 {offsets = [0, 128], sizes = [1, 128], strides = [1, 1]} : vector<1x384xf32> to vector<1x128xf32>
    %307 = arith.addf %305, %306 : vector<1x128xf32>
    %cst_87 = arith.constant 5.000000e-01 : f32
    %308 = vector.broadcast %cst_87 : f32 to vector<1x128xf32>
    %309 = arith.mulf %308, %307 : vector<1x128xf32>
    %310 = math.tanh %309 : vector<1x128xf32>
    %cst_88 = arith.constant 1.000000e+00 : f32
    %311 = vector.broadcast %cst_88 : f32 to vector<1x128xf32>
    %312 = arith.addf %310, %311 : vector<1x128xf32>
    %cst_89 = arith.constant 5.000000e-01 : f32
    %313 = vector.broadcast %cst_89 : f32 to vector<1x128xf32>
    %314 = arith.mulf %313, %312 : vector<1x128xf32>
    %315 = vector.extract_strided_slice %67 {offsets = [0, 256], sizes = [1, 128], strides = [1, 1]} : vector<1x384xf32> to vector<1x128xf32>
    %316 = vector.extract_strided_slice %294 {offsets = [0, 256], sizes = [1, 128], strides = [1, 1]} : vector<1x384xf32> to vector<1x128xf32>
    %317 = arith.mulf %304, %316 : vector<1x128xf32>
    %318 = arith.addf %315, %317 : vector<1x128xf32>
    %319 = math.tanh %318 : vector<1x128xf32>
    %cst_90 = arith.constant 1.000000e+00 : f32
    %320 = vector.broadcast %cst_90 : f32 to vector<1x128xf32>
    %321 = arith.subf %320, %314 : vector<1x128xf32>
    %322 = arith.mulf %321, %319 : vector<1x128xf32>
    %323 = arith.mulf %314, %292 : vector<1x128xf32>
    %324 = arith.addf %322, %323 : vector<1x128xf32>
    %c1_91 = arith.constant 1 : index
    %c0_92 = arith.constant 0 : index
    %c0_93 = arith.constant 0 : index
    %325 = vector.load %arg1[%c1_91, %c0_92, %c0_93] : memref<2x128x384xf32, #tpu.memory_space<vmem>>, vector<1x128x384xf32>
    %326 = vector.shape_cast %325 : vector<1x128x384xf32> to vector<128x384xf32>
    %c1_94 = arith.constant 1 : index
    %c0_95 = arith.constant 0 : index
    %c0_96 = arith.constant 0 : index
    %327 = vector.load %arg2[%c1_94, %c0_95, %c0_96] : memref<2x128x384xf32, #tpu.memory_space<vmem>>, vector<1x128x384xf32>
    %328 = vector.shape_cast %327 : vector<1x128x384xf32> to vector<128x384xf32>
    %c1_97 = arith.constant 1 : index
    %c0_98 = arith.constant 0 : index
    %c0_99 = arith.constant 0 : index
    %329 = vector.load %arg3[%c1_97, %c0_98, %c0_99] : memref<2x1x384xf32, #tpu.memory_space<vmem>>, vector<1x1x384xf32>
    %330 = vector.shape_cast %329 : vector<1x1x384xf32> to vector<1x384xf32>
    %c1_100 = arith.constant 1 : index
    %c0_101 = arith.constant 0 : index
    %c0_102 = arith.constant 0 : index
    %331 = vector.load %arg4[%c1_100, %c0_101, %c0_102] : memref<2x1x384xf32, #tpu.memory_space<vmem>>, vector<1x1x384xf32>
    %332 = vector.shape_cast %331 : vector<1x1x384xf32> to vector<1x384xf32>
    %cst_103 = arith.constant 0.000000e+00 : f32
    %333 = vector.broadcast %cst_103 : f32 to vector<1x128xf32>
    %cst_104 = arith.constant dense<0.000000e+00> : vector<1x384xf32>
    %334 = tpu.matmul %100, %326, %cst_104 {dimension_numbers = #tpu.dot_dimension_numbers<[1], [0], [0], [1], [0, 0, 1, 1], [], []>} : vector<1x128xf32>, vector<128x384xf32>, vector<1x384xf32> -> vector<1x384xf32>
    %335 = arith.addf %334, %330 : vector<1x384xf32>
    %cst_105 = arith.constant dense<0.000000e+00> : vector<1x384xf32>
    %336 = tpu.matmul %333, %328, %cst_105 {dimension_numbers = #tpu.dot_dimension_numbers<[1], [0], [0], [1], [0, 0, 1, 1], [], []>} : vector<1x128xf32>, vector<128x384xf32>, vector<1x384xf32> -> vector<1x384xf32>
    %337 = arith.addf %336, %332 : vector<1x384xf32>
    %338 = vector.extract_strided_slice %335 {offsets = [0, 0], sizes = [1, 128], strides = [1, 1]} : vector<1x384xf32> to vector<1x128xf32>
    %339 = vector.extract_strided_slice %337 {offsets = [0, 0], sizes = [1, 128], strides = [1, 1]} : vector<1x384xf32> to vector<1x128xf32>
    %340 = arith.addf %338, %339 : vector<1x128xf32>
    %cst_106 = arith.constant 5.000000e-01 : f32
    %341 = vector.broadcast %cst_106 : f32 to vector<1x128xf32>
    %342 = arith.mulf %341, %340 : vector<1x128xf32>
    %343 = math.tanh %342 : vector<1x128xf32>
    %cst_107 = arith.constant 1.000000e+00 : f32
    %344 = vector.broadcast %cst_107 : f32 to vector<1x128xf32>
    %345 = arith.addf %343, %344 : vector<1x128xf32>
    %cst_108 = arith.constant 5.000000e-01 : f32
    %346 = vector.broadcast %cst_108 : f32 to vector<1x128xf32>
    %347 = arith.mulf %346, %345 : vector<1x128xf32>
    %348 = vector.extract_strided_slice %335 {offsets = [0, 128], sizes = [1, 128], strides = [1, 1]} : vector<1x384xf32> to vector<1x128xf32>
    %349 = vector.extract_strided_slice %337 {offsets = [0, 128], sizes = [1, 128], strides = [1, 1]} : vector<1x384xf32> to vector<1x128xf32>
    %350 = arith.addf %348, %349 : vector<1x128xf32>
    %cst_109 = arith.constant 5.000000e-01 : f32
    %351 = vector.broadcast %cst_109 : f32 to vector<1x128xf32>
    %352 = arith.mulf %351, %350 : vector<1x128xf32>
    %353 = math.tanh %352 : vector<1x128xf32>
    %cst_110 = arith.constant 1.000000e+00 : f32
    %354 = vector.broadcast %cst_110 : f32 to vector<1x128xf32>
    %355 = arith.addf %353, %354 : vector<1x128xf32>
    %cst_111 = arith.constant 5.000000e-01 : f32
    %356 = vector.broadcast %cst_111 : f32 to vector<1x128xf32>
    %357 = arith.mulf %356, %355 : vector<1x128xf32>
    %358 = vector.extract_strided_slice %335 {offsets = [0, 256], sizes = [1, 128], strides = [1, 1]} : vector<1x384xf32> to vector<1x128xf32>
    %359 = vector.extract_strided_slice %337 {offsets = [0, 256], sizes = [1, 128], strides = [1, 1]} : vector<1x384xf32> to vector<1x128xf32>
    %360 = arith.mulf %347, %359 : vector<1x128xf32>
    %361 = arith.addf %358, %360 : vector<1x128xf32>
    %362 = math.tanh %361 : vector<1x128xf32>
    %cst_112 = arith.constant 1.000000e+00 : f32
    %363 = vector.broadcast %cst_112 : f32 to vector<1x128xf32>
    %364 = arith.subf %363, %357 : vector<1x128xf32>
    %365 = arith.mulf %364, %362 : vector<1x128xf32>
    %366 = arith.mulf %357, %333 : vector<1x128xf32>
    %367 = arith.addf %365, %366 : vector<1x128xf32>
    %cst_113 = arith.constant dense<0.000000e+00> : vector<1x384xf32>
    %368 = tpu.matmul %132, %326, %cst_113 {dimension_numbers = #tpu.dot_dimension_numbers<[1], [0], [0], [1], [0, 0, 1, 1], [], []>} : vector<1x128xf32>, vector<128x384xf32>, vector<1x384xf32> -> vector<1x384xf32>
    %369 = arith.addf %368, %330 : vector<1x384xf32>
    %cst_114 = arith.constant dense<0.000000e+00> : vector<1x384xf32>
    %370 = tpu.matmul %367, %328, %cst_114 {dimension_numbers = #tpu.dot_dimension_numbers<[1], [0], [0], [1], [0, 0, 1, 1], [], []>} : vector<1x128xf32>, vector<128x384xf32>, vector<1x384xf32> -> vector<1x384xf32>
    %371 = arith.addf %370, %332 : vector<1x384xf32>
    %372 = vector.extract_strided_slice %369 {offsets = [0, 0], sizes = [1, 128], strides = [1, 1]} : vector<1x384xf32> to vector<1x128xf32>
    %373 = vector.extract_strided_slice %371 {offsets = [0, 0], sizes = [1, 128], strides = [1, 1]} : vector<1x384xf32> to vector<1x128xf32>
    %374 = arith.addf %372, %373 : vector<1x128xf32>
    %cst_115 = arith.constant 5.000000e-01 : f32
    %375 = vector.broadcast %cst_115 : f32 to vector<1x128xf32>
    %376 = arith.mulf %375, %374 : vector<1x128xf32>
    %377 = math.tanh %376 : vector<1x128xf32>
    %cst_116 = arith.constant 1.000000e+00 : f32
    %378 = vector.broadcast %cst_116 : f32 to vector<1x128xf32>
    %379 = arith.addf %377, %378 : vector<1x128xf32>
    %cst_117 = arith.constant 5.000000e-01 : f32
    %380 = vector.broadcast %cst_117 : f32 to vector<1x128xf32>
    %381 = arith.mulf %380, %379 : vector<1x128xf32>
    %382 = vector.extract_strided_slice %369 {offsets = [0, 128], sizes = [1, 128], strides = [1, 1]} : vector<1x384xf32> to vector<1x128xf32>
    %383 = vector.extract_strided_slice %371 {offsets = [0, 128], sizes = [1, 128], strides = [1, 1]} : vector<1x384xf32> to vector<1x128xf32>
    %384 = arith.addf %382, %383 : vector<1x128xf32>
    %cst_118 = arith.constant 5.000000e-01 : f32
    %385 = vector.broadcast %cst_118 : f32 to vector<1x128xf32>
    %386 = arith.mulf %385, %384 : vector<1x128xf32>
    %387 = math.tanh %386 : vector<1x128xf32>
    %cst_119 = arith.constant 1.000000e+00 : f32
    %388 = vector.broadcast %cst_119 : f32 to vector<1x128xf32>
    %389 = arith.addf %387, %388 : vector<1x128xf32>
    %cst_120 = arith.constant 5.000000e-01 : f32
    %390 = vector.broadcast %cst_120 : f32 to vector<1x128xf32>
    %391 = arith.mulf %390, %389 : vector<1x128xf32>
    %392 = vector.extract_strided_slice %369 {offsets = [0, 256], sizes = [1, 128], strides = [1, 1]} : vector<1x384xf32> to vector<1x128xf32>
    %393 = vector.extract_strided_slice %371 {offsets = [0, 256], sizes = [1, 128], strides = [1, 1]} : vector<1x384xf32> to vector<1x128xf32>
    %394 = arith.mulf %381, %393 : vector<1x128xf32>
    %395 = arith.addf %392, %394 : vector<1x128xf32>
    %396 = math.tanh %395 : vector<1x128xf32>
    %cst_121 = arith.constant 1.000000e+00 : f32
    %397 = vector.broadcast %cst_121 : f32 to vector<1x128xf32>
    %398 = arith.subf %397, %391 : vector<1x128xf32>
    %399 = arith.mulf %398, %396 : vector<1x128xf32>
    %400 = arith.mulf %391, %367 : vector<1x128xf32>
    %401 = arith.addf %399, %400 : vector<1x128xf32>
    %cst_122 = arith.constant dense<0.000000e+00> : vector<1x384xf32>
    %402 = tpu.matmul %164, %326, %cst_122 {dimension_numbers = #tpu.dot_dimension_numbers<[1], [0], [0], [1], [0, 0, 1, 1], [], []>} : vector<1x128xf32>, vector<128x384xf32>, vector<1x384xf32> -> vector<1x384xf32>
    %403 = arith.addf %402, %330 : vector<1x384xf32>
    %cst_123 = arith.constant dense<0.000000e+00> : vector<1x384xf32>
    %404 = tpu.matmul %401, %328, %cst_123 {dimension_numbers = #tpu.dot_dimension_numbers<[1], [0], [0], [1], [0, 0, 1, 1], [], []>} : vector<1x128xf32>, vector<128x384xf32>, vector<1x384xf32> -> vector<1x384xf32>
    %405 = arith.addf %404, %332 : vector<1x384xf32>
    %406 = vector.extract_strided_slice %403 {offsets = [0, 0], sizes = [1, 128], strides = [1, 1]} : vector<1x384xf32> to vector<1x128xf32>
    %407 = vector.extract_strided_slice %405 {offsets = [0, 0], sizes = [1, 128], strides = [1, 1]} : vector<1x384xf32> to vector<1x128xf32>
    %408 = arith.addf %406, %407 : vector<1x128xf32>
    %cst_124 = arith.constant 5.000000e-01 : f32
    %409 = vector.broadcast %cst_124 : f32 to vector<1x128xf32>
    %410 = arith.mulf %409, %408 : vector<1x128xf32>
    %411 = math.tanh %410 : vector<1x128xf32>
    %cst_125 = arith.constant 1.000000e+00 : f32
    %412 = vector.broadcast %cst_125 : f32 to vector<1x128xf32>
    %413 = arith.addf %411, %412 : vector<1x128xf32>
    %cst_126 = arith.constant 5.000000e-01 : f32
    %414 = vector.broadcast %cst_126 : f32 to vector<1x128xf32>
    %415 = arith.mulf %414, %413 : vector<1x128xf32>
    %416 = vector.extract_strided_slice %403 {offsets = [0, 128], sizes = [1, 128], strides = [1, 1]} : vector<1x384xf32> to vector<1x128xf32>
    %417 = vector.extract_strided_slice %405 {offsets = [0, 128], sizes = [1, 128], strides = [1, 1]} : vector<1x384xf32> to vector<1x128xf32>
    %418 = arith.addf %416, %417 : vector<1x128xf32>
    %cst_127 = arith.constant 5.000000e-01 : f32
    %419 = vector.broadcast %cst_127 : f32 to vector<1x128xf32>
    %420 = arith.mulf %419, %418 : vector<1x128xf32>
    %421 = math.tanh %420 : vector<1x128xf32>
    %cst_128 = arith.constant 1.000000e+00 : f32
    %422 = vector.broadcast %cst_128 : f32 to vector<1x128xf32>
    %423 = arith.addf %421, %422 : vector<1x128xf32>
    %cst_129 = arith.constant 5.000000e-01 : f32
    %424 = vector.broadcast %cst_129 : f32 to vector<1x128xf32>
    %425 = arith.mulf %424, %423 : vector<1x128xf32>
    %426 = vector.extract_strided_slice %403 {offsets = [0, 256], sizes = [1, 128], strides = [1, 1]} : vector<1x384xf32> to vector<1x128xf32>
    %427 = vector.extract_strided_slice %405 {offsets = [0, 256], sizes = [1, 128], strides = [1, 1]} : vector<1x384xf32> to vector<1x128xf32>
    %428 = arith.mulf %415, %427 : vector<1x128xf32>
    %429 = arith.addf %426, %428 : vector<1x128xf32>
    %430 = math.tanh %429 : vector<1x128xf32>
    %cst_130 = arith.constant 1.000000e+00 : f32
    %431 = vector.broadcast %cst_130 : f32 to vector<1x128xf32>
    %432 = arith.subf %431, %425 : vector<1x128xf32>
    %433 = arith.mulf %432, %430 : vector<1x128xf32>
    %434 = arith.mulf %425, %401 : vector<1x128xf32>
    %435 = arith.addf %433, %434 : vector<1x128xf32>
    %cst_131 = arith.constant dense<0.000000e+00> : vector<1x384xf32>
    %436 = tpu.matmul %196, %326, %cst_131 {dimension_numbers = #tpu.dot_dimension_numbers<[1], [0], [0], [1], [0, 0, 1, 1], [], []>} : vector<1x128xf32>, vector<128x384xf32>, vector<1x384xf32> -> vector<1x384xf32>
    %437 = arith.addf %436, %330 : vector<1x384xf32>
    %cst_132 = arith.constant dense<0.000000e+00> : vector<1x384xf32>
    %438 = tpu.matmul %435, %328, %cst_132 {dimension_numbers = #tpu.dot_dimension_numbers<[1], [0], [0], [1], [0, 0, 1, 1], [], []>} : vector<1x128xf32>, vector<128x384xf32>, vector<1x384xf32> -> vector<1x384xf32>
    %439 = arith.addf %438, %332 : vector<1x384xf32>
    %440 = vector.extract_strided_slice %437 {offsets = [0, 0], sizes = [1, 128], strides = [1, 1]} : vector<1x384xf32> to vector<1x128xf32>
    %441 = vector.extract_strided_slice %439 {offsets = [0, 0], sizes = [1, 128], strides = [1, 1]} : vector<1x384xf32> to vector<1x128xf32>
    %442 = arith.addf %440, %441 : vector<1x128xf32>
    %cst_133 = arith.constant 5.000000e-01 : f32
    %443 = vector.broadcast %cst_133 : f32 to vector<1x128xf32>
    %444 = arith.mulf %443, %442 : vector<1x128xf32>
    %445 = math.tanh %444 : vector<1x128xf32>
    %cst_134 = arith.constant 1.000000e+00 : f32
    %446 = vector.broadcast %cst_134 : f32 to vector<1x128xf32>
    %447 = arith.addf %445, %446 : vector<1x128xf32>
    %cst_135 = arith.constant 5.000000e-01 : f32
    %448 = vector.broadcast %cst_135 : f32 to vector<1x128xf32>
    %449 = arith.mulf %448, %447 : vector<1x128xf32>
    %450 = vector.extract_strided_slice %437 {offsets = [0, 128], sizes = [1, 128], strides = [1, 1]} : vector<1x384xf32> to vector<1x128xf32>
    %451 = vector.extract_strided_slice %439 {offsets = [0, 128], sizes = [1, 128], strides = [1, 1]} : vector<1x384xf32> to vector<1x128xf32>
    %452 = arith.addf %450, %451 : vector<1x128xf32>
    %cst_136 = arith.constant 5.000000e-01 : f32
    %453 = vector.broadcast %cst_136 : f32 to vector<1x128xf32>
    %454 = arith.mulf %453, %452 : vector<1x128xf32>
    %455 = math.tanh %454 : vector<1x128xf32>
    %cst_137 = arith.constant 1.000000e+00 : f32
    %456 = vector.broadcast %cst_137 : f32 to vector<1x128xf32>
    %457 = arith.addf %455, %456 : vector<1x128xf32>
    %cst_138 = arith.constant 5.000000e-01 : f32
    %458 = vector.broadcast %cst_138 : f32 to vector<1x128xf32>
    %459 = arith.mulf %458, %457 : vector<1x128xf32>
    %460 = vector.extract_strided_slice %437 {offsets = [0, 256], sizes = [1, 128], strides = [1, 1]} : vector<1x384xf32> to vector<1x128xf32>
    %461 = vector.extract_strided_slice %439 {offsets = [0, 256], sizes = [1, 128], strides = [1, 1]} : vector<1x384xf32> to vector<1x128xf32>
    %462 = arith.mulf %449, %461 : vector<1x128xf32>
    %463 = arith.addf %460, %462 : vector<1x128xf32>
    %464 = math.tanh %463 : vector<1x128xf32>
    %cst_139 = arith.constant 1.000000e+00 : f32
    %465 = vector.broadcast %cst_139 : f32 to vector<1x128xf32>
    %466 = arith.subf %465, %459 : vector<1x128xf32>
    %467 = arith.mulf %466, %464 : vector<1x128xf32>
    %468 = arith.mulf %459, %435 : vector<1x128xf32>
    %469 = arith.addf %467, %468 : vector<1x128xf32>
    %cst_140 = arith.constant dense<0.000000e+00> : vector<1x384xf32>
    %470 = tpu.matmul %228, %326, %cst_140 {dimension_numbers = #tpu.dot_dimension_numbers<[1], [0], [0], [1], [0, 0, 1, 1], [], []>} : vector<1x128xf32>, vector<128x384xf32>, vector<1x384xf32> -> vector<1x384xf32>
    %471 = arith.addf %470, %330 : vector<1x384xf32>
    %cst_141 = arith.constant dense<0.000000e+00> : vector<1x384xf32>
    %472 = tpu.matmul %469, %328, %cst_141 {dimension_numbers = #tpu.dot_dimension_numbers<[1], [0], [0], [1], [0, 0, 1, 1], [], []>} : vector<1x128xf32>, vector<128x384xf32>, vector<1x384xf32> -> vector<1x384xf32>
    %473 = arith.addf %472, %332 : vector<1x384xf32>
    %474 = vector.extract_strided_slice %471 {offsets = [0, 0], sizes = [1, 128], strides = [1, 1]} : vector<1x384xf32> to vector<1x128xf32>
    %475 = vector.extract_strided_slice %473 {offsets = [0, 0], sizes = [1, 128], strides = [1, 1]} : vector<1x384xf32> to vector<1x128xf32>
    %476 = arith.addf %474, %475 : vector<1x128xf32>
    %cst_142 = arith.constant 5.000000e-01 : f32
    %477 = vector.broadcast %cst_142 : f32 to vector<1x128xf32>
    %478 = arith.mulf %477, %476 : vector<1x128xf32>
    %479 = math.tanh %478 : vector<1x128xf32>
    %cst_143 = arith.constant 1.000000e+00 : f32
    %480 = vector.broadcast %cst_143 : f32 to vector<1x128xf32>
    %481 = arith.addf %479, %480 : vector<1x128xf32>
    %cst_144 = arith.constant 5.000000e-01 : f32
    %482 = vector.broadcast %cst_144 : f32 to vector<1x128xf32>
    %483 = arith.mulf %482, %481 : vector<1x128xf32>
    %484 = vector.extract_strided_slice %471 {offsets = [0, 128], sizes = [1, 128], strides = [1, 1]} : vector<1x384xf32> to vector<1x128xf32>
    %485 = vector.extract_strided_slice %473 {offsets = [0, 128], sizes = [1, 128], strides = [1, 1]} : vector<1x384xf32> to vector<1x128xf32>
    %486 = arith.addf %484, %485 : vector<1x128xf32>
    %cst_145 = arith.constant 5.000000e-01 : f32
    %487 = vector.broadcast %cst_145 : f32 to vector<1x128xf32>
    %488 = arith.mulf %487, %486 : vector<1x128xf32>
    %489 = math.tanh %488 : vector<1x128xf32>
    %cst_146 = arith.constant 1.000000e+00 : f32
    %490 = vector.broadcast %cst_146 : f32 to vector<1x128xf32>
    %491 = arith.addf %489, %490 : vector<1x128xf32>
    %cst_147 = arith.constant 5.000000e-01 : f32
    %492 = vector.broadcast %cst_147 : f32 to vector<1x128xf32>
    %493 = arith.mulf %492, %491 : vector<1x128xf32>
    %494 = vector.extract_strided_slice %471 {offsets = [0, 256], sizes = [1, 128], strides = [1, 1]} : vector<1x384xf32> to vector<1x128xf32>
    %495 = vector.extract_strided_slice %473 {offsets = [0, 256], sizes = [1, 128], strides = [1, 1]} : vector<1x384xf32> to vector<1x128xf32>
    %496 = arith.mulf %483, %495 : vector<1x128xf32>
    %497 = arith.addf %494, %496 : vector<1x128xf32>
    %498 = math.tanh %497 : vector<1x128xf32>
    %cst_148 = arith.constant 1.000000e+00 : f32
    %499 = vector.broadcast %cst_148 : f32 to vector<1x128xf32>
    %500 = arith.subf %499, %493 : vector<1x128xf32>
    %501 = arith.mulf %500, %498 : vector<1x128xf32>
    %502 = arith.mulf %493, %469 : vector<1x128xf32>
    %503 = arith.addf %501, %502 : vector<1x128xf32>
    %cst_149 = arith.constant dense<0.000000e+00> : vector<1x384xf32>
    %504 = tpu.matmul %260, %326, %cst_149 {dimension_numbers = #tpu.dot_dimension_numbers<[1], [0], [0], [1], [0, 0, 1, 1], [], []>} : vector<1x128xf32>, vector<128x384xf32>, vector<1x384xf32> -> vector<1x384xf32>
    %505 = arith.addf %504, %330 : vector<1x384xf32>
    %cst_150 = arith.constant dense<0.000000e+00> : vector<1x384xf32>
    %506 = tpu.matmul %503, %328, %cst_150 {dimension_numbers = #tpu.dot_dimension_numbers<[1], [0], [0], [1], [0, 0, 1, 1], [], []>} : vector<1x128xf32>, vector<128x384xf32>, vector<1x384xf32> -> vector<1x384xf32>
    %507 = arith.addf %506, %332 : vector<1x384xf32>
    %508 = vector.extract_strided_slice %505 {offsets = [0, 0], sizes = [1, 128], strides = [1, 1]} : vector<1x384xf32> to vector<1x128xf32>
    %509 = vector.extract_strided_slice %507 {offsets = [0, 0], sizes = [1, 128], strides = [1, 1]} : vector<1x384xf32> to vector<1x128xf32>
    %510 = arith.addf %508, %509 : vector<1x128xf32>
    %cst_151 = arith.constant 5.000000e-01 : f32
    %511 = vector.broadcast %cst_151 : f32 to vector<1x128xf32>
    %512 = arith.mulf %511, %510 : vector<1x128xf32>
    %513 = math.tanh %512 : vector<1x128xf32>
    %cst_152 = arith.constant 1.000000e+00 : f32
    %514 = vector.broadcast %cst_152 : f32 to vector<1x128xf32>
    %515 = arith.addf %513, %514 : vector<1x128xf32>
    %cst_153 = arith.constant 5.000000e-01 : f32
    %516 = vector.broadcast %cst_153 : f32 to vector<1x128xf32>
    %517 = arith.mulf %516, %515 : vector<1x128xf32>
    %518 = vector.extract_strided_slice %505 {offsets = [0, 128], sizes = [1, 128], strides = [1, 1]} : vector<1x384xf32> to vector<1x128xf32>
    %519 = vector.extract_strided_slice %507 {offsets = [0, 128], sizes = [1, 128], strides = [1, 1]} : vector<1x384xf32> to vector<1x128xf32>
    %520 = arith.addf %518, %519 : vector<1x128xf32>
    %cst_154 = arith.constant 5.000000e-01 : f32
    %521 = vector.broadcast %cst_154 : f32 to vector<1x128xf32>
    %522 = arith.mulf %521, %520 : vector<1x128xf32>
    %523 = math.tanh %522 : vector<1x128xf32>
    %cst_155 = arith.constant 1.000000e+00 : f32
    %524 = vector.broadcast %cst_155 : f32 to vector<1x128xf32>
    %525 = arith.addf %523, %524 : vector<1x128xf32>
    %cst_156 = arith.constant 5.000000e-01 : f32
    %526 = vector.broadcast %cst_156 : f32 to vector<1x128xf32>
    %527 = arith.mulf %526, %525 : vector<1x128xf32>
    %528 = vector.extract_strided_slice %505 {offsets = [0, 256], sizes = [1, 128], strides = [1, 1]} : vector<1x384xf32> to vector<1x128xf32>
    %529 = vector.extract_strided_slice %507 {offsets = [0, 256], sizes = [1, 128], strides = [1, 1]} : vector<1x384xf32> to vector<1x128xf32>
    %530 = arith.mulf %517, %529 : vector<1x128xf32>
    %531 = arith.addf %528, %530 : vector<1x128xf32>
    %532 = math.tanh %531 : vector<1x128xf32>
    %cst_157 = arith.constant 1.000000e+00 : f32
    %533 = vector.broadcast %cst_157 : f32 to vector<1x128xf32>
    %534 = arith.subf %533, %527 : vector<1x128xf32>
    %535 = arith.mulf %534, %532 : vector<1x128xf32>
    %536 = arith.mulf %527, %503 : vector<1x128xf32>
    %537 = arith.addf %535, %536 : vector<1x128xf32>
    %cst_158 = arith.constant dense<0.000000e+00> : vector<1x384xf32>
    %538 = tpu.matmul %292, %326, %cst_158 {dimension_numbers = #tpu.dot_dimension_numbers<[1], [0], [0], [1], [0, 0, 1, 1], [], []>} : vector<1x128xf32>, vector<128x384xf32>, vector<1x384xf32> -> vector<1x384xf32>
    %539 = arith.addf %538, %330 : vector<1x384xf32>
    %cst_159 = arith.constant dense<0.000000e+00> : vector<1x384xf32>
    %540 = tpu.matmul %537, %328, %cst_159 {dimension_numbers = #tpu.dot_dimension_numbers<[1], [0], [0], [1], [0, 0, 1, 1], [], []>} : vector<1x128xf32>, vector<128x384xf32>, vector<1x384xf32> -> vector<1x384xf32>
    %541 = arith.addf %540, %332 : vector<1x384xf32>
    %542 = vector.extract_strided_slice %539 {offsets = [0, 0], sizes = [1, 128], strides = [1, 1]} : vector<1x384xf32> to vector<1x128xf32>
    %543 = vector.extract_strided_slice %541 {offsets = [0, 0], sizes = [1, 128], strides = [1, 1]} : vector<1x384xf32> to vector<1x128xf32>
    %544 = arith.addf %542, %543 : vector<1x128xf32>
    %cst_160 = arith.constant 5.000000e-01 : f32
    %545 = vector.broadcast %cst_160 : f32 to vector<1x128xf32>
    %546 = arith.mulf %545, %544 : vector<1x128xf32>
    %547 = math.tanh %546 : vector<1x128xf32>
    %cst_161 = arith.constant 1.000000e+00 : f32
    %548 = vector.broadcast %cst_161 : f32 to vector<1x128xf32>
    %549 = arith.addf %547, %548 : vector<1x128xf32>
    %cst_162 = arith.constant 5.000000e-01 : f32
    %550 = vector.broadcast %cst_162 : f32 to vector<1x128xf32>
    %551 = arith.mulf %550, %549 : vector<1x128xf32>
    %552 = vector.extract_strided_slice %539 {offsets = [0, 128], sizes = [1, 128], strides = [1, 1]} : vector<1x384xf32> to vector<1x128xf32>
    %553 = vector.extract_strided_slice %541 {offsets = [0, 128], sizes = [1, 128], strides = [1, 1]} : vector<1x384xf32> to vector<1x128xf32>
    %554 = arith.addf %552, %553 : vector<1x128xf32>
    %cst_163 = arith.constant 5.000000e-01 : f32
    %555 = vector.broadcast %cst_163 : f32 to vector<1x128xf32>
    %556 = arith.mulf %555, %554 : vector<1x128xf32>
    %557 = math.tanh %556 : vector<1x128xf32>
    %cst_164 = arith.constant 1.000000e+00 : f32
    %558 = vector.broadcast %cst_164 : f32 to vector<1x128xf32>
    %559 = arith.addf %557, %558 : vector<1x128xf32>
    %cst_165 = arith.constant 5.000000e-01 : f32
    %560 = vector.broadcast %cst_165 : f32 to vector<1x128xf32>
    %561 = arith.mulf %560, %559 : vector<1x128xf32>
    %562 = vector.extract_strided_slice %539 {offsets = [0, 256], sizes = [1, 128], strides = [1, 1]} : vector<1x384xf32> to vector<1x128xf32>
    %563 = vector.extract_strided_slice %541 {offsets = [0, 256], sizes = [1, 128], strides = [1, 1]} : vector<1x384xf32> to vector<1x128xf32>
    %564 = arith.mulf %551, %563 : vector<1x128xf32>
    %565 = arith.addf %562, %564 : vector<1x128xf32>
    %566 = math.tanh %565 : vector<1x128xf32>
    %cst_166 = arith.constant 1.000000e+00 : f32
    %567 = vector.broadcast %cst_166 : f32 to vector<1x128xf32>
    %568 = arith.subf %567, %561 : vector<1x128xf32>
    %569 = arith.mulf %568, %566 : vector<1x128xf32>
    %570 = arith.mulf %561, %537 : vector<1x128xf32>
    %571 = arith.addf %569, %570 : vector<1x128xf32>
    %cst_167 = arith.constant dense<0.000000e+00> : vector<1x384xf32>
    %572 = tpu.matmul %324, %326, %cst_167 {dimension_numbers = #tpu.dot_dimension_numbers<[1], [0], [0], [1], [0, 0, 1, 1], [], []>} : vector<1x128xf32>, vector<128x384xf32>, vector<1x384xf32> -> vector<1x384xf32>
    %573 = arith.addf %572, %330 : vector<1x384xf32>
    %cst_168 = arith.constant dense<0.000000e+00> : vector<1x384xf32>
    %574 = tpu.matmul %571, %328, %cst_168 {dimension_numbers = #tpu.dot_dimension_numbers<[1], [0], [0], [1], [0, 0, 1, 1], [], []>} : vector<1x128xf32>, vector<128x384xf32>, vector<1x384xf32> -> vector<1x384xf32>
    %575 = arith.addf %574, %332 : vector<1x384xf32>
    %576 = vector.extract_strided_slice %573 {offsets = [0, 0], sizes = [1, 128], strides = [1, 1]} : vector<1x384xf32> to vector<1x128xf32>
    %577 = vector.extract_strided_slice %575 {offsets = [0, 0], sizes = [1, 128], strides = [1, 1]} : vector<1x384xf32> to vector<1x128xf32>
    %578 = arith.addf %576, %577 : vector<1x128xf32>
    %cst_169 = arith.constant 5.000000e-01 : f32
    %579 = vector.broadcast %cst_169 : f32 to vector<1x128xf32>
    %580 = arith.mulf %579, %578 : vector<1x128xf32>
    %581 = math.tanh %580 : vector<1x128xf32>
    %cst_170 = arith.constant 1.000000e+00 : f32
    %582 = vector.broadcast %cst_170 : f32 to vector<1x128xf32>
    %583 = arith.addf %581, %582 : vector<1x128xf32>
    %cst_171 = arith.constant 5.000000e-01 : f32
    %584 = vector.broadcast %cst_171 : f32 to vector<1x128xf32>
    %585 = arith.mulf %584, %583 : vector<1x128xf32>
    %586 = vector.extract_strided_slice %573 {offsets = [0, 128], sizes = [1, 128], strides = [1, 1]} : vector<1x384xf32> to vector<1x128xf32>
    %587 = vector.extract_strided_slice %575 {offsets = [0, 128], sizes = [1, 128], strides = [1, 1]} : vector<1x384xf32> to vector<1x128xf32>
    %588 = arith.addf %586, %587 : vector<1x128xf32>
    %cst_172 = arith.constant 5.000000e-01 : f32
    %589 = vector.broadcast %cst_172 : f32 to vector<1x128xf32>
    %590 = arith.mulf %589, %588 : vector<1x128xf32>
    %591 = math.tanh %590 : vector<1x128xf32>
    %cst_173 = arith.constant 1.000000e+00 : f32
    %592 = vector.broadcast %cst_173 : f32 to vector<1x128xf32>
    %593 = arith.addf %591, %592 : vector<1x128xf32>
    %cst_174 = arith.constant 5.000000e-01 : f32
    %594 = vector.broadcast %cst_174 : f32 to vector<1x128xf32>
    %595 = arith.mulf %594, %593 : vector<1x128xf32>
    %596 = vector.extract_strided_slice %573 {offsets = [0, 256], sizes = [1, 128], strides = [1, 1]} : vector<1x384xf32> to vector<1x128xf32>
    %597 = vector.extract_strided_slice %575 {offsets = [0, 256], sizes = [1, 128], strides = [1, 1]} : vector<1x384xf32> to vector<1x128xf32>
    %598 = arith.mulf %585, %597 : vector<1x128xf32>
    %599 = arith.addf %596, %598 : vector<1x128xf32>
    %600 = math.tanh %599 : vector<1x128xf32>
    %cst_175 = arith.constant 1.000000e+00 : f32
    %601 = vector.broadcast %cst_175 : f32 to vector<1x128xf32>
    %602 = arith.subf %601, %595 : vector<1x128xf32>
    %603 = arith.mulf %602, %600 : vector<1x128xf32>
    %604 = arith.mulf %595, %571 : vector<1x128xf32>
    %605 = arith.addf %603, %604 : vector<1x128xf32>
    %606 = tpu.concatenate %367, %401, %435, %469, %503, %537, %571, %605 in 0 : vector<1x128xf32>, vector<1x128xf32>, vector<1x128xf32>, vector<1x128xf32>, vector<1x128xf32>, vector<1x128xf32>, vector<1x128xf32>, vector<1x128xf32> -> vector<8x128xf32>
    %c0_176 = arith.constant 0 : index
    %c0_177 = arith.constant 0 : index
    %607 = vector.load %arg5[%c0_176, %c0_177] : memref<128x2xf32, #tpu.memory_space<vmem>>, vector<128x2xf32>
    %cst_178 = arith.constant dense<0.000000e+00> : vector<8x2xf32>
    %608 = tpu.matmul %606, %607, %cst_178 {dimension_numbers = #tpu.dot_dimension_numbers<[1], [0], [0], [1], [0, 0, 1, 1], [], []>} : vector<8x128xf32>, vector<128x2xf32>, vector<8x2xf32> -> vector<8x2xf32>
    %c0_179 = arith.constant 0 : index
    %c0_180 = arith.constant 0 : index
    %609 = vector.load %arg6[%c0_179, %c0_180] : memref<1x2xf32, #tpu.memory_space<vmem>>, vector<1x2xf32>
    %610 = vector.broadcast %609 : vector<1x2xf32> to vector<8x2xf32>
    %611 = arith.addf %608, %610 : vector<8x2xf32>
    %cst_181 = arith.constant dense<0.000000e+00> : vector<2xf32>
    %612 = vector.multi_reduction <add>, %611, %cst_181 [0] : vector<8x2xf32> to vector<2xf32>
    %613 = vector.shape_cast %612 : vector<2xf32> to vector<1x2xf32>
    %cst_182 = arith.constant 8.000000e+00 : f32
    %614 = vector.broadcast %cst_182 : f32 to vector<1x2xf32>
    %615 = arith.divf %613, %614 : vector<1x2xf32>
    %616 = vector.broadcast %615 : vector<1x2xf32> to vector<8x2xf32>
    %617 = arith.subf %611, %616 : vector<8x2xf32>
    %618 = arith.mulf %617, %617 : vector<8x2xf32>
    %cst_183 = arith.constant dense<0.000000e+00> : vector<2xf32>
    %619 = vector.multi_reduction <add>, %618, %cst_183 [0] : vector<8x2xf32> to vector<2xf32>
    %620 = vector.shape_cast %619 : vector<2xf32> to vector<1x2xf32>
    %cst_184 = arith.constant 8.000000e+00 : f32
    %621 = vector.broadcast %cst_184 : f32 to vector<1x2xf32>
    %622 = arith.divf %620, %621 : vector<1x2xf32>
    %623 = vector.broadcast %615 : vector<1x2xf32> to vector<8x2xf32>
    %624 = arith.subf %611, %623 : vector<8x2xf32>
    %cst_185 = arith.constant 9.99999974E-6 : f32
    %625 = vector.broadcast %cst_185 : f32 to vector<1x2xf32>
    %626 = arith.addf %622, %625 : vector<1x2xf32>
    %627 = math.rsqrt %626 : vector<1x2xf32>
    %628 = vector.broadcast %627 : vector<1x2xf32> to vector<8x2xf32>
    %629 = arith.mulf %624, %628 : vector<8x2xf32>
    %c0_186 = arith.constant 0 : index
    %c0_187 = arith.constant 0 : index
    %630 = vector.load %arg7[%c0_186, %c0_187] : memref<8x2xf32, #tpu.memory_space<vmem>>, vector<8x2xf32>
    tpu.vector_store %arg7[%c0_186, %c0_187], %629 {strides = array<i32>} : memref<8x2xf32, #tpu.memory_space<vmem>>, vector<8x2xf32>,
    return
  }
}

</mosaic_0001>

<bundles_post_ra>
// kernel: gru_forward.1
= control target key start
LH: loop header
LB: loop body
LE: loop exit
PB: predicated region body
PF: predicated region fallthrough
CT: control target
= control target key end

     0   :  { %12 = vsyncpa [#allocation3], 0  ;;  %s8687_s0 = inlined_call_operand.vmem [shape: f32[2,8,16], index: 0, kind: input, shape index: {}]   ;;  %s8688_s1 = inlined_call_operand.hbm [shape: f32[2,128,384], index: 1, kind: input, shape index: {}]   ;;  %s8689_s2 = inlined_call_operand.hbm [shape: f32[2,128,384], index: 2, kind: input, shape index: {}]   ;;  %s8690_s3 = inlined_call_operand.vmem [shape: f32[2,1,384], index: 3, kind: input, shape index: {}]   ;;  %s8691_s4 = inlined_call_operand.vmem [shape: f32[2,1,384], index: 4, kind: input, shape index: {}]   ;;  %s8692_s5 = inlined_call_operand.vmem [shape: f32[128,2], index: 5, kind: input, shape index: {}]   ;;  %s8693_s6 = inlined_call_operand.vmem [shape: f32[1,2], index: 6, kind: input, shape index: {}]   ;;  %s8694_s7 = inlined_call_operand.vmem [shape: f32[8,2], index: 7, kind: output, shape index: {}]  }
   0x1   :  { %13 = vsyncpa [#allocation5], 0  ;;  %s6151_s24 = smov [#allocation2]  }
   0x2   :  { %s21_s25 = sshll.u32 %s6151_s24, 4  ;;  %s22_s25 = int_to_ptr.vmem [resolvable:$true] %s21_s25 }
   0x3   :  { %s6115_s26 = scalar_lea.vmem %s22_s25, 12288  ;;  %p6120_p1 = scmp.lt.s32.totalorder %s22_s25, %s22_s25 }
   0x4   :  { %p6116_p0 = scmp.ne.s32.totalorder %s22_s25, %s6115_s26  ;;  %p6121_p2 = scmp.lt.s32.totalorder %s6115_s26, %s6115_s26 }
   0x6   :  { %p6122_p3 = por %p6121_p2, %p6120_p1 }
   0x8   :  { %p6123_p4 = pnand %p6122_p3, %p6116_p0 }
   0xa   :  { %6126 = shalt.err (!%p6123_p4)
}
   0xb   :  { %s6152_s27 = smov 384   ;;  %s6153_s28 = smov 24  }
   0xc   :  { %27 = dma.hbm_to_vmem [thread:$0]  %s8688_s1, 12288, %s22_s25, [#allocation3], %s6152_s27, %s6152_s27, %s6153_s28  }
   0xd   :  { %s6154_s8 = smov [#allocation4]  }
   0xe   :  { %s33_s9 = sshll.u32 %s6154_s8, 4  ;;  %s34_s9 = int_to_ptr.vmem [resolvable:$true] %s33_s9 }
   0xf   :  { %s6135_s10 = scalar_lea.vmem %s34_s9, 12288  ;;  %p6140_p6 = scmp.lt.s32.totalorder %s34_s9, %s34_s9 }
  0x10   :  { %p6136_p5 = scmp.ne.s32.totalorder %s34_s9, %s6135_s10  ;;  %p6141_p7 = scmp.lt.s32.totalorder %s6135_s10, %s6135_s10 }
  0x12   :  { %p6142_p8 = por %p6141_p7, %p6140_p6 }
  0x14   :  { %p6143_p9 = pnand %p6142_p8, %p6136_p5 }
  0x16   :  { %6146 = shalt.err (!%p6143_p9)
}
  0x17   :  { %39 = dma.hbm_to_vmem [thread:$0]  %s8689_s2, 12288, %s34_s9, [#allocation5], %s6152_s27, %s6152_s27, %s6153_s28  }
  0x18   :  { %6147 = dma.done.wait [#allocation3], 12288  }
  0x19   :  { %6148 = vsyncadd [#allocation3], 4294955008 }
  0x1a   :  { %6149 = dma.done.wait [#allocation5], 12288  }
  0x1b   :  { %6150 = vsyncadd [#allocation5], 4294955008  ;;  %vm57_vm0 = vcmask 130048   ;;  %v54_v0 = vld [vmem:[%s8687_s0] sm:$0xff]  ;;  %v4424_v2 = vld [vmem:[%s8687_s0 + $0x8] sm:$0xff]  ;;  %s6156_s26 = smov 16  }
  0x1c   :  { %v58_v1 = vsel %vm57_vm0, %v54_v0, 0.0  ;;  %v93_v3 = vsel %vm57_vm0, %v4424_v2, 0.0  ;;  %v6224_v42 = vld [vmem:[#allocation4 + $0x170] sm:$0xff]  ;;  %v6226_v43 = vld [vmem:[#allocation4 + $0x168] sm:$0xff]  ;;  %v6228_v44 = vld [vmem:[#allocation4 + $0x158] sm:$0xff]  ;;  %vm216_vm1 = vcmask 261120  }
  0x1d   :  { %59 = vadd.xlane.f32.xlu0 %v58_v1  ;;  %94 = vadd.xlane.f32.xlu1 %v93_v3  ;;  %8967 = vst [vmem:[#allocation8_spill] sm:$0xff] %v6224_v42  ;;  %v6231_v45 = vld [vmem:[#allocation4 + $0x150] sm:$0xff]  ;;  %v6234_v46 = vld [vmem:[#allocation4 + $0x140] sm:$0xff]  ;;  %v6237_v47 = vld [vmem:[#allocation4 + $0x138] sm:$0xff]  ;;  %vm6157_vm2 = vmmov 0   ;;  %vm4287_vm3 = vcmask 1040384  }
  0x1e   :  { %377 = vmatprep.subr.mxu0 %v6224_v42  ;;  %v6240_v48 = vld [vmem:[#allocation4 + $0x128] sm:$0xff]  ;;  %v6243_v49 = vld [vmem:[#allocation4 + $0x120] sm:$0xff]  ;;  %v6246_v50 = vld [vmem:[#allocation4 + $0x110] sm:$0xff]  ;;  %vm4289_vm4 = vcmask 1041408   ;;  %vm4291_vm5 = vcmask 1042432   ;;  %vm4293_vm6 = vcmask 1043456  }
  0x1f   :  { %378 = vmatpush1.msra.mxu0 %v6226_v43  ;;  %v6249_v51 = vld [vmem:[#allocation4 + $0x108] sm:$0xff]  ;;  %v148_v52 = vld [vmem:[#allocation2 + $0x50] sm:$0xff]  ;;  %v6252_v53 = vld [vmem:[#allocation4 + $0xf8] sm:$0xff]  ;;  %vm4295_vm7 = vcmask 1044480   ;;  %vm4297_vm8 = vcmask 1045504   ;;  %vm4299_vm9 = vcmask 1046528  }
  0x20   :  { %379 = vmatprep.subr.mxu0 %v6228_v44  ;;  %244 = vmatprep.subr.mxu1 %v148_v52  ;;  %v147_v54 = vld [vmem:[#allocation2 + $0x48] sm:$0xff]  ;;  %v6255_v55 = vld [vmem:[#allocation4 + $0xf0] sm:$0xff]  ;;  %v145_v56 = vld [vmem:[#allocation2 + $0x38] sm:$0xff]  ;;  %vm4394_vm10 = vcmask 15360  }
  0x21   :  { %380 = vmatpush1.msra.mxu0 %v6231_v45  ;;  %245 = vmatpush1.msra.mxu1 %v147_v54  ;;  %v144_v57 = vld [vmem:[#allocation2 + $0x30] sm:$0xff]  ;;  %v6258_v58 = vld [vmem:[#allocation4 + $0xe0] sm:$0xff]  ;;  %v6261_v60 = vld [vmem:[#allocation4 + $0xd8] sm:$0xff] }
  0x22   :  { %381 = vmatprep.subr.mxu0 %v6234_v46  ;;  %246 = vmatprep.subr.mxu1 %v145_v56  ;;  %v142_v59 = vld [vmem:[#allocation2 + $0x20] sm:$0xff]  ;;  %v141_v61 = vld [vmem:[#allocation2 + $0x18] sm:$0xff]  ;;  %v139_v62 = vld [vmem:[#allocation2 + $0x8] sm:$0xff] }
  0x23   :  { %382 = vmatpush1.msra.mxu0 %v6237_v47  ;;  %247 = vmatpush1.msra.mxu1 %v144_v57  ;;  %v6264_v63 = vld [vmem:[#allocation4 + $0xc8] sm:$0xff]  ;;  %v6267_v1 = vld [vmem:[#allocation4 + $0xc0] sm:$0xff]  ;;  %v6398_v54 = vld [vmem:[#allocation4 + $0xd0] sm:$0xff] }
  0x24   :  { %383 = vmatprep.subr.mxu0 %v6240_v48  ;;  %248 = vmatprep.subr.mxu1 %v142_v59  ;;  %v6273_v3 = vld [vmem:[#allocation4 + $0xa8] sm:$0xff]  ;;  %v6402_v56 = vld [vmem:[#allocation4 + $0xb8] sm:$0xff]  ;;  %v6406_v57 = vld [vmem:[#allocation4 + $0xa0] sm:$0xff] }
  0x25   :  { %384 = vmatpush1.msra.mxu0 %v6243_v49  ;;  %249 = vmatpush1.msra.mxu1 %v141_v61  ;;  %v6394_v52 = vld [vmem:[#allocation4 + $0xe8] sm:$0xff]  ;;  %v6414_v61 = vld [vmem:[#allocation4 + $0x70] sm:$0xff] }
  0x26   :  { %385 = vmatprep.subr.mxu0 %v6246_v50  ;;  %250 = vmatprep.subr.mxu1 %v139_v62  ;;  %v6410_v59 = vld [vmem:[#allocation4 + $0x88] sm:$0xff]  ;;  %v6418_v62 = vld [vmem:[#allocation4 + $0x58] sm:$0xff] }
  0x27   :  { %386 = vmatpush1.msra.mxu0 %v6249_v51 }
  0x28   :  { %387 = vmatprep.subr.mxu0 %v6252_v53 }
  0x29   :  { %388 = vmatpush1.msra.mxu0 %v6255_v55 }
  0x2a   :  { %389 = vmatprep.subr.mxu0 %v6258_v58 }
  0x2b   :  { %390 = vmatpush1.msra.mxu0 %v6261_v60 }
  0x2c   :  { %391 = vmatprep.subr.mxu0 %v6264_v63 }
  0x2d   :  { %392 = vmatpush1.msra.mxu0 %v6267_v1 }
  0xa6   :  { %v60_v4 = vpop.xlane.xlu0 %59  ;;  %v95_v22 = vpop.xlane.xlu1 %94 }
  0xa7   :  { %v61_v5 = vrot.slane %v60_v4, 4  ;;  %v96_v23 = vrot.slane %v95_v22, 4 }
  0xa9   :  { %v62_v6 = vadd.f32 %v61_v5, %v60_v4  ;;  %v97_v24 = vadd.f32 %v96_v23, %v95_v22  ;;  %v6276_v4 = vld [vmem:[#allocation4 + $0x98] sm:$0xff]  ;;  %v6279_v5 = vld [vmem:[#allocation4 + $0x90] sm:$0xff]  ;;  %v8695_v22 = vmov 0.0  }
  0xaa   :  { %284 = vmatprep.mubr.f32.mxu1 %v8695_v22  ;;  %441 = vmatprep.mubr.f32.mxu0 %v8695_v22 }
  0xab   :  { %v63_v7 = vrot.slane %v62_v6, 2  ;;  %v98_v26 = vrot.slane %v97_v24, 2 }
  0xad   :  { %v64_v8 = vadd.f32 %v63_v7, %v62_v6  ;;  %v99_v27 = vadd.f32 %v98_v26, %v97_v24  ;;  %v6282_v6 = vld [vmem:[#allocation4 + $0x80] sm:$0xff]  ;;  %v6285_v7 = vld [vmem:[#allocation4 + $0x78] sm:$0xff] }
  0xaf   :  { %v65_v9 = vrot.slane %v64_v8, 1  ;;  %v100_v28 = vrot.slane %v99_v27, 1 }
  0xb1   :  { %v66_v10 = vadd.f32 %v65_v9, %v64_v8  ;;  %v101_v30 = vadd.f32 %v100_v28, %v99_v27  ;;  %v6288_v8 = vld [vmem:[#allocation4 + $0x68] sm:$0xff]  ;;  %v6291_v9 = vld [vmem:[#allocation4 + $0x60] sm:$0xff] }
  0xb3   :  { %5746 = vpush %v66_v10  ;;  %v6294_v10 = vld [vmem:[#allocation4 + $0x50] sm:$0xff] }
  0xe4   :  { %s5747_s2 = spop %5746 }
  0xe5   :  { %s70_s16 = smul.f32 0.0078125, %s5747_s2 }
  0xe7   :  { %v71_v11 = vstv %s70_s16 }
  0xe8   :  { %v6212_v12 = vsub.f32 %v54_v0, %v71_v11  ;;  %v138_v0 = vld [vmem:[#allocation2] sm:$0xff]  ;;  %v6297_v11 = vld [vmem:[#allocation4 + $0x48] sm:$0xff] }
  0xe9   :  { %251 = vmatpush1.msra.mxu1 %v138_v0  ;;  %v6422_v0 = vld [vmem:[#allocation4 + $0x40] sm:$0xff] }
  0xea   :  { %v73_v13 = vmul.f32 %v6212_v12, %v6212_v12  ;;  %4860 = vmatprep.subr.mxu1 %v8695_v22  ;;  %8972 = vst [vmem:[#allocation13_spill] sm:$0xff] %v6422_v0 }
  0xec   :  { %v74_v14 = vsel %vm57_vm0, %v73_v13, 0.0  ;;  %v6300_v13 = vld [vmem:[#allocation4 + $0x38] sm:$0xff] }
  0xed   :  { %75 = vadd.xlane.f32.xlu0 %v74_v14  ;;  %v6303_v14 = vld [vmem:[#allocation4 + $0x30] sm:$0xff] }
 0x176   :  { %v76_v15 = vpop.xlane.xlu0 %75 }
 0x177   :  { %v77_v16 = vrot.slane %v76_v15, 4 }
 0x179   :  { %v78_v17 = vadd.f32 %v77_v16, %v76_v15  ;;  %v6306_v15 = vld [vmem:[#allocation4 + $0x20] sm:$0xff]  ;;  %v6309_v16 = vld [vmem:[#allocation4 + $0x18] sm:$0xff] }
 0x17a   :  { %8968 = vst [vmem:[#allocation9_spill] sm:$0xff] %v6306_v15  ;;  %8969 = vst [vmem:[#allocation10_spill] sm:$0xff] %v6309_v16 }
 0x17b   :  { %v79_v18 = vrot.slane %v78_v17, 2 }
 0x17d   :  { %v80_v19 = vadd.f32 %v79_v18, %v78_v17  ;;  %v6312_v17 = vld [vmem:[#allocation4 + $0x8] sm:$0xff] }
 0x17e   :  { %8970 = vst [vmem:[#allocation11_spill] sm:$0xff] %v6312_v17 }
 0x17f   :  { %v81_v20 = vrot.slane %v80_v19, 1 }
 0x181   :  { %v82_v21 = vadd.f32 %v81_v20, %v80_v19  ;;  %v6317_v20 = vld [vmem:[#allocation4] sm:$0xff] }
 0x182   :  { %8971 = vst [vmem:[#allocation12_spill] sm:$0xff] %v6317_v20 }
 0x183   :  { %5748 = vpush %v82_v21 }
 0x1b4   :  { %s5749_s0 = spop %5748 }
 0x1b5   :  { %s86_s17 = smul.f32 0.0078125, %s5749_s0 }
 0x1b7   :  { %s87_s18 = sadd.f32 1e-05, %s86_s17 }
 0x1b9   :  { %v88_v25 = vstv %s87_s18 }
 0x1ba   :  { %5765 = vrsqrt.f32 %v88_v25 }
 0x1c7   :  { %v5766_v29 = vpop.eup %5765 }
 0x1c8   :  { %5750 = vpush %v5766_v29 }
 0x1c9   :  { %5752 = vpush %v101_v30 }
 0x1f9   :  { %s6217_s19 = spop %5750 }
 0x1fa   :  { %s5753_s20 = spop %5752  ;;  %v91_v21 = vstv %s6217_s19 }
 0x1fb   :  { %s105_s21 = smul.f32 0.0078125, %s5753_s20  ;;  %v92_v23 = vmul.f32 %v91_v21, %v6212_v12  ;;  %v201_v21 = vlaneseq }
 0x1fd   :  { %v106_v31 = vstv %s105_s21  ;;  %v128_v26 = vmul.f32 %v92_v23, %v92_v23 }
 0x1fe   :  { %v6219_v32 = vsub.f32 %v4424_v2, %v106_v31  ;;  %v6270_v2 = vld [vmem:[#allocation4 + $0xb0] sm:$0xff]  ;;  %v149_v31 = vld [vmem:[#allocation2 + $0x58] sm:$0xff] }
 0x1ff   :  { %393 = vmatprep.subr.mxu0 %v6270_v2 }
 0x200   :  { %v108_v33 = vmul.f32 %v6219_v32, %v6219_v32  ;;  %394 = vmatpush1.msra.mxu0 %v6273_v3 }
 0x201   :  { %395 = vmatprep.subr.mxu0 %v6276_v4 }
 0x202   :  { %v109_v34 = vsel %vm57_vm0, %v108_v33, 0.0  ;;  %396 = vmatpush1.msra.mxu0 %v6279_v5  ;;  %v146_v33 = vld [vmem:[#allocation2 + $0x40] sm:$0xff] }
 0x203   :  { %110 = vadd.xlane.f32.xlu1 %v109_v34  ;;  %397 = vmatprep.subr.mxu0 %v6282_v6  ;;  %v143_v34 = vld [vmem:[#allocation2 + $0x28] sm:$0xff] }
 0x204   :  { %398 = vmatpush1.msra.mxu0 %v6285_v7 }
 0x205   :  { %399 = vmatprep.subr.mxu0 %v6288_v8 }
 0x206   :  { %400 = vmatpush1.msra.mxu0 %v6291_v9 }
 0x207   :  { %401 = vmatprep.subr.mxu0 %v6294_v10 }
 0x208   :  { %402 = vmatpush1.msra.mxu0 %v6297_v11 }
 0x209   :  { %403 = vmatprep.subr.mxu0 %v6300_v13 }
 0x20a   :  { %404 = vmatpush1.msra.mxu0 %v6303_v14 }
 0x20b   :  { %405 = vmatprep.subr.mxu0 %v6306_v15 }
 0x20c   :  { %406 = vmatpush1.msra.mxu0 %v6309_v16 }
 0x20d   :  { %407 = vmatprep.subr.mxu0 %v6312_v17 }
 0x20e   :  { %408 = vmatpush1.msra.mxu0 %v6317_v20 }
 0x20f   :  { %442 = vmatmul.mubr.f32.vlgmr.msra.gmra.mxu0 %v8695_v22  ;;  %535 = vmatprep.subr.mxu0 %v6224_v42 }
 0x210   :  { %536 = vmatpush1.msra.mxu0 %v6226_v43  ;;  %599 = vmatprep.mubr.f32.mxu0 %v8695_v22 }
 0x211   :  { %537 = vmatprep.subr.mxu0 %v6228_v44 }
 0x212   :  { %538 = vmatpush1.msra.mxu0 %v6231_v45 }
 0x213   :  { %539 = vmatprep.subr.mxu0 %v6234_v46 }
 0x214   :  { %540 = vmatpush1.msra.mxu0 %v6237_v47 }
 0x215   :  { %541 = vmatprep.subr.mxu0 %v6240_v48 }
 0x216   :  { %542 = vmatpush1.msra.mxu0 %v6243_v49 }
 0x217   :  { %543 = vmatprep.subr.mxu0 %v6246_v50 }
 0x218   :  { %544 = vmatpush1.msra.mxu0 %v6249_v51 }
 0x219   :  { %545 = vmatprep.subr.mxu0 %v6252_v53 }
 0x21a   :  { %546 = vmatpush1.msra.mxu0 %v6255_v55 }
 0x21b   :  { %547 = vmatprep.subr.mxu0 %v6258_v58 }
 0x21c   :  { %548 = vmatpush1.msra.mxu0 %v6261_v60 }
 0x21d   :  { %549 = vmatprep.subr.mxu0 %v6264_v63 }
 0x21e   :  { %550 = vmatpush1.msra.mxu0 %v6267_v1 }
 0x21f   :  { %551 = vmatprep.subr.mxu0 %v6270_v2 }
 0x220   :  { %552 = vmatpush1.msra.mxu0 %v6273_v3 }
 0x221   :  { %553 = vmatprep.subr.mxu0 %v6276_v4 }
 0x222   :  { %554 = vmatpush1.msra.mxu0 %v6279_v5 }
 0x223   :  { %555 = vmatprep.subr.mxu0 %v6282_v6 }
 0x224   :  { %556 = vmatpush1.msra.mxu0 %v6285_v7 }
 0x225   :  { %557 = vmatprep.subr.mxu0 %v6288_v8 }
 0x226   :  { %558 = vmatpush1.msra.mxu0 %v6291_v9 }
 0x227   :  { %559 = vmatprep.subr.mxu0 %v6294_v10 }
 0x228   :  { %560 = vmatpush1.msra.mxu0 %v6297_v11 }
 0x229   :  { %561 = vmatprep.subr.mxu0 %v6300_v13 }
 0x22a   :  { %562 = vmatpush1.msra.mxu0 %v6303_v14 }
 0x22b   :  { %563 = vmatprep.subr.mxu0 %v6306_v15 }
 0x22c   :  { %564 = vmatpush1.msra.mxu0 %v6309_v16 }
 0x22d   :  { %565 = vmatprep.subr.mxu0 %v6312_v17 }
 0x22e   :  { %566 = vmatpush1.msra.mxu0 %v6317_v20 }
 0x22f   :  { %708 = vmatprep.subr.mxu0 %v6224_v42 }
 0x28c   :  { %v111_v35 = vpop.xlane.xlu1 %110 }
 0x28d   :  { %v112_v36 = vrot.slane %v111_v35, 4 }
 0x28f   :  { %v113_v37 = vadd.f32 %v112_v36, %v111_v35  ;;  %v140_v35 = vld [vmem:[#allocation2 + $0x10] sm:$0xff]  ;;  %v6368_v36 = vld [vmem:[#allocation4 + $0x178] sm:$0xff] }
 0x291   :  { %v114_v38 = vrot.slane %v113_v37, 2 }
 0x293   :  { %v115_v39 = vadd.f32 %v114_v38, %v113_v37  ;;  %v6372_v37 = vld [vmem:[#allocation4 + $0x160] sm:$0xff]  ;;  %v6378_v38 = vld [vmem:[#allocation4 + $0x148] sm:$0xff] }
 0x295   :  { %v116_v40 = vrot.slane %v115_v39, 1 }
 0x297   :  { %v117_v41 = vadd.f32 %v116_v40, %v115_v39  ;;  %v6382_v39 = vld [vmem:[#allocation4 + $0x130] sm:$0xff]  ;;  %v6386_v40 = vld [vmem:[#allocation4 + $0x118] sm:$0xff] }
 0x299   :  { %5754 = vpush %v117_v41  ;;  %v6390_v41 = vld [vmem:[#allocation4 + $0x100] sm:$0xff] }
 0x2ca   :  { %s5755_s22 = spop %5754 }
 0x2cb   :  { %s121_s23 = smul.f32 0.0078125, %s5755_s22 }
 0x2cd   :  { %s122_s24 = sadd.f32 1e-05, %s121_s23 }
 0x2cf   :  { %v123_v18 = vstv %s122_s24 }
 0x2d0   :  { %5767 = vrsqrt.f32 %v123_v18  ;;  %v6426_v18 = vld [vmem:[#allocation4 + $0x28] sm:$0xff] }
 0x2d1   :  { %8973 = vst [vmem:[#allocation14_spill] sm:$0xff] %v6426_v18 }
 0x2dd   :  { %v5768_v19 = vpop.eup %5767 }
 0x2de   :  { %5756 = vpush %v5768_v19  ;;  %v6430_v19 = vld [vmem:[#allocation4 + $0x10] sm:$0xff] }
 0x2df   :  { %8974 = vst [vmem:[#allocation15_spill] sm:$0xff] %v6430_v19 }
 0x30f   :  { %s5757_s25 = spop %5756 }
 0x310   :  { %v126_v24 = vstv %s5757_s25 }
 0x311   :  { %v127_v25 = vmul.f32 %v126_v24, %v6219_v32 }
 0x313   :  { %v129_v27 = vmul.f32 %v127_v25, %v127_v25 }
 0x315   :  { %v130_v12 = vadd.f32 %v129_v27, %v128_v26  ;;  %v199_v26 = vld [vmem:[%s8691_s4] sm:$0x7] }
 0x317   :  { %v132_v28 = vmul.f32 %v130_v12, %v127_v25  ;;  %v131_v29 = vmul.f32 %v130_v12, %v92_v23  ;;  %v202_v23 = vshrl.u32 %v201_v21, 7  ;;  %v198_v25 = vld [vmem:[%s8690_s3] sm:$0x7] }
 0x319   :  { %134 = vrot.lane.b32.xlu0 %v132_v28, %s6156_s26  ;;  %v6471_v24 = vsub.s32 0, %v202_v23  ;;  %v6487_v21 = vsub.s32 1, %v202_v23 }
 0x31b   :  { %8975 = vst [vmem:[#allocation16_spill] sm:$0xff] %v6471_v24  ;;  %v204_v12 = vrot.slane %v198_v25, %v6471_v24  ;;  %v6481_v28 = vrot.slane %v199_v26, %v6471_v24  ;;  %8978 = vst [vmem:[#allocation19_spill] sm:$0xff] %v6487_v21  ;;  %v208_v42 = vrot.slane %v198_v25, %v6487_v21 }
 0x31d   :  { %8976 = vst [vmem:[#allocation17_spill] sm:$0xff] %v6481_v28 }
 0x38b   :  { %v135_v30 = vpop.permute.xlu0 %134 }
 0x38c   :  { %v137_v32 = vsel %vm57_vm0, %v131_v29, %v135_v30  ;;  %v443_v29 = vpop.f32.mrf.mxu0 }
 0x38d   :  { %4425 = vmatmul.mubr.msk.f32.vlgmr.msra.gmra.mxu1 %vm216_vm1, %v137_v32 }
 0x38e   :  { %4861 = vmatpush3.msra.mxu1 %v149_v31  ;;  %4868 = vmatprep.mubr.msk.f32.mxu1 %vm6157_vm2, %v8695_v22  ;;  %v445_v24 = vpop.f32.mrf.mxu0 }
 0x38f   :  { %4862 = vmatprep.subr.mxu1 %v8695_v22 }
 0x390   :  { %4863 = vmatpush3.msra.mxu1 %v146_v33  ;;  %v444_v33 = vadd.f32 %v443_v29, %v6481_v28 }
 0x391   :  { %4864 = vmatprep.subr.mxu1 %v8695_v22 }
 0x392   :  { %4865 = vmatpush3.msra.mxu1 %v143_v34 }
 0x393   :  { %4866 = vmatprep.subr.mxu1 %v8695_v22 }
 0x394   :  { %4867 = vmatpush3.msra.mxu1 %v140_v35 }
 0x395   :  { %4869 = vmatmul.mubr.msk.f32.vlgmr.msra.gmra.mxu1 %vm216_vm1, %v137_v32  ;;  %4871 = vmatprep.subr.mxu1 %v8695_v22 }
 0x396   :  { %4872 = vmatpush3.msra.mxu1 %v6368_v36  ;;  %4903 = vmatprep.mubr.msk.f32.mxu1 %vm6157_vm2, %v8695_v22 }
 0x397   :  { %4873 = vmatprep.subr.mxu1 %v8695_v22 }
 0x398   :  { %4874 = vmatpush3.msra.mxu1 %v6372_v37 }
 0x399   :  { %4875 = vmatprep.subr.mxu1 %v8695_v22 }
 0x39a   :  { %4876 = vmatpush3.msra.mxu1 %v6378_v38 }
 0x39b   :  { %4877 = vmatprep.subr.mxu1 %v8695_v22 }
 0x39c   :  { %4878 = vmatpush3.msra.mxu1 %v6382_v39 }
 0x39d   :  { %4879 = vmatprep.subr.mxu1 %v8695_v22 }
 0x39e   :  { %4880 = vmatpush3.msra.mxu1 %v6386_v40 }
 0x39f   :  { %4881 = vmatprep.subr.mxu1 %v8695_v22 }
 0x3a0   :  { %4882 = vmatpush3.msra.mxu1 %v6390_v41 }
 0x3a1   :  { %4883 = vmatprep.subr.mxu1 %v8695_v22 }
 0x3a2   :  { %4884 = vmatpush3.msra.mxu1 %v6394_v52 }
 0x3a3   :  { %4885 = vmatprep.subr.mxu1 %v8695_v22 }
 0x3a4   :  { %4886 = vmatpush3.msra.mxu1 %v6398_v54 }
 0x3a5   :  { %4887 = vmatprep.subr.mxu1 %v8695_v22 }
 0x3a6   :  { %4888 = vmatpush3.msra.mxu1 %v6402_v56 }
 0x3a7   :  { %4889 = vmatprep.subr.mxu1 %v8695_v22 }
 0x3a8   :  { %4890 = vmatpush3.msra.mxu1 %v6406_v57 }
 0x3a9   :  { %4891 = vmatprep.subr.mxu1 %v8695_v22 }
 0x3aa   :  { %4892 = vmatpush3.msra.mxu1 %v6410_v59 }
 0x3ab   :  { %4893 = vmatprep.subr.mxu1 %v8695_v22 }
 0x3ac   :  { %4894 = vmatpush3.msra.mxu1 %v6414_v61 }
 0x3ad   :  { %4895 = vmatprep.subr.mxu1 %v8695_v22 }
 0x3ae   :  { %4896 = vmatpush3.msra.mxu1 %v6418_v62 }
 0x3af   :  { %4897 = vmatprep.subr.mxu1 %v8695_v22 }
 0x3b0   :  { %4898 = vmatpush3.msra.mxu1 %v6422_v0 }
 0x3b1   :  { %4899 = vmatprep.subr.mxu1 %v8695_v22 }
 0x3b2   :  { %4900 = vmatpush3.msra.mxu1 %v6426_v18 }
 0x3b3   :  { %4901 = vmatprep.subr.mxu1 %v8695_v22 }
 0x3b4   :  { %4902 = vmatpush3.msra.mxu1 %v6430_v19 }
 0x3b5   :  { %4904 = vmatmul.mubr.f32.vlgmr.msra.gmra.mxu1 %v8695_v22  ;;  %4906 = vmatprep.subr.mxu1 %v8695_v22 }
 0x3b6   :  { %4907 = vmatpush3.msra.mxu1 %v6368_v36  ;;  %4938 = vmatprep.mubr.msk.f32.mxu1 %vm6157_vm2, %v8695_v22 }
 0x3b7   :  { %4908 = vmatprep.subr.mxu1 %v8695_v22 }
 0x3b8   :  { %4909 = vmatpush3.msra.mxu1 %v6372_v37 }
 0x3b9   :  { %4910 = vmatprep.subr.mxu1 %v8695_v22 }
 0x3ba   :  { %4911 = vmatpush3.msra.mxu1 %v6378_v38 }
 0x3bb   :  { %4912 = vmatprep.subr.mxu1 %v8695_v22 }
 0x3bc   :  { %4913 = vmatpush3.msra.mxu1 %v6382_v39 }
 0x3bd   :  { %4914 = vmatprep.subr.mxu1 %v8695_v22 }
 0x3be   :  { %4915 = vmatpush3.msra.mxu1 %v6386_v40 }
 0x3bf   :  { %4916 = vmatprep.subr.mxu1 %v8695_v22 }
 0x3c0   :  { %4917 = vmatpush3.msra.mxu1 %v6390_v41 }
 0x3c1   :  { %4918 = vmatprep.subr.mxu1 %v8695_v22 }
 0x3c2   :  { %4919 = vmatpush3.msra.mxu1 %v6394_v52 }
 0x3c3   :  { %4920 = vmatprep.subr.mxu1 %v8695_v22 }
 0x3c4   :  { %4921 = vmatpush3.msra.mxu1 %v6398_v54 }
 0x3c5   :  { %4922 = vmatprep.subr.mxu1 %v8695_v22 }
 0x3c6   :  { %4923 = vmatpush3.msra.mxu1 %v6402_v56 }
 0x3c7   :  { %4924 = vmatprep.subr.mxu1 %v8695_v22 }
 0x3c8   :  { %4925 = vmatpush3.msra.mxu1 %v6406_v57 }
 0x3c9   :  { %4926 = vmatprep.subr.mxu1 %v8695_v22 }
 0x3ca   :  { %4927 = vmatpush3.msra.mxu1 %v6410_v59 }
 0x3cb   :  { %4928 = vmatprep.subr.mxu1 %v8695_v22 }
 0x3cc   :  { %4929 = vmatpush3.msra.mxu1 %v6414_v61 }
 0x3cd   :  { %4930 = vmatprep.subr.mxu1 %v8695_v22 }
 0x3ce   :  { %4931 = vmatpush3.msra.mxu1 %v6418_v62 }
 0x3cf   :  { %4932 = vmatprep.subr.mxu1 %v8695_v22 }
 0x3d0   :  { %4933 = vmatpush3.msra.mxu1 %v6422_v0 }
 0x3d1   :  { %4934 = vmatprep.subr.mxu1 %v8695_v22 }
 0x3d2   :  { %4935 = vmatpush3.msra.mxu1 %v6426_v18 }
 0x3d3   :  { %4936 = vmatprep.subr.mxu1 %v8695_v22 }
 0x3d4   :  { %4937 = vmatpush3.msra.mxu1 %v6430_v19  ;;  %v6491_v19 = vrot.slane %v199_v26, %v6487_v21 }
 0x3d5   :  { %4941 = vmatprep.subr.mxu1 %v8695_v22 }
 0x3d6   :  { %8979 = vst [vmem:[#allocation20_spill] sm:$0xff] %v6491_v19 }
 0x44d   :  { %v286_v27 = vpop.f32.mrf.mxu1 }
 0x44e   :  { %v6483_v32 = vadd.f32 %v286_v27, %v204_v12  ;;  %v446_v27 = vadd.f32 %v445_v24, %v6491_v19 }
 0x44f   :  { %v288_v30 = vpop.f32.mrf.mxu1 }
 0x450   :  { %8977 = vst [vmem:[#allocation18_spill] sm:$0xff] %v6483_v32  ;;  %v518_v35 = vadd.f32 %v444_v33, %v6483_v32  ;;  %v6493_v20 = vadd.f32 %v288_v30, %v208_v42  ;;  %v6497_v33 = vsub.s32 2, %v202_v23 }
 0x452   :  { %v519_v22 = vmul.f32 0.5, %v518_v35  ;;  %8980 = vst [vmem:[#allocation21_spill] sm:$0xff] %v6493_v20  ;;  %v523_v12 = vadd.f32 %v446_v27, %v6493_v20  ;;  %8981 = vst [vmem:[#allocation22_spill] sm:$0xff] %v6497_v33  ;;  %v6500_v35 = vrot.slane %v199_v26, %v6497_v33  ;;  %v212_v21 = vrot.slane %v198_v25, %v6497_v33 }
 0x453   :  { %v8985_v25 = vmov 0.0  }
 0x454   :  { %5769 = vtanh.f32 %v519_v22  ;;  %v524_v29 = vmul.f32 0.5, %v523_v12  ;;  %8982 = vst [vmem:[#allocation23_spill] sm:$0xff] %v6500_v35 }
 0x455   :  { %v357_v31 = vpop.f32.mrf.mxu1 }
 0x456   :  { %5771 = vtanh.f32 %v524_v29  ;;  %v6504_v17 = vadd.f32 %v357_v31, %v212_v21  ;;  %v8989_v31 = vld [vmem:[#allocation15_spill] sm:$0xff] }
 0x457   :  { %v4870_v34 = vpop.f32.mrf.mxu1 }
 0x458   :  { %8983 = vst [vmem:[#allocation24_spill] sm:$0xff] %v6504_v17 }
 0x461   :  { %v5770_v34 = vpop.eup %5769 }
 0x462   :  { %v521_v32 = vadd.f32 1.0, %v5770_v34 }
 0x463   :  { %v5772_v12 = vpop.eup %5771 }
 0x464   :  { %v522_v42 = vmul.f32 0.5, %v521_v32  ;;  %v526_v23 = vadd.f32 1.0, %v5772_v12  ;;  %v8990_v32 = vld [vmem:[#allocation8_spill] sm:$0xff] }
 0x466   :  { %v527_v29 = vmul.f32 0.5, %v526_v23  ;;  %v8992_v23 = vld [vmem:[#allocation20_spill] sm:$0xff] }
 0x468   :  { %v531_v20 = vsub.f32 1.0, %v527_v29  ;;  %v533_v19 = vmul.f32 0.0, %v527_v29 }
 0x475   :  { %v514_v28 = vpop.f32.mrf.mxu1 }
 0x476   :  { %v515_v22 = vadd.f32 %v514_v28, %v6500_v35  ;;  %v8988_v28 = vld [vmem:[#allocation12_spill] sm:$0xff] }
 0x477   :  { %v4905_v30 = vpop.f32.mrf.mxu1 }
 0x478   :  { %v528_v24 = vmul.f32 %v522_v42, %v515_v22  ;;  %v8991_v42 = vld [vmem:[#allocation17_spill] sm:$0xff] }
 0x47a   :  { %v529_v27 = vadd.f32 %v528_v24, %v6504_v17 }
 0x47c   :  { %5773 = vtanh.f32 %v529_v27 }
 0x489   :  { %v5774_v26 = vpop.eup %5773 }
 0x48a   :  { %v532_v34 = vmul.f32 %v5774_v26, %v531_v20  ;;  %v8986_v20 = vld [vmem:[#allocation14_spill] sm:$0xff] }
 0x48b   :  { %v8993_v26 = vld [vmem:[#allocation18_spill] sm:$0xff] }
 0x48c   :  { %v6507_v18 = vadd.f32 %v533_v19, %v532_v34  ;;  %v8987_v19 = vld [vmem:[#allocation11_spill] sm:$0xff] }
 0x48e   :  { %8984 = vst [vmem:[#allocation25_spill] sm:$0xff] %v6507_v18  ;;  %600 = vmatmul.mubr.f32.vlgmr.msra.gmra.mxu0 %v6507_v18  ;;  %4939 = vmatmul.mubr.f32.vlgmr.msra.gmra.mxu1 %v6507_v18 }
 0x48f   :  { %709 = vmatpush1.msra.mxu0 %v6226_v43  ;;  %4942 = vmatpush3.msra.mxu1 %v6368_v36 }
 0x490   :  { %710 = vmatprep.subr.mxu0 %v6228_v44  ;;  %4943 = vmatprep.subr.mxu1 %v8985_v25 }
 0x491   :  { %711 = vmatpush1.msra.mxu0 %v6231_v45  ;;  %4944 = vmatpush3.msra.mxu1 %v6372_v37 }
 0x492   :  { %712 = vmatprep.subr.mxu0 %v6234_v46  ;;  %4945 = vmatprep.subr.mxu1 %v8985_v25 }
 0x493   :  { %713 = vmatpush1.msra.mxu0 %v6237_v47  ;;  %4946 = vmatpush3.msra.mxu1 %v6378_v38 }
 0x494   :  { %714 = vmatprep.subr.mxu0 %v6240_v48  ;;  %4947 = vmatprep.subr.mxu1 %v8985_v25 }
 0x495   :  { %715 = vmatpush1.msra.mxu0 %v6243_v49  ;;  %4948 = vmatpush3.msra.mxu1 %v6382_v39 }
 0x496   :  { %716 = vmatprep.subr.mxu0 %v6246_v50  ;;  %4949 = vmatprep.subr.mxu1 %v8985_v25 }
 0x497   :  { %717 = vmatpush1.msra.mxu0 %v6249_v51  ;;  %4950 = vmatpush3.msra.mxu1 %v6386_v40 }
 0x498   :  { %718 = vmatprep.subr.mxu0 %v6252_v53  ;;  %4951 = vmatprep.subr.mxu1 %v8985_v25 }
 0x499   :  { %719 = vmatpush1.msra.mxu0 %v6255_v55  ;;  %4952 = vmatpush3.msra.mxu1 %v6390_v41 }
 0x49a   :  { %720 = vmatprep.subr.mxu0 %v6258_v58  ;;  %4953 = vmatprep.subr.mxu1 %v8985_v25 }
 0x49b   :  { %721 = vmatpush1.msra.mxu0 %v6261_v60  ;;  %4954 = vmatpush3.msra.mxu1 %v6394_v52 }
 0x49c   :  { %722 = vmatprep.subr.mxu0 %v6264_v63  ;;  %4955 = vmatprep.subr.mxu1 %v8985_v25 }
 0x49d   :  { %723 = vmatpush1.msra.mxu0 %v6267_v1  ;;  %4956 = vmatpush3.msra.mxu1 %v6398_v54 }
 0x49e   :  { %724 = vmatprep.subr.mxu0 %v6270_v2  ;;  %4957 = vmatprep.subr.mxu1 %v8985_v25 }
 0x49f   :  { %725 = vmatpush1.msra.mxu0 %v6273_v3  ;;  %4958 = vmatpush3.msra.mxu1 %v6402_v56 }
 0x4a0   :  { %726 = vmatprep.subr.mxu0 %v6276_v4  ;;  %4959 = vmatprep.subr.mxu1 %v8985_v25 }
 0x4a1   :  { %727 = vmatpush1.msra.mxu0 %v6279_v5  ;;  %4960 = vmatpush3.msra.mxu1 %v6406_v57 }
 0x4a2   :  { %728 = vmatprep.subr.mxu0 %v6282_v6  ;;  %4961 = vmatprep.subr.mxu1 %v8985_v25 }
 0x4a3   :  { %729 = vmatpush1.msra.mxu0 %v6285_v7  ;;  %4962 = vmatpush3.msra.mxu1 %v6410_v59 }
 0x4a4   :  { %730 = vmatprep.subr.mxu0 %v6288_v8  ;;  %4963 = vmatprep.subr.mxu1 %v8985_v25 }
 0x4a5   :  { %731 = vmatpush1.msra.mxu0 %v6291_v9  ;;  %4964 = vmatpush3.msra.mxu1 %v6414_v61 }
 0x4a6   :  { %732 = vmatprep.subr.mxu0 %v6294_v10  ;;  %4965 = vmatprep.subr.mxu1 %v8985_v25 }
 0x4a7   :  { %733 = vmatpush1.msra.mxu0 %v6297_v11  ;;  %4966 = vmatpush3.msra.mxu1 %v6418_v62 }
 0x4a8   :  { %734 = vmatprep.subr.mxu0 %v6300_v13  ;;  %4967 = vmatprep.subr.mxu1 %v8985_v25 }
 0x4a9   :  { %735 = vmatpush1.msra.mxu0 %v6303_v14  ;;  %4968 = vmatpush3.msra.mxu1 %v6422_v0 }
 0x4aa   :  { %736 = vmatprep.subr.mxu0 %v6306_v15  ;;  %4969 = vmatprep.subr.mxu1 %v8985_v25 }
 0x4ab   :  { %737 = vmatpush1.msra.mxu0 %v6309_v16  ;;  %4970 = vmatpush3.msra.mxu1 %v8986_v20 }
 0x4ac   :  { %738 = vmatprep.subr.mxu0 %v8987_v19  ;;  %4971 = vmatprep.subr.mxu1 %v8985_v25 }
 0x4ad   :  { %739 = vmatpush1.msra.mxu0 %v8988_v28  ;;  %772 = vmatprep.mubr.f32.mxu0 %v8985_v25  ;;  %v8994_v28 = vld [vmem:[#allocation21_spill] sm:$0xff] }
 0x4ae   :  { %4972 = vmatpush3.msra.mxu1 %v8989_v31  ;;  %4973 = vmatprep.mubr.msk.f32.mxu1 %vm6157_vm2, %v8985_v25 }
 0x4af   :  { %880 = vmatprep.subr.mxu0 %v8990_v32  ;;  %4976 = vmatprep.subr.mxu1 %v8985_v25 }
 0x54e   :  { %v601_v21 = vpop.f32.mrf.mxu0  ;;  %v672_v22 = vpop.f32.mrf.mxu1 }
 0x54f   :  { %v602_v30 = vadd.f32 %v601_v21, %v8991_v42  ;;  %v673_v32 = vadd.f32 %v672_v22, %v6500_v35 }
 0x550   :  { %v603_v24 = vpop.f32.mrf.mxu0  ;;  %v4940_v27 = vpop.f32.mrf.mxu1 }
 0x551   :  { %v677_v12 = vrot.slane %v602_v30, 7  ;;  %v604_v29 = vadd.f32 %v603_v24, %v8992_v23  ;;  %v693_v21 = vrot.slane %v673_v32, 7  ;;  %v8999_v32 = vld [vmem:[#allocation14_spill] sm:$0xff] }
 0x553   :  { %v679_v34 = vadd.f32 %v677_v12, %v8993_v26  ;;  %v685_v31 = vrot.slane %v604_v29, 7 }
 0x555   :  { %v680_v33 = vmul.f32 0.5, %v679_v34  ;;  %v687_v19 = vadd.f32 %v685_v31, %v8994_v28 }
 0x557   :  { %5775 = vtanh.f32 %v680_v33  ;;  %v688_v20 = vmul.f32 0.5, %v687_v19  ;;  %v701_v33 = vrot.slane %v6507_v18, 7 }
 0x559   :  { %5777 = vtanh.f32 %v688_v20 }
 0x564   :  { %v5776_v16 = vpop.eup %5775 }
 0x565   :  { %v682_v15 = vadd.f32 1.0, %v5776_v16  ;;  %v8997_v16 = vld [vmem:[#allocation9_spill] sm:$0xff] }
 0x566   :  { %v5778_v24 = vpop.eup %5777 }
 0x567   :  { %v683_v0 = vmul.f32 0.5, %v682_v15  ;;  %v690_v27 = vadd.f32 1.0, %v5778_v24  ;;  %v8996_v15 = vld [vmem:[#allocation13_spill] sm:$0xff]  ;;  %v9003_v24 = vld [vmem:[#allocation8_spill] sm:$0xff] }
 0x569   :  { %v695_v42 = vmul.f32 %v693_v21, %v683_v0  ;;  %v691_v12 = vmul.f32 0.5, %v690_v27  ;;  %v8998_v0 = vld [vmem:[#allocation10_spill] sm:$0xff]  ;;  %v9001_v21 = vld [vmem:[#allocation12_spill] sm:$0xff] }
 0x56b   :  { %v696_v30 = vadd.f32 %v695_v42, %v6504_v17  ;;  %v698_v34 = vsub.f32 1.0, %v691_v12  ;;  %v703_v31 = vmul.f32 %v701_v33, %v691_v12  ;;  %v9000_v42 = vld [vmem:[#allocation11_spill] sm:$0xff] }
 0x56d   :  { %5779 = vtanh.f32 %v696_v30  ;;  %v9002_v30 = vld [vmem:[#allocation15_spill] sm:$0xff] }
 0x57a   :  { %v5780_v29 = vpop.eup %5779 }
 0x57b   :  { %v699_v19 = vmul.f32 %v5780_v29, %v698_v34  ;;  %v9004_v34 = vld [vmem:[#allocation17_spill] sm:$0xff] }
 0x57d   :  { %v6585_v20 = vadd.f32 %v703_v31, %v699_v19 }
 0x57f   :  { %v6588_v22 = vrot.slane %v6585_v20, 1 }
 0x581   :  { %8995 = vst [vmem:[#allocation26_spill] sm:$0xff] %v6588_v22  ;;  %773 = vmatmul.mubr.f32.vlgmr.msra.gmra.mxu0 %v6588_v22  ;;  %4974 = vmatmul.mubr.f32.vlgmr.msra.gmra.mxu1 %v6588_v22 }
 0x582   :  { %881 = vmatpush1.msra.mxu0 %v6226_v43  ;;  %4977 = vmatpush3.msra.mxu1 %v6368_v36 }
 0x583   :  { %882 = vmatprep.subr.mxu0 %v6228_v44  ;;  %4978 = vmatprep.subr.mxu1 %v8985_v25 }
 0x584   :  { %883 = vmatpush1.msra.mxu0 %v6231_v45  ;;  %4979 = vmatpush3.msra.mxu1 %v6372_v37 }
 0x585   :  { %884 = vmatprep.subr.mxu0 %v6234_v46  ;;  %4980 = vmatprep.subr.mxu1 %v8985_v25 }
 0x586   :  { %885 = vmatpush1.msra.mxu0 %v6237_v47  ;;  %4981 = vmatpush3.msra.mxu1 %v6378_v38 }
 0x587   :  { %886 = vmatprep.subr.mxu0 %v6240_v48  ;;  %4982 = vmatprep.subr.mxu1 %v8985_v25 }
 0x588   :  { %887 = vmatpush1.msra.mxu0 %v6243_v49  ;;  %4983 = vmatpush3.msra.mxu1 %v6382_v39 }
 0x589   :  { %888 = vmatprep.subr.mxu0 %v6246_v50  ;;  %4984 = vmatprep.subr.mxu1 %v8985_v25 }
 0x58a   :  { %889 = vmatpush1.msra.mxu0 %v6249_v51  ;;  %4985 = vmatpush3.msra.mxu1 %v6386_v40 }
 0x58b   :  { %890 = vmatprep.subr.mxu0 %v6252_v53  ;;  %4986 = vmatprep.subr.mxu1 %v8985_v25 }
 0x58c   :  { %891 = vmatpush1.msra.mxu0 %v6255_v55  ;;  %4987 = vmatpush3.msra.mxu1 %v6390_v41 }
 0x58d   :  { %892 = vmatprep.subr.mxu0 %v6258_v58  ;;  %4988 = vmatprep.subr.mxu1 %v8985_v25 }
 0x58e   :  { %893 = vmatpush1.msra.mxu0 %v6261_v60  ;;  %4989 = vmatpush3.msra.mxu1 %v6394_v52 }
 0x58f   :  { %894 = vmatprep.subr.mxu0 %v6264_v63  ;;  %4990 = vmatprep.subr.mxu1 %v8985_v25 }
 0x590   :  { %895 = vmatpush1.msra.mxu0 %v6267_v1  ;;  %4991 = vmatpush3.msra.mxu1 %v6398_v54 }
 0x591   :  { %896 = vmatprep.subr.mxu0 %v6270_v2  ;;  %4992 = vmatprep.subr.mxu1 %v8985_v25 }
 0x592   :  { %897 = vmatpush1.msra.mxu0 %v6273_v3  ;;  %4993 = vmatpush3.msra.mxu1 %v6402_v56 }
 0x593   :  { %898 = vmatprep.subr.mxu0 %v6276_v4  ;;  %4994 = vmatprep.subr.mxu1 %v8985_v25 }
 0x594   :  { %899 = vmatpush1.msra.mxu0 %v6279_v5  ;;  %4995 = vmatpush3.msra.mxu1 %v6406_v57 }
 0x595   :  { %900 = vmatprep.subr.mxu0 %v6282_v6  ;;  %4996 = vmatprep.subr.mxu1 %v8985_v25 }
 0x596   :  { %901 = vmatpush1.msra.mxu0 %v6285_v7  ;;  %4997 = vmatpush3.msra.mxu1 %v6410_v59 }
 0x597   :  { %902 = vmatprep.subr.mxu0 %v6288_v8  ;;  %4998 = vmatprep.subr.mxu1 %v8985_v25 }
 0x598   :  { %903 = vmatpush1.msra.mxu0 %v6291_v9  ;;  %4999 = vmatpush3.msra.mxu1 %v6414_v61 }
 0x599   :  { %904 = vmatprep.subr.mxu0 %v6294_v10  ;;  %5000 = vmatprep.subr.mxu1 %v8985_v25 }
 0x59a   :  { %905 = vmatpush1.msra.mxu0 %v6297_v11  ;;  %5001 = vmatpush3.msra.mxu1 %v6418_v62 }
 0x59b   :  { %906 = vmatprep.subr.mxu0 %v6300_v13  ;;  %5002 = vmatprep.subr.mxu1 %v8985_v25 }
 0x59c   :  { %907 = vmatpush1.msra.mxu0 %v6303_v14  ;;  %5003 = vmatpush3.msra.mxu1 %v8996_v15 }
 0x59d   :  { %908 = vmatprep.subr.mxu0 %v8997_v16  ;;  %5004 = vmatprep.subr.mxu1 %v8985_v25 }
 0x59e   :  { %909 = vmatpush1.msra.mxu0 %v8998_v0  ;;  %5005 = vmatpush3.msra.mxu1 %v8999_v32 }
 0x59f   :  { %910 = vmatprep.subr.mxu0 %v9000_v42  ;;  %5006 = vmatprep.subr.mxu1 %v8985_v25 }
 0x5a0   :  { %911 = vmatpush1.msra.mxu0 %v9001_v21  ;;  %944 = vmatprep.mubr.f32.mxu0 %v8985_v25 }
 0x5a1   :  { %5007 = vmatpush3.msra.mxu1 %v9002_v30  ;;  %5008 = vmatprep.mubr.msk.f32.mxu1 %vm6157_vm2, %v8985_v25 }
 0x5a2   :  { %1052 = vmatprep.subr.mxu0 %v9003_v24  ;;  %5011 = vmatprep.subr.mxu1 %v8985_v25 }
 0x641   :  { %v774_v27 = vpop.f32.mrf.mxu0  ;;  %v845_v12 = vpop.f32.mrf.mxu1 }
 0x642   :  { %v775_v33 = vadd.f32 %v774_v27, %v9004_v34  ;;  %v846_v24 = vadd.f32 %v845_v12, %v6500_v35 }
 0x643   :  { %v776_v29 = vpop.f32.mrf.mxu0  ;;  %v4975_v31 = vpop.f32.mrf.mxu1 }
 0x644   :  { %v850_v19 = vrot.slane %v775_v33, 6  ;;  %v777_v22 = vadd.f32 %v776_v29, %v8992_v23  ;;  %v866_v27 = vrot.slane %v846_v24, 6 }
 0x646   :  { %v852_v18 = vadd.f32 %v850_v19, %v8993_v26  ;;  %v858_v30 = vrot.slane %v777_v22, 6 }
 0x648   :  { %v853_v21 = vmul.f32 0.5, %v852_v18  ;;  %v860_v42 = vadd.f32 %v858_v30, %v8994_v28  ;;  %v873_v18 = vrot.slane %v6585_v20, 7 }
 0x64a   :  { %5781 = vtanh.f32 %v853_v21  ;;  %v861_v32 = vmul.f32 0.5, %v860_v42 }
 0x64c   :  { %5783 = vtanh.f32 %v861_v32 }
 0x657   :  { %v5782_v0 = vpop.eup %5781 }
 0x658   :  { %v855_v16 = vadd.f32 1.0, %v5782_v0 }
 0x659   :  { %v5784_v29 = vpop.eup %5783 }
 0x65a   :  { %v856_v15 = vmul.f32 0.5, %v855_v16  ;;  %v863_v31 = vadd.f32 1.0, %v5784_v29 }
 0x65c   :  { %v868_v34 = vmul.f32 %v866_v27, %v856_v15  ;;  %v864_v19 = vmul.f32 0.5, %v863_v31 }
 0x65e   :  { %v869_v33 = vadd.f32 %v868_v34, %v6504_v17  ;;  %v871_v22 = vsub.f32 1.0, %v864_v19  ;;  %v875_v30 = vmul.f32 %v873_v18, %v864_v19  ;;  %v6756_v18 = vld [vmem:[#allocation4 + $0x168] sm:$0xff] }
 0x660   :  { %5785 = vtanh.f32 %v869_v33 }
 0x66d   :  { %v5786_v21 = vpop.eup %5785 }
 0x66e   :  { %v872_v42 = vmul.f32 %v5786_v21, %v871_v22  ;;  %v6760_v22 = vld [vmem:[#allocation4 + $0x158] sm:$0xff]  ;;  %v6764_v21 = vld [vmem:[#allocation4 + $0x150] sm:$0xff] }
 0x670   :  { %v6666_v32 = vadd.f32 %v875_v30, %v872_v42  ;;  %v6768_v30 = vld [vmem:[#allocation4 + $0x140] sm:$0xff]  ;;  %v6772_v42 = vld [vmem:[#allocation4 + $0x138] sm:$0xff] }
 0x672   :  { %v6669_v12 = vrot.slane %v6666_v32, 2  ;;  %v1045_v34 = vrot.slane %v6666_v32, 7  ;;  %v6780_v32 = vld [vmem:[#allocation4 + $0x120] sm:$0xff] }
 0x674   :  { %9005 = vst [vmem:[#allocation8_spill] sm:$0xff] %v6669_v12  ;;  %945 = vmatmul.mubr.f32.vlgmr.msra.gmra.mxu0 %v6669_v12  ;;  %5009 = vmatmul.mubr.f32.vlgmr.msra.gmra.mxu1 %v6669_v12 }
 0x675   :  { %1053 = vmatpush1.msra.mxu0 %v6226_v43  ;;  %5012 = vmatpush3.msra.mxu1 %v6368_v36  ;;  %v9006_v43 = vld [vmem:[#allocation13_spill] sm:$0xff] }
 0x676   :  { %1054 = vmatprep.subr.mxu0 %v6228_v44  ;;  %5013 = vmatprep.subr.mxu1 %v8985_v25  ;;  %v9007_v44 = vld [vmem:[#allocation9_spill] sm:$0xff] }
 0x677   :  { %1055 = vmatpush1.msra.mxu0 %v6231_v45  ;;  %5014 = vmatpush3.msra.mxu1 %v6372_v37  ;;  %v9008_v45 = vld [vmem:[#allocation10_spill] sm:$0xff] }
 0x678   :  { %1056 = vmatprep.subr.mxu0 %v6234_v46  ;;  %5015 = vmatprep.subr.mxu1 %v8985_v25  ;;  %v9009_v46 = vld [vmem:[#allocation14_spill] sm:$0xff] }
 0x679   :  { %1057 = vmatpush1.msra.mxu0 %v6237_v47  ;;  %5016 = vmatpush3.msra.mxu1 %v6378_v38  ;;  %v9010_v47 = vld [vmem:[#allocation11_spill] sm:$0xff] }
 0x67a   :  { %1058 = vmatprep.subr.mxu0 %v6240_v48  ;;  %5017 = vmatprep.subr.mxu1 %v8985_v25  ;;  %v9011_v48 = vld [vmem:[#allocation12_spill] sm:$0xff] }
 0x67b   :  { %1059 = vmatpush1.msra.mxu0 %v6243_v49  ;;  %5018 = vmatpush3.msra.mxu1 %v6382_v39  ;;  %v9012_v49 = vld [vmem:[#allocation15_spill] sm:$0xff] }
 0x67c   :  { %1060 = vmatprep.subr.mxu0 %v6246_v50  ;;  %5019 = vmatprep.subr.mxu1 %v8985_v25  ;;  %v6738_v50 = vld [vmem:[#allocation4 + $0x170] sm:$0xff] }
 0x67d   :  { %1061 = vmatpush1.msra.mxu0 %v6249_v51  ;;  %5020 = vmatpush3.msra.mxu1 %v6386_v40 }
 0x67e   :  { %1062 = vmatprep.subr.mxu0 %v6252_v53  ;;  %5021 = vmatprep.subr.mxu1 %v8985_v25 }
 0x67f   :  { %1063 = vmatpush1.msra.mxu0 %v6255_v55  ;;  %5022 = vmatpush3.msra.mxu1 %v6390_v41  ;;  %v9013_v55 = vld [vmem:[#allocation17_spill] sm:$0xff] }
 0x680   :  { %1064 = vmatprep.subr.mxu0 %v6258_v58  ;;  %5023 = vmatprep.subr.mxu1 %v8985_v25 }
 0x681   :  { %1065 = vmatpush1.msra.mxu0 %v6261_v60  ;;  %5024 = vmatpush3.msra.mxu1 %v6394_v52 }
 0x682   :  { %1066 = vmatprep.subr.mxu0 %v6264_v63  ;;  %5025 = vmatprep.subr.mxu1 %v8985_v25 }
 0x683   :  { %1067 = vmatpush1.msra.mxu0 %v6267_v1  ;;  %5026 = vmatpush3.msra.mxu1 %v6398_v54 }
 0x684   :  { %1068 = vmatprep.subr.mxu0 %v6270_v2  ;;  %5027 = vmatprep.subr.mxu1 %v8985_v25 }
 0x685   :  { %1069 = vmatpush1.msra.mxu0 %v6273_v3  ;;  %5028 = vmatpush3.msra.mxu1 %v6402_v56 }
 0x686   :  { %1070 = vmatprep.subr.mxu0 %v6276_v4  ;;  %5029 = vmatprep.subr.mxu1 %v8985_v25 }
 0x687   :  { %1071 = vmatpush1.msra.mxu0 %v6279_v5  ;;  %5030 = vmatpush3.msra.mxu1 %v6406_v57 }
 0x688   :  { %1072 = vmatprep.subr.mxu0 %v6282_v6  ;;  %5031 = vmatprep.subr.mxu1 %v8985_v25 }
 0x689   :  { %1073 = vmatpush1.msra.mxu0 %v6285_v7  ;;  %5032 = vmatpush3.msra.mxu1 %v6410_v59 }
 0x68a   :  { %1074 = vmatprep.subr.mxu0 %v6288_v8  ;;  %5033 = vmatprep.subr.mxu1 %v8985_v25 }
 0x68b   :  { %1075 = vmatpush1.msra.mxu0 %v6291_v9  ;;  %5034 = vmatpush3.msra.mxu1 %v6414_v61 }
 0x68c   :  { %1076 = vmatprep.subr.mxu0 %v6294_v10  ;;  %5035 = vmatprep.subr.mxu1 %v8985_v25 }
 0x68d   :  { %1077 = vmatpush1.msra.mxu0 %v6297_v11  ;;  %5036 = vmatpush3.msra.mxu1 %v6418_v62 }
 0x68e   :  { %1078 = vmatprep.subr.mxu0 %v6300_v13  ;;  %5037 = vmatprep.subr.mxu1 %v8985_v25 }
 0x68f   :  { %1079 = vmatpush1.msra.mxu0 %v6303_v14  ;;  %5038 = vmatpush3.msra.mxu1 %v9006_v43 }
 0x690   :  { %1080 = vmatprep.subr.mxu0 %v9007_v44  ;;  %5039 = vmatprep.subr.mxu1 %v8985_v25  ;;  %v6788_v44 = vld [vmem:[#allocation4 + $0x108] sm:$0xff] }
 0x691   :  { %1081 = vmatpush1.msra.mxu0 %v9008_v45  ;;  %5040 = vmatpush3.msra.mxu1 %v9009_v46  ;;  %v6796_v45 = vld [vmem:[#allocation4 + $0xf0] sm:$0xff] }
 0x692   :  { %1082 = vmatprep.subr.mxu0 %v9010_v47  ;;  %5041 = vmatprep.subr.mxu1 %v8985_v25  ;;  %v6804_v47 = vld [vmem:[#allocation4 + $0xd8] sm:$0xff] }
 0x693   :  { %1083 = vmatpush1.msra.mxu0 %v9011_v48  ;;  %1116 = vmatprep.mubr.f32.mxu0 %v8985_v25  ;;  %v6812_v48 = vld [vmem:[#allocation4 + $0xc0] sm:$0xff] }
 0x694   :  { %5042 = vmatpush3.msra.mxu1 %v9012_v49  ;;  %5043 = vmatprep.mubr.msk.f32.mxu1 %vm6157_vm2, %v8985_v25 }
 0x695   :  { %1224 = vmatprep.subr.mxu0 %v6738_v50  ;;  %5046 = vmatprep.subr.mxu1 %v8985_v25 }
 0x734   :  { %v946_v51 = vpop.f32.mrf.mxu0  ;;  %v1017_v53 = vpop.f32.mrf.mxu1 }
 0x735   :  { %v947_v58 = vadd.f32 %v946_v51, %v9013_v55  ;;  %v1018_v8 = vadd.f32 %v1017_v53, %v6500_v35  ;;  %v6820_v51 = vld [vmem:[#allocation4 + $0xa8] sm:$0xff]  ;;  %v6828_v53 = vld [vmem:[#allocation4 + $0x90] sm:$0xff] }
 0x736   :  { %v948_v60 = vpop.f32.mrf.mxu0  ;;  %v5010_v63 = vpop.f32.mrf.mxu1 }
 0x737   :  { %v1022_v1 = vrot.slane %v947_v58, 5  ;;  %v949_v2 = vadd.f32 %v948_v60, %v8992_v23  ;;  %v1038_v13 = vrot.slane %v1018_v8, 5  ;;  %v6836_v58 = vld [vmem:[#allocation4 + $0x78] sm:$0xff]  ;;  %v6844_v60 = vld [vmem:[#allocation4 + $0x60] sm:$0xff]  ;;  %v6852_v63 = vld [vmem:[#allocation4 + $0x48] sm:$0xff] }
 0x739   :  { %v1024_v3 = vadd.f32 %v1022_v1, %v8993_v26  ;;  %v1030_v5 = vrot.slane %v949_v2, 5  ;;  %v6860_v1 = vld [vmem:[#allocation4 + $0x30] sm:$0xff]  ;;  %v6868_v2 = vld [vmem:[#allocation4 + $0x18] sm:$0xff] }
 0x73a   :  { %9016 = vst [vmem:[#allocation10_spill] sm:$0xff] %v6868_v2 }
 0x73b   :  { %v1025_v4 = vmul.f32 0.5, %v1024_v3  ;;  %v1032_v6 = vadd.f32 %v1030_v5, %v8994_v28  ;;  %v6876_v3 = vld [vmem:[#allocation4] sm:$0xff] }
 0x73c   :  { %9018 = vst [vmem:[#allocation11_spill] sm:$0xff] %v6876_v3 }
 0x73d   :  { %5787 = vtanh.f32 %v1025_v4  ;;  %v1033_v7 = vmul.f32 0.5, %v1032_v6 }
 0x73f   :  { %5789 = vtanh.f32 %v1033_v7 }
 0x74a   :  { %v5788_v9 = vpop.eup %5787 }
 0x74b   :  { %v1027_v10 = vadd.f32 1.0, %v5788_v9 }
 0x74c   :  { %v5790_v15 = vpop.eup %5789 }
 0x74d   :  { %v1028_v11 = vmul.f32 0.5, %v1027_v10  ;;  %v1035_v16 = vadd.f32 1.0, %v5790_v15 }
 0x74f   :  { %v1040_v14 = vmul.f32 %v1038_v13, %v1028_v11  ;;  %v1036_v0 = vmul.f32 0.5, %v1035_v16 }
 0x751   :  { %v1041_v20 = vadd.f32 %v1040_v14, %v6504_v17  ;;  %v1043_v24 = vsub.f32 1.0, %v1036_v0  ;;  %v1047_v33 = vmul.f32 %v1045_v34, %v1036_v0 }
 0x753   :  { %5791 = vtanh.f32 %v1041_v20 }
 0x760   :  { %v5792_v27 = vpop.eup %5791 }
 0x761   :  { %v1044_v29 = vmul.f32 %v5792_v27, %v1043_v24 }
 0x763   :  { %v6749_v31 = vadd.f32 %v1047_v33, %v1044_v29 }
 0x765   :  { %v6752_v19 = vrot.slane %v6749_v31, 3 }
 0x767   :  { %9014 = vst [vmem:[#allocation13_spill] sm:$0xff] %v6752_v19  ;;  %1117 = vmatmul.mubr.f32.vlgmr.msra.gmra.mxu0 %v6752_v19  ;;  %5044 = vmatmul.mubr.f32.vlgmr.msra.gmra.mxu1 %v6752_v19 }
 0x768   :  { %1225 = vmatpush1.msra.mxu0 %v6756_v18  ;;  %5047 = vmatpush3.msra.mxu1 %v6368_v36  ;;  %v6776_v36 = vld [vmem:[#allocation4 + $0x128] sm:$0xff] }
 0x769   :  { %1226 = vmatprep.subr.mxu0 %v6760_v22  ;;  %5048 = vmatprep.subr.mxu1 %v8985_v25 }
 0x76a   :  { %1227 = vmatpush1.msra.mxu0 %v6764_v21  ;;  %5049 = vmatpush3.msra.mxu1 %v6372_v37  ;;  %v6784_v37 = vld [vmem:[#allocation4 + $0x110] sm:$0xff] }
 0x76b   :  { %1228 = vmatprep.subr.mxu0 %v6768_v30  ;;  %5050 = vmatprep.subr.mxu1 %v8985_v25 }
 0x76c   :  { %1229 = vmatpush1.msra.mxu0 %v6772_v42  ;;  %5051 = vmatpush3.msra.mxu1 %v6378_v38  ;;  %v6792_v38 = vld [vmem:[#allocation4 + $0xf8] sm:$0xff] }
 0x76d   :  { %1230 = vmatprep.subr.mxu0 %v6776_v36  ;;  %5052 = vmatprep.subr.mxu1 %v8985_v25 }
 0x76e   :  { %1231 = vmatpush1.msra.mxu0 %v6780_v32  ;;  %5053 = vmatpush3.msra.mxu1 %v6382_v39  ;;  %v6800_v39 = vld [vmem:[#allocation4 + $0xe0] sm:$0xff] }
 0x76f   :  { %1232 = vmatprep.subr.mxu0 %v6784_v37  ;;  %5054 = vmatprep.subr.mxu1 %v8985_v25 }
 0x770   :  { %1233 = vmatpush1.msra.mxu0 %v6788_v44  ;;  %5055 = vmatpush3.msra.mxu1 %v6386_v40  ;;  %v6808_v40 = vld [vmem:[#allocation4 + $0xc8] sm:$0xff] }
 0x771   :  { %1234 = vmatprep.subr.mxu0 %v6792_v38  ;;  %5056 = vmatprep.subr.mxu1 %v8985_v25 }
 0x772   :  { %1235 = vmatpush1.msra.mxu0 %v6796_v45  ;;  %5057 = vmatpush3.msra.mxu1 %v6390_v41  ;;  %v6816_v41 = vld [vmem:[#allocation4 + $0xb0] sm:$0xff] }
 0x773   :  { %1236 = vmatprep.subr.mxu0 %v6800_v39  ;;  %5058 = vmatprep.subr.mxu1 %v8985_v25 }
 0x774   :  { %1237 = vmatpush1.msra.mxu0 %v6804_v47  ;;  %5059 = vmatpush3.msra.mxu1 %v6394_v52  ;;  %v6824_v52 = vld [vmem:[#allocation4 + $0x98] sm:$0xff] }
 0x775   :  { %1238 = vmatprep.subr.mxu0 %v6808_v40  ;;  %5060 = vmatprep.subr.mxu1 %v8985_v25 }
 0x776   :  { %1239 = vmatpush1.msra.mxu0 %v6812_v48  ;;  %5061 = vmatpush3.msra.mxu1 %v6398_v54  ;;  %v6832_v54 = vld [vmem:[#allocation4 + $0x80] sm:$0xff] }
 0x777   :  { %1240 = vmatprep.subr.mxu0 %v6816_v41  ;;  %5062 = vmatprep.subr.mxu1 %v8985_v25 }
 0x778   :  { %1241 = vmatpush1.msra.mxu0 %v6820_v51  ;;  %5063 = vmatpush3.msra.mxu1 %v6402_v56  ;;  %v6840_v56 = vld [vmem:[#allocation4 + $0x68] sm:$0xff] }
 0x779   :  { %1242 = vmatprep.subr.mxu0 %v6824_v52  ;;  %5064 = vmatprep.subr.mxu1 %v8985_v25 }
 0x77a   :  { %1243 = vmatpush1.msra.mxu0 %v6828_v53  ;;  %5065 = vmatpush3.msra.mxu1 %v6406_v57  ;;  %v6848_v57 = vld [vmem:[#allocation4 + $0x50] sm:$0xff] }
 0x77b   :  { %1244 = vmatprep.subr.mxu0 %v6832_v54  ;;  %5066 = vmatprep.subr.mxu1 %v8985_v25 }
 0x77c   :  { %1245 = vmatpush1.msra.mxu0 %v6836_v58  ;;  %5067 = vmatpush3.msra.mxu1 %v6410_v59  ;;  %v6856_v59 = vld [vmem:[#allocation4 + $0x38] sm:$0xff] }
 0x77d   :  { %1246 = vmatprep.subr.mxu0 %v6840_v56  ;;  %5068 = vmatprep.subr.mxu1 %v8985_v25 }
 0x77e   :  { %1247 = vmatpush1.msra.mxu0 %v6844_v60  ;;  %5069 = vmatpush3.msra.mxu1 %v6414_v61  ;;  %v6864_v61 = vld [vmem:[#allocation4 + $0x20] sm:$0xff] }
 0x77f   :  { %1248 = vmatprep.subr.mxu0 %v6848_v57  ;;  %5070 = vmatprep.subr.mxu1 %v8985_v25  ;;  %9015 = vst [vmem:[#allocation9_spill] sm:$0xff] %v6864_v61 }
 0x780   :  { %1249 = vmatpush1.msra.mxu0 %v6852_v63  ;;  %5071 = vmatpush3.msra.mxu1 %v6418_v62  ;;  %v6872_v62 = vld [vmem:[#allocation4 + $0x8] sm:$0xff] }
 0x781   :  { %1250 = vmatprep.subr.mxu0 %v6856_v59  ;;  %5072 = vmatprep.subr.mxu1 %v8985_v25  ;;  %9017 = vst [vmem:[#allocation14_spill] sm:$0xff] %v6872_v62 }
 0x782   :  { %1251 = vmatpush1.msra.mxu0 %v6860_v1  ;;  %5073 = vmatpush3.msra.mxu1 %v9006_v43 }
 0x783   :  { %1252 = vmatprep.subr.mxu0 %v6864_v61  ;;  %5074 = vmatprep.subr.mxu1 %v8985_v25 }
 0x784   :  { %1253 = vmatpush1.msra.mxu0 %v6868_v2  ;;  %5075 = vmatpush3.msra.mxu1 %v9009_v46 }
 0x785   :  { %1254 = vmatprep.subr.mxu0 %v6872_v62  ;;  %5076 = vmatprep.subr.mxu1 %v8985_v25 }
 0x786   :  { %1255 = vmatpush1.msra.mxu0 %v6876_v3  ;;  %1288 = vmatprep.mubr.f32.mxu0 %v8985_v25 }
 0x787   :  { %5077 = vmatpush3.msra.mxu1 %v9012_v49  ;;  %5078 = vmatprep.mubr.msk.f32.mxu1 %vm6157_vm2, %v8985_v25 }
 0x788   :  { %1396 = vmatprep.subr.mxu0 %v6738_v50  ;;  %5081 = vmatprep.subr.mxu1 %v8985_v25 }
 0x827   :  { %v1118_v43 = vpop.f32.mrf.mxu0  ;;  %v1189_v46 = vpop.f32.mrf.mxu1 }
 0x828   :  { %v1119_v4 = vadd.f32 %v1118_v43, %v9013_v55  ;;  %v1190_v14 = vadd.f32 %v1189_v46, %v6500_v35  ;;  %v1217_v43 = vrot.slane %v6749_v31, 7  ;;  %v6906_v31 = vld [vmem:[#allocation4 + $0x160] sm:$0xff] }
 0x829   :  { %v1120_v5 = vpop.f32.mrf.mxu0  ;;  %v5045_v6 = vpop.f32.mrf.mxu1 }
 0x82a   :  { %v1194_v7 = vrot.slane %v1119_v4, 4  ;;  %v1121_v8 = vadd.f32 %v1120_v5, %v8992_v23  ;;  %v1210_v0 = vrot.slane %v1190_v14, 4  ;;  %v6936_v14 = vld [vmem:[#allocation4 + $0xe8] sm:$0xff] }
 0x82c   :  { %v1196_v9 = vadd.f32 %v1194_v7, %v8993_v26  ;;  %v1202_v49 = vrot.slane %v1121_v8, 4 }
 0x82e   :  { %v1197_v10 = vmul.f32 0.5, %v1196_v9  ;;  %v1204_v11 = vadd.f32 %v1202_v49, %v8994_v28  ;;  %v6900_v9 = vld [vmem:[#allocation4 + $0x178] sm:$0xff]  ;;  %v6918_v49 = vld [vmem:[#allocation4 + $0x130] sm:$0xff] }
 0x830   :  { %5793 = vtanh.f32 %v1197_v10  ;;  %v1205_v13 = vmul.f32 0.5, %v1204_v11  ;;  %v6912_v10 = vld [vmem:[#allocation4 + $0x148] sm:$0xff]  ;;  %v6924_v11 = vld [vmem:[#allocation4 + $0x118] sm:$0xff] }
 0x832   :  { %5795 = vtanh.f32 %v1205_v13  ;;  %v6930_v13 = vld [vmem:[#allocation4 + $0x100] sm:$0xff] }
 0x83d   :  { %v5794_v20 = vpop.eup %5793 }
 0x83e   :  { %v1199_v15 = vadd.f32 1.0, %v5794_v20  ;;  %v6942_v20 = vld [vmem:[#allocation4 + $0xd0] sm:$0xff] }
 0x83f   :  { %v5796_v27 = vpop.eup %5795 }
 0x840   :  { %v1200_v16 = vmul.f32 0.5, %v1199_v15  ;;  %v1207_v33 = vadd.f32 1.0, %v5796_v27  ;;  %v6948_v15 = vld [vmem:[#allocation4 + $0xb8] sm:$0xff]  ;;  %v6978_v27 = vld [vmem:[#allocation4 + $0x40] sm:$0xff] }
 0x841   :  { %9020 = vst [vmem:[#allocation15_spill] sm:$0xff] %v6978_v27 }
 0x842   :  { %v1212_v34 = vmul.f32 %v1210_v0, %v1200_v16  ;;  %v1208_v29 = vmul.f32 0.5, %v1207_v33  ;;  %v6954_v16 = vld [vmem:[#allocation4 + $0xa0] sm:$0xff]  ;;  %v6960_v0 = vld [vmem:[#allocation4 + $0x88] sm:$0xff] }
 0x843   :  { %v6984_v33 = vld [vmem:[#allocation4 + $0x28] sm:$0xff] }
 0x844   :  { %v1213_v24 = vadd.f32 %v1212_v34, %v6504_v17  ;;  %v1215_v4 = vsub.f32 1.0, %v1208_v29  ;;  %v1219_v6 = vmul.f32 %v1217_v43, %v1208_v29  ;;  %v6966_v34 = vld [vmem:[#allocation4 + $0x70] sm:$0xff]  ;;  %9021 = vst [vmem:[#allocation27_spill] sm:$0xff] %v6984_v33 }
 0x845   :  { %v6991_v29 = vld [vmem:[#allocation4 + $0x10] sm:$0xff] }
 0x846   :  { %5797 = vtanh.f32 %v1213_v24  ;;  %v6972_v24 = vld [vmem:[#allocation4 + $0x58] sm:$0xff]  ;;  %9022 = vst [vmem:[#allocation28_spill] sm:$0xff] %v6991_v29 }
 0x853   :  { %v5798_v5 = vpop.eup %5797 }
 0x854   :  { %v1216_v7 = vmul.f32 %v5798_v5, %v1215_v4 }
 0x856   :  { %v6892_v8 = vadd.f32 %v1219_v6, %v1216_v7 }
 0x858   :  { %v6895_v46 = vrot.slane %v6892_v8, 4 }
 0x85a   :  { %9019 = vst [vmem:[#allocation12_spill] sm:$0xff] %v6895_v46  ;;  %1289 = vmatmul.mubr.f32.vlgmr.msra.gmra.mxu0 %v6895_v46  ;;  %5079 = vmatmul.mubr.f32.vlgmr.msra.gmra.mxu1 %v6895_v46 }
 0x85b   :  { %1397 = vmatpush1.msra.mxu0 %v6756_v18  ;;  %5082 = vmatpush3.msra.mxu1 %v6900_v9 }
 0x85c   :  { %1398 = vmatprep.subr.mxu0 %v6760_v22  ;;  %5083 = vmatprep.subr.mxu1 %v8985_v25 }
 0x85d   :  { %1399 = vmatpush1.msra.mxu0 %v6764_v21  ;;  %5084 = vmatpush3.msra.mxu1 %v6906_v31 }
 0x85e   :  { %1400 = vmatprep.subr.mxu0 %v6768_v30  ;;  %5085 = vmatprep.subr.mxu1 %v8985_v25 }
 0x85f   :  { %1401 = vmatpush1.msra.mxu0 %v6772_v42  ;;  %5086 = vmatpush3.msra.mxu1 %v6912_v10 }
 0x860   :  { %1402 = vmatprep.subr.mxu0 %v6776_v36  ;;  %5087 = vmatprep.subr.mxu1 %v8985_v25 }
 0x861   :  { %1403 = vmatpush1.msra.mxu0 %v6780_v32  ;;  %5088 = vmatpush3.msra.mxu1 %v6918_v49 }
 0x862   :  { %1404 = vmatprep.subr.mxu0 %v6784_v37  ;;  %5089 = vmatprep.subr.mxu1 %v8985_v25 }
 0x863   :  { %1405 = vmatpush1.msra.mxu0 %v6788_v44  ;;  %5090 = vmatpush3.msra.mxu1 %v6924_v11 }
 0x864   :  { %1406 = vmatprep.subr.mxu0 %v6792_v38  ;;  %5091 = vmatprep.subr.mxu1 %v8985_v25 }
 0x865   :  { %1407 = vmatpush1.msra.mxu0 %v6796_v45  ;;  %5092 = vmatpush3.msra.mxu1 %v6930_v13 }
 0x866   :  { %1408 = vmatprep.subr.mxu0 %v6800_v39  ;;  %5093 = vmatprep.subr.mxu1 %v8985_v25 }
 0x867   :  { %1409 = vmatpush1.msra.mxu0 %v6804_v47  ;;  %5094 = vmatpush3.msra.mxu1 %v6936_v14 }
 0x868   :  { %1410 = vmatprep.subr.mxu0 %v6808_v40  ;;  %5095 = vmatprep.subr.mxu1 %v8985_v25 }
 0x869   :  { %1411 = vmatpush1.msra.mxu0 %v6812_v48  ;;  %5096 = vmatpush3.msra.mxu1 %v6942_v20 }
 0x86a   :  { %1412 = vmatprep.subr.mxu0 %v6816_v41  ;;  %5097 = vmatprep.subr.mxu1 %v8985_v25 }
 0x86b   :  { %1413 = vmatpush1.msra.mxu0 %v6820_v51  ;;  %5098 = vmatpush3.msra.mxu1 %v6948_v15 }
 0x86c   :  { %1414 = vmatprep.subr.mxu0 %v6824_v52  ;;  %5099 = vmatprep.subr.mxu1 %v8985_v25 }
 0x86d   :  { %1415 = vmatpush1.msra.mxu0 %v6828_v53  ;;  %5100 = vmatpush3.msra.mxu1 %v6954_v16 }
 0x86e   :  { %1416 = vmatprep.subr.mxu0 %v6832_v54  ;;  %5101 = vmatprep.subr.mxu1 %v8985_v25 }
 0x86f   :  { %1417 = vmatpush1.msra.mxu0 %v6836_v58  ;;  %5102 = vmatpush3.msra.mxu1 %v6960_v0 }
 0x870   :  { %1418 = vmatprep.subr.mxu0 %v6840_v56  ;;  %5103 = vmatprep.subr.mxu1 %v8985_v25 }
 0x871   :  { %1419 = vmatpush1.msra.mxu0 %v6844_v60  ;;  %5104 = vmatpush3.msra.mxu1 %v6966_v34 }
 0x872   :  { %1420 = vmatprep.subr.mxu0 %v6848_v57  ;;  %5105 = vmatprep.subr.mxu1 %v8985_v25 }
 0x873   :  { %1421 = vmatpush1.msra.mxu0 %v6852_v63  ;;  %5106 = vmatpush3.msra.mxu1 %v6972_v24 }
 0x874   :  { %1422 = vmatprep.subr.mxu0 %v6856_v59  ;;  %5107 = vmatprep.subr.mxu1 %v8985_v25 }
 0x875   :  { %1423 = vmatpush1.msra.mxu0 %v6860_v1  ;;  %5108 = vmatpush3.msra.mxu1 %v6978_v27 }
 0x876   :  { %1424 = vmatprep.subr.mxu0 %v6864_v61  ;;  %5109 = vmatprep.subr.mxu1 %v8985_v25 }
 0x877   :  { %1425 = vmatpush1.msra.mxu0 %v6868_v2  ;;  %5110 = vmatpush3.msra.mxu1 %v6984_v33 }
 0x878   :  { %1426 = vmatprep.subr.mxu0 %v6872_v62  ;;  %5111 = vmatprep.subr.mxu1 %v8985_v25 }
 0x879   :  { %1427 = vmatpush1.msra.mxu0 %v6876_v3  ;;  %1460 = vmatprep.mubr.f32.mxu0 %v8985_v25 }
 0x87a   :  { %5112 = vmatpush3.msra.mxu1 %v6991_v29  ;;  %5113 = vmatprep.mubr.msk.f32.mxu1 %vm6157_vm2, %v8985_v25 }
 0x87b   :  { %1568 = vmatprep.subr.mxu0 %v6738_v50  ;;  %5116 = vmatprep.subr.mxu1 %v8985_v25 }
 0x91a   :  { %v1290_v43 = vpop.f32.mrf.mxu0  ;;  %v1361_v4 = vpop.f32.mrf.mxu1 }
 0x91b   :  { %v1291_v5 = vadd.f32 %v1290_v43, %v9013_v55  ;;  %v1362_v50 = vadd.f32 %v1361_v4, %v6500_v35 }
 0x91c   :  { %v1292_v6 = vpop.f32.mrf.mxu0  ;;  %v5080_v7 = vpop.f32.mrf.mxu1 }
 0x91d   :  { %v1366_v46 = vrot.slane %v1291_v5, 3  ;;  %v1293_v19 = vadd.f32 %v1292_v6, %v8992_v23  ;;  %v1382_v43 = vrot.slane %v1362_v50, 3  ;;  %v7113_v50 = vld [vmem:[#allocation2 + $0x2c8] sm:$0xff] }
 0x91f   :  { %v1368_v12 = vadd.f32 %v1366_v46, %v8993_v26  ;;  %v1374_v29 = vrot.slane %v1293_v19, 3 }
 0x921   :  { %v1369_v3 = vmul.f32 0.5, %v1368_v12  ;;  %v1376_v62 = vadd.f32 %v1374_v29, %v8994_v28  ;;  %v1389_v12 = vrot.slane %v6892_v8, 7 }
 0x923   :  { %5799 = vtanh.f32 %v1369_v3  ;;  %v1377_v33 = vmul.f32 0.5, %v1376_v62 }
 0x925   :  { %5801 = vtanh.f32 %v1377_v33 }
 0x930   :  { %v5800_v2 = vpop.eup %5799 }
 0x931   :  { %v1371_v61 = vadd.f32 1.0, %v5800_v2 }
 0x932   :  { %v5802_v6 = vpop.eup %5801 }
 0x933   :  { %v1372_v27 = vmul.f32 0.5, %v1371_v61  ;;  %v1379_v7 = vadd.f32 1.0, %v5802_v6  ;;  %v7123_v6 = vld [vmem:[#allocation2 + $0x2b0] sm:$0xff] }
 0x935   :  { %v1384_v55 = vmul.f32 %v1382_v43, %v1372_v27  ;;  %v1380_v46 = vmul.f32 0.5, %v1379_v7  ;;  %v7111_v27 = vld [vmem:[#allocation2 + $0x2b8] sm:$0xff]  ;;  %v7117_v43 = vld [vmem:[#allocation2 + $0x2a8] sm:$0xff]  ;;  %v7127_v7 = vld [vmem:[#allocation2 + $0x290] sm:$0xff] }
 0x937   :  { %v1385_v5 = vadd.f32 %v1384_v55, %v6504_v17  ;;  %v1387_v19 = vsub.f32 1.0, %v1380_v46  ;;  %v1391_v29 = vmul.f32 %v1389_v12, %v1380_v46  ;;  %v9024_v55 = vld [vmem:[#allocation15_spill] sm:$0xff]  ;;  %v7131_v46 = vld [vmem:[#allocation2 + $0x288] sm:$0xff] }
 0x938   :  { %v7133_v12 = vld [vmem:[#allocation2 + $0x298] sm:$0xff] }
 0x939   :  { %5803 = vtanh.f32 %v1385_v5  ;;  %v7121_v5 = vld [vmem:[#allocation2 + $0x2a0] sm:$0xff] }
 0x946   :  { %v5804_v3 = vpop.eup %5803 }
 0x947   :  { %v1388_v62 = vmul.f32 %v5804_v3, %v1387_v19  ;;  %v7137_v19 = vld [vmem:[#allocation2 + $0x278] sm:$0xff]  ;;  %v7141_v3 = vld [vmem:[#allocation2 + $0x270] sm:$0xff] }
 0x949   :  { %v7005_v33 = vadd.f32 %v1391_v29, %v1388_v62  ;;  %v7143_v29 = vld [vmem:[#allocation2 + $0x280] sm:$0xff] }
 0x94a   :  { %v7147_v62 = vld [vmem:[#allocation2 + $0x260] sm:$0xff] }
 0x94b   :  { %v7008_v4 = vrot.slane %v7005_v33, 5 }
 0x94d   :  { %9023 = vst [vmem:[#allocation29_spill] sm:$0xff] %v7008_v4  ;;  %1461 = vmatmul.mubr.f32.vlgmr.msra.gmra.mxu0 %v7008_v4  ;;  %5114 = vmatmul.mubr.f32.vlgmr.msra.gmra.mxu1 %v7008_v4  ;;  %v7272_v4 = vld [vmem:[#allocation4 + $0x2c0] sm:$0xff] }
 0x94e   :  { %1569 = vmatpush1.msra.mxu0 %v6756_v18  ;;  %5117 = vmatpush3.msra.mxu1 %v6900_v9  ;;  %v9025_v18 = vld [vmem:[#allocation9_spill] sm:$0xff]  ;;  %v1561_v9 = vrot.slane %v7005_v33, 7  ;;  %v7151_v33 = vld [vmem:[#allocation2 + $0x258] sm:$0xff]  ;;  %9049 = vst [vmem:[#allocation38_spill] sm:$0xff] %v7272_v4 }
 0x94f   :  { %1570 = vmatprep.subr.mxu0 %v6760_v22  ;;  %5118 = vmatprep.subr.mxu1 %v8985_v25  ;;  %v9026_v22 = vld [vmem:[#allocation10_spill] sm:$0xff] }
 0x950   :  { %1571 = vmatpush1.msra.mxu0 %v6764_v21  ;;  %5119 = vmatpush3.msra.mxu1 %v6906_v31  ;;  %v9027_v21 = vld [vmem:[#allocation27_spill] sm:$0xff] }
 0x951   :  { %1572 = vmatprep.subr.mxu0 %v6768_v30  ;;  %5120 = vmatprep.subr.mxu1 %v8985_v25  ;;  %v9028_v30 = vld [vmem:[#allocation14_spill] sm:$0xff] }
 0x952   :  { %1573 = vmatpush1.msra.mxu0 %v6772_v42  ;;  %5121 = vmatpush3.msra.mxu1 %v6912_v10  ;;  %v9029_v42 = vld [vmem:[#allocation11_spill] sm:$0xff] }
 0x953   :  { %1574 = vmatprep.subr.mxu0 %v6776_v36  ;;  %5122 = vmatprep.subr.mxu1 %v8985_v25  ;;  %v9030_v36 = vld [vmem:[#allocation28_spill] sm:$0xff] }
 0x954   :  { %1575 = vmatpush1.msra.mxu0 %v6780_v32  ;;  %5123 = vmatpush3.msra.mxu1 %v6918_v49  ;;  %v7078_v32 = vld [vmem:[#allocation2 + $0x2f0] sm:$0xff] }
 0x955   :  { %1576 = vmatprep.subr.mxu0 %v6784_v37  ;;  %5124 = vmatprep.subr.mxu1 %v8985_v25 }
 0x956   :  { %1577 = vmatpush1.msra.mxu0 %v6788_v44  ;;  %5125 = vmatpush3.msra.mxu1 %v6924_v11 }
 0x957   :  { %1578 = vmatprep.subr.mxu0 %v6792_v38  ;;  %5126 = vmatprep.subr.mxu1 %v8985_v25  ;;  %v9031_v38 = vld [vmem:[#allocation17_spill] sm:$0xff] }
 0x958   :  { %1579 = vmatpush1.msra.mxu0 %v6796_v45  ;;  %5127 = vmatpush3.msra.mxu1 %v6930_v13 }
 0x959   :  { %1580 = vmatprep.subr.mxu0 %v6800_v39  ;;  %5128 = vmatprep.subr.mxu1 %v8985_v25 }
 0x95a   :  { %1581 = vmatpush1.msra.mxu0 %v6804_v47  ;;  %5129 = vmatpush3.msra.mxu1 %v6936_v14 }
 0x95b   :  { %1582 = vmatprep.subr.mxu0 %v6808_v40  ;;  %5130 = vmatprep.subr.mxu1 %v8985_v25 }
 0x95c   :  { %1583 = vmatpush1.msra.mxu0 %v6812_v48  ;;  %5131 = vmatpush3.msra.mxu1 %v6942_v20  ;;  %v7093_v20 = vld [vmem:[#allocation2 + $0x2e8] sm:$0xff] }
 0x95d   :  { %1584 = vmatprep.subr.mxu0 %v6816_v41  ;;  %5132 = vmatprep.subr.mxu1 %v8985_v25 }
 0x95e   :  { %1585 = vmatpush1.msra.mxu0 %v6820_v51  ;;  %5133 = vmatpush3.msra.mxu1 %v6948_v15  ;;  %v7095_v15 = vld [vmem:[#allocation2 + $0x2f8] sm:$0xff] }
 0x95f   :  { %1586 = vmatprep.subr.mxu0 %v6824_v52  ;;  %5134 = vmatprep.subr.mxu1 %v8985_v25 }
 0x960   :  { %1587 = vmatpush1.msra.mxu0 %v6828_v53  ;;  %5135 = vmatpush3.msra.mxu1 %v6954_v16  ;;  %v7097_v16 = vld [vmem:[#allocation2 + $0x2d8] sm:$0xff] }
 0x961   :  { %1588 = vmatprep.subr.mxu0 %v6832_v54  ;;  %5136 = vmatprep.subr.mxu1 %v8985_v25 }
 0x962   :  { %1589 = vmatpush1.msra.mxu0 %v6836_v58  ;;  %5137 = vmatpush3.msra.mxu1 %v6960_v0  ;;  %v7101_v0 = vld [vmem:[#allocation2 + $0x2d0] sm:$0xff] }
 0x963   :  { %1590 = vmatprep.subr.mxu0 %v6840_v56  ;;  %5138 = vmatprep.subr.mxu1 %v8985_v25 }
 0x964   :  { %1591 = vmatpush1.msra.mxu0 %v6844_v60  ;;  %5139 = vmatpush3.msra.mxu1 %v6966_v34  ;;  %v7103_v34 = vld [vmem:[#allocation2 + $0x2e0] sm:$0xff] }
 0x965   :  { %1592 = vmatprep.subr.mxu0 %v6848_v57  ;;  %5140 = vmatprep.subr.mxu1 %v8985_v25 }
 0x966   :  { %1593 = vmatpush1.msra.mxu0 %v6852_v63  ;;  %5141 = vmatpush3.msra.mxu1 %v6972_v24  ;;  %v7107_v24 = vld [vmem:[#allocation2 + $0x2c0] sm:$0xff] }
 0x967   :  { %1594 = vmatprep.subr.mxu0 %v6856_v59  ;;  %5142 = vmatprep.subr.mxu1 %v8985_v25 }
 0x968   :  { %1595 = vmatpush1.msra.mxu0 %v6860_v1  ;;  %5143 = vmatpush3.msra.mxu1 %v9024_v55  ;;  %v7153_v55 = vld [vmem:[#allocation2 + $0x268] sm:$0xff] }
 0x969   :  { %1596 = vmatprep.subr.mxu0 %v9025_v18  ;;  %5144 = vmatprep.subr.mxu1 %v8985_v25  ;;  %v7157_v18 = vld [vmem:[#allocation2 + $0x248] sm:$0xff] }
 0x96a   :  { %1597 = vmatpush1.msra.mxu0 %v9026_v22  ;;  %5145 = vmatpush3.msra.mxu1 %v9027_v21  ;;  %v7161_v22 = vld [vmem:[#allocation2 + $0x240] sm:$0xff]  ;;  %v7163_v21 = vld [vmem:[#allocation2 + $0x250] sm:$0xff] }
 0x96b   :  { %1598 = vmatprep.subr.mxu0 %v9028_v30  ;;  %5146 = vmatprep.subr.mxu1 %v8985_v25  ;;  %v7167_v30 = vld [vmem:[#allocation2 + $0x230] sm:$0xff] }
 0x96c   :  { %1599 = vmatpush1.msra.mxu0 %v9029_v42  ;;  %5147 = vmatpush3.msra.mxu1 %v9030_v36  ;;  %v7171_v42 = vld [vmem:[#allocation2 + $0x228] sm:$0xff]  ;;  %v7173_v36 = vld [vmem:[#allocation2 + $0x238] sm:$0xff] }
 0x96d   :  { %1632 = vmatprep.mubr.f32.mxu0 %v8985_v25  ;;  %5148 = vmatprep.mubr.msk.f32.mxu1 %vm6157_vm2, %v8985_v25 }
 0x96e   :  { %5151 = vmatprep.subr.mxu1 %v8985_v25  ;;  %1855 = vmatprep.subr.mxu0 %v7078_v32 }
 0xa0d   :  { %v1462_v37 = vpop.f32.mrf.mxu0  ;;  %v1533_v44 = vpop.f32.mrf.mxu1 }
 0xa0e   :  { %v1463_v45 = vadd.f32 %v1462_v37, %v9031_v38  ;;  %v1534_v58 = vadd.f32 %v1533_v44, %v6500_v35  ;;  %v7177_v37 = vld [vmem:[#allocation2 + $0x218] sm:$0xff]  ;;  %v7181_v44 = vld [vmem:[#allocation2 + $0x210] sm:$0xff]  ;;  %v7286_v35 = vld [vmem:[#allocation4 + $0x2a0] sm:$0xff] }
 0xa0f   :  { %v1464_v39 = vpop.f32.mrf.mxu0  ;;  %v5115_v47 = vpop.f32.mrf.mxu1  ;;  %9053 = vst [vmem:[#allocation42_spill] sm:$0xff] %v7286_v35  ;;  %v7298_v38 = vld [vmem:[#allocation4 + $0x298] sm:$0xff] }
 0xa10   :  { %v1538_v40 = vrot.slane %v1463_v45, 2  ;;  %v1465_v48 = vadd.f32 %v1464_v39, %v8992_v23  ;;  %v1554_v63 = vrot.slane %v1534_v58, 2  ;;  %v7183_v45 = vld [vmem:[#allocation2 + $0x220] sm:$0xff]  ;;  %v7191_v47 = vld [vmem:[#allocation2 + $0x1f8] sm:$0xff]  ;;  %v7296_v23 = vld [vmem:[#allocation4 + $0x288] sm:$0xff]  ;;  %9057 = vst [vmem:[#allocation46_spill] sm:$0xff] %v7298_v38 }
 0xa11   :  { %v7187_v39 = vld [vmem:[#allocation2 + $0x200] sm:$0xff]  ;;  %v7217_v58 = vld [vmem:[#allocation2 + $0x1b8] sm:$0xff]  ;;  %9056 = vst [vmem:[#allocation45_spill] sm:$0xff] %v7296_v23 }
 0xa12   :  { %v1540_v41 = vadd.f32 %v1538_v40, %v8993_v26  ;;  %v1546_v52 = vrot.slane %v1465_v48, 2  ;;  %v7193_v40 = vld [vmem:[#allocation2 + $0x208] sm:$0xff]  ;;  %v7292_v26 = vld [vmem:[#allocation4 + $0x290] sm:$0xff] }
 0xa13   :  { %v7197_v48 = vld [vmem:[#allocation2 + $0x1e8] sm:$0xff]  ;;  %9055 = vst [vmem:[#allocation44_spill] sm:$0xff] %v7292_v26 }
 0xa14   :  { %v1541_v51 = vmul.f32 0.5, %v1540_v41  ;;  %v1548_v53 = vadd.f32 %v1546_v52, %v8994_v28  ;;  %v7201_v41 = vld [vmem:[#allocation2 + $0x1e0] sm:$0xff]  ;;  %v7207_v52 = vld [vmem:[#allocation2 + $0x1d0] sm:$0xff] }
 0xa15   :  { %v7288_v28 = vld [vmem:[#allocation4 + $0x2b0] sm:$0xff] }
 0xa16   :  { %5805 = vtanh.f32 %v1541_v51  ;;  %v1549_v54 = vmul.f32 0.5, %v1548_v53  ;;  %v7203_v51 = vld [vmem:[#allocation2 + $0x1f0] sm:$0xff]  ;;  %v7211_v53 = vld [vmem:[#allocation2 + $0x1c8] sm:$0xff]  ;;  %9054 = vst [vmem:[#allocation43_spill] sm:$0xff] %v7288_v28 }
 0xa18   :  { %5807 = vtanh.f32 %v1549_v54  ;;  %v7213_v54 = vld [vmem:[#allocation2 + $0x1d8] sm:$0xff] }
 0xa23   :  { %v5806_v56 = vpop.eup %5805 }
 0xa24   :  { %v1543_v60 = vadd.f32 1.0, %v5806_v56  ;;  %v7221_v56 = vld [vmem:[#allocation2 + $0x1b0] sm:$0xff] }
 0xa25   :  { %v5808_v61 = vpop.eup %5807  ;;  %9034 = vst [vmem:[#allocation10_spill] sm:$0xff] %v7221_v56 }
 0xa26   :  { %v1544_v57 = vmul.f32 0.5, %v1543_v60  ;;  %v1551_v2 = vadd.f32 1.0, %v5808_v61  ;;  %v7223_v60 = vld [vmem:[#allocation2 + $0x1c0] sm:$0xff] }
 0xa27   :  { %9035 = vst [vmem:[#allocation27_spill] sm:$0xff] %v7223_v60  ;;  %v7241_v61 = vld [vmem:[#allocation2 + $0x180] sm:$0xff] }
 0xa28   :  { %v1556_v59 = vmul.f32 %v1554_v63, %v1544_v57  ;;  %v1552_v8 = vmul.f32 0.5, %v1551_v2  ;;  %v7227_v57 = vld [vmem:[#allocation2 + $0x1a0] sm:$0xff]  ;;  %v7231_v63 = vld [vmem:[#allocation2 + $0x198] sm:$0xff]  ;;  %9040 = vst [vmem:[#allocation31_spill] sm:$0xff] %v7241_v61  ;;  %v7245_v2 = vld [vmem:[#allocation2 + $0x190] sm:$0xff] }
 0xa29   :  { %9036 = vst [vmem:[#allocation14_spill] sm:$0xff] %v7227_v57  ;;  %9037 = vst [vmem:[#allocation11_spill] sm:$0xff] %v7231_v63 }
 0xa2a   :  { %v1557_v1 = vadd.f32 %v1556_v59, %v6504_v17  ;;  %v1559_v31 = vsub.f32 1.0, %v1552_v8  ;;  %v1563_v49 = vmul.f32 %v1561_v9, %v1552_v8  ;;  %v7233_v59 = vld [vmem:[#allocation2 + $0x1a8] sm:$0xff]  ;;  %9041 = vst [vmem:[#allocation32_spill] sm:$0xff] %v7245_v2  ;;  %v7251_v8 = vld [vmem:[#allocation4 + $0x2f0] sm:$0xff] }
 0xa2b   :  { %9038 = vst [vmem:[#allocation28_spill] sm:$0xff] %v7233_v59  ;;  %9042 = vst [vmem:[#allocation33_spill] sm:$0xff] %v7251_v8  ;;  %v7256_v9 = vld [vmem:[#allocation4 + $0x2e8] sm:$0xff] }
 0xa2c   :  { %5809 = vtanh.f32 %v1557_v1  ;;  %v7237_v1 = vld [vmem:[#allocation2 + $0x188] sm:$0xff]  ;;  %9043 = vst [vmem:[#allocation34_spill] sm:$0xff] %v7256_v9 }
 0xa2d   :  { %9039 = vst [vmem:[#allocation30_spill] sm:$0xff] %v7237_v1  ;;  %v7278_v17 = vld [vmem:[#allocation4 + $0x2c8] sm:$0xff] }
 0xa2e   :  { %9051 = vst [vmem:[#allocation40_spill] sm:$0xff] %v7278_v17 }
 0xa39   :  { %v5810_v10 = vpop.eup %5809 }
 0xa3a   :  { %v1560_v11 = vmul.f32 %v5810_v10, %v1559_v31  ;;  %v7258_v31 = vld [vmem:[#allocation4 + $0x2f8] sm:$0xff]  ;;  %v9045_v10 = vld [vmem:[#allocation25_spill] sm:$0xff] }
 0xa3b   :  { %9044 = vst [vmem:[#allocation35_spill] sm:$0xff] %v7258_v31 }
 0xa3c   :  { %v7088_v13 = vadd.f32 %v1563_v49, %v1560_v11  ;;  %v7262_v49 = vld [vmem:[#allocation4 + $0x2d8] sm:$0xff]  ;;  %v7266_v11 = vld [vmem:[#allocation4 + $0x2d0] sm:$0xff] }
 0xa3d   :  { %9046 = vst [vmem:[#allocation25_spill] sm:$0xff] %v7262_v49  ;;  %9047 = vst [vmem:[#allocation36_spill] sm:$0xff] %v7266_v11 }
 0xa3e   :  { %9032 = vst [vmem:[#allocation15_spill] sm:$0xff] %v7088_v13  ;;  %v7091_v14 = vrot.slane %v7088_v13, 6  ;;  %v7282_v13 = vld [vmem:[#allocation4 + $0x2a8] sm:$0xff] }
 0xa3f   :  { %9052 = vst [vmem:[#allocation41_spill] sm:$0xff] %v7282_v13 }
 0xa40   :  { %9033 = vst [vmem:[#allocation9_spill] sm:$0xff] %v7091_v14  ;;  %1633 = vmatmul.mubr.f32.vlgmr.msra.gmra.mxu0 %v7091_v14  ;;  %5149 = vmatmul.mubr.f32.vlgmr.msra.gmra.mxu1 %v7091_v14  ;;  %v7268_v14 = vld [vmem:[#allocation4 + $0x2e0] sm:$0xff] }
 0xa41   :  { %1856 = vmatpush1.msra.mxu0 %v7093_v20  ;;  %5152 = vmatpush3.msra.mxu1 %v7095_v15  ;;  %9048 = vst [vmem:[#allocation37_spill] sm:$0xff] %v7268_v14 }
 0xa42   :  { %1857 = vmatprep.subr.mxu0 %v7097_v16  ;;  %5153 = vmatprep.subr.mxu1 %v8985_v25 }
 0xa43   :  { %1858 = vmatpush1.msra.mxu0 %v7101_v0  ;;  %5154 = vmatpush3.msra.mxu1 %v7103_v34 }
 0xa44   :  { %1859 = vmatprep.subr.mxu0 %v7107_v24  ;;  %5155 = vmatprep.subr.mxu1 %v8985_v25 }
 0xa45   :  { %1860 = vmatpush1.msra.mxu0 %v7111_v27  ;;  %5156 = vmatpush3.msra.mxu1 %v7113_v50 }
 0xa46   :  { %1861 = vmatprep.subr.mxu0 %v7117_v43  ;;  %5157 = vmatprep.subr.mxu1 %v8985_v25 }
 0xa47   :  { %1862 = vmatpush1.msra.mxu0 %v7121_v5  ;;  %5158 = vmatpush3.msra.mxu1 %v7123_v6 }
 0xa48   :  { %1863 = vmatprep.subr.mxu0 %v7127_v7  ;;  %5159 = vmatprep.subr.mxu1 %v8985_v25 }
 0xa49   :  { %1864 = vmatpush1.msra.mxu0 %v7131_v46  ;;  %5160 = vmatpush3.msra.mxu1 %v7133_v12 }
 0xa4a   :  { %1865 = vmatprep.subr.mxu0 %v7137_v19  ;;  %5161 = vmatprep.subr.mxu1 %v8985_v25 }
 0xa4b   :  { %1866 = vmatpush1.msra.mxu0 %v7141_v3  ;;  %5162 = vmatpush3.msra.mxu1 %v7143_v29 }
 0xa4c   :  { %1867 = vmatprep.subr.mxu0 %v7147_v62  ;;  %5163 = vmatprep.subr.mxu1 %v8985_v25 }
 0xa4d   :  { %1868 = vmatpush1.msra.mxu0 %v7151_v33  ;;  %5164 = vmatpush3.msra.mxu1 %v7153_v55 }
 0xa4e   :  { %1869 = vmatprep.subr.mxu0 %v7157_v18  ;;  %5165 = vmatprep.subr.mxu1 %v8985_v25 }
 0xa4f   :  { %1870 = vmatpush1.msra.mxu0 %v7161_v22  ;;  %5166 = vmatpush3.msra.mxu1 %v7163_v21 }
 0xa50   :  { %1871 = vmatprep.subr.mxu0 %v7167_v30  ;;  %5167 = vmatprep.subr.mxu1 %v8985_v25 }
 0xa51   :  { %1872 = vmatpush1.msra.mxu0 %v7171_v42  ;;  %5168 = vmatpush3.msra.mxu1 %v7173_v36 }
 0xa52   :  { %1873 = vmatprep.subr.mxu0 %v7177_v37  ;;  %5169 = vmatprep.subr.mxu1 %v8985_v25 }
 0xa53   :  { %1874 = vmatpush1.msra.mxu0 %v7181_v44  ;;  %5170 = vmatpush3.msra.mxu1 %v7183_v45 }
 0xa54   :  { %1875 = vmatprep.subr.mxu0 %v7187_v39  ;;  %5171 = vmatprep.subr.mxu1 %v8985_v25 }
 0xa55   :  { %1876 = vmatpush1.msra.mxu0 %v7191_v47  ;;  %5172 = vmatpush3.msra.mxu1 %v7193_v40 }
 0xa56   :  { %1877 = vmatprep.subr.mxu0 %v7197_v48  ;;  %5173 = vmatprep.subr.mxu1 %v8985_v25 }
 0xa57   :  { %1878 = vmatpush1.msra.mxu0 %v7201_v41  ;;  %5174 = vmatpush3.msra.mxu1 %v7203_v51 }
 0xa58   :  { %1879 = vmatprep.subr.mxu0 %v7207_v52  ;;  %5175 = vmatprep.subr.mxu1 %v8985_v25 }
 0xa59   :  { %1880 = vmatpush1.msra.mxu0 %v7211_v53  ;;  %5176 = vmatpush3.msra.mxu1 %v7213_v54 }
 0xa5a   :  { %1881 = vmatprep.subr.mxu0 %v7217_v58  ;;  %5177 = vmatprep.subr.mxu1 %v8985_v25 }
 0xa5b   :  { %1882 = vmatpush1.msra.mxu0 %v7221_v56  ;;  %5178 = vmatpush3.msra.mxu1 %v7223_v60 }
 0xa5c   :  { %1883 = vmatprep.subr.mxu0 %v7227_v57  ;;  %5179 = vmatprep.subr.mxu1 %v8985_v25 }
 0xa5d   :  { %1884 = vmatpush1.msra.mxu0 %v7231_v63  ;;  %5180 = vmatpush3.msra.mxu1 %v7233_v59 }
 0xa5e   :  { %1885 = vmatprep.subr.mxu0 %v7237_v1  ;;  %5181 = vmatprep.subr.mxu1 %v8985_v25 }
 0xa5f   :  { %1886 = vmatpush1.msra.mxu0 %v7241_v61  ;;  %1919 = vmatprep.mubr.f32.mxu0 %v8985_v25 }
 0xa60   :  { %5182 = vmatpush3.msra.mxu1 %v7245_v2  ;;  %5183 = vmatprep.mubr.msk.f32.mxu1 %vm6157_vm2, %v8985_v25 }
 0xa61   :  { %1920 = vmatmul.mubr.f32.vlgmr.msra.gmra.mxu0 %v9045_v10  ;;  %5184 = vmatmul.mubr.f32.vlgmr.msra.gmra.mxu1 %v9045_v10  ;;  %v7276_v10 = vld [vmem:[#allocation4 + $0x2b8] sm:$0xff] }
 0xa62   :  { %2012 = vmatprep.subr.mxu0 %v7251_v8  ;;  %5186 = vmatprep.subr.mxu1 %v8985_v25  ;;  %9050 = vst [vmem:[#allocation39_spill] sm:$0xff] %v7276_v10 }
 0xa63   :  { %2013 = vmatpush1.msra.mxu0 %v7256_v9  ;;  %5187 = vmatpush3.msra.mxu1 %v7258_v31 }
 0xa64   :  { %2014 = vmatprep.subr.mxu0 %v7262_v49  ;;  %5188 = vmatprep.subr.mxu1 %v8985_v25 }
 0xa65   :  { %2015 = vmatpush1.msra.mxu0 %v7266_v11  ;;  %5189 = vmatpush3.msra.mxu1 %v7268_v14 }
 0xa66   :  { %2016 = vmatprep.subr.mxu0 %v7272_v4  ;;  %5190 = vmatprep.subr.mxu1 %v8985_v25  ;;  %v7302_v4 = vld [vmem:[#allocation4 + $0x278] sm:$0xff] }
 0xa67   :  { %2017 = vmatpush1.msra.mxu0 %v7276_v10  ;;  %5191 = vmatpush3.msra.mxu1 %v7278_v17  ;;  %9058 = vst [vmem:[#allocation47_spill] sm:$0xff] %v7302_v4  ;;  %v7306_v17 = vld [vmem:[#allocation4 + $0x270] sm:$0xff]  ;;  %v7308_v10 = vld [vmem:[#allocation4 + $0x280] sm:$0xff] }
 0xa68   :  { %2018 = vmatprep.subr.mxu0 %v7282_v13  ;;  %5192 = vmatprep.subr.mxu1 %v8985_v25  ;;  %9059 = vst [vmem:[#allocation48_spill] sm:$0xff] %v7306_v17  ;;  %9060 = vst [vmem:[#allocation49_spill] sm:$0xff] %v7308_v10  ;;  %v7312_v13 = vld [vmem:[#allocation4 + $0x260] sm:$0xff] }
 0xa69   :  { %2019 = vmatpush1.msra.mxu0 %v7286_v35  ;;  %5193 = vmatpush3.msra.mxu1 %v7288_v28  ;;  %9061 = vst [vmem:[#allocation50_spill] sm:$0xff] %v7312_v13  ;;  %v7316_v28 = vld [vmem:[#allocation4 + $0x258] sm:$0xff]  ;;  %v7318_v35 = vld [vmem:[#allocation4 + $0x268] sm:$0xff] }
 0xa6a   :  { %2020 = vmatprep.subr.mxu0 %v7292_v26  ;;  %5194 = vmatprep.subr.mxu1 %v8985_v25  ;;  %9062 = vst [vmem:[#allocation51_spill] sm:$0xff] %v7316_v28  ;;  %9063 = vst [vmem:[#allocation52_spill] sm:$0xff] %v7318_v35  ;;  %v7322_v26 = vld [vmem:[#allocation4 + $0x248] sm:$0xff] }
 0xa6b   :  { %2021 = vmatpush1.msra.mxu0 %v7296_v23  ;;  %5195 = vmatpush3.msra.mxu1 %v7298_v38  ;;  %9064 = vst [vmem:[#allocation53_spill] sm:$0xff] %v7322_v26  ;;  %v7326_v38 = vld [vmem:[#allocation4 + $0x240] sm:$0xff]  ;;  %v7328_v23 = vld [vmem:[#allocation4 + $0x250] sm:$0xff] }
 0xa6c   :  { %2022 = vmatprep.subr.mxu0 %v7302_v4  ;;  %5196 = vmatprep.subr.mxu1 %v8985_v25  ;;  %9065 = vst [vmem:[#allocation54_spill] sm:$0xff] %v7326_v38  ;;  %9066 = vst [vmem:[#allocation55_spill] sm:$0xff] %v7328_v23  ;;  %v7332_v4 = vld [vmem:[#allocation4 + $0x230] sm:$0xff] }
 0xa6d   :  { %2023 = vmatpush1.msra.mxu0 %v7306_v17  ;;  %5197 = vmatpush3.msra.mxu1 %v7308_v10  ;;  %9067 = vst [vmem:[#allocation56_spill] sm:$0xff] %v7332_v4  ;;  %v7336_v10 = vld [vmem:[#allocation4 + $0x228] sm:$0xff]  ;;  %v7338_v17 = vld [vmem:[#allocation4 + $0x238] sm:$0xff] }
 0xa6e   :  { %2024 = vmatprep.subr.mxu0 %v7312_v13  ;;  %5198 = vmatprep.subr.mxu1 %v8985_v25  ;;  %9068 = vst [vmem:[#allocation57_spill] sm:$0xff] %v7336_v10  ;;  %9069 = vst [vmem:[#allocation58_spill] sm:$0xff] %v7338_v17  ;;  %v7342_v13 = vld [vmem:[#allocation4 + $0x218] sm:$0xff] }
 0xa6f   :  { %2025 = vmatpush1.msra.mxu0 %v7316_v28  ;;  %5199 = vmatpush3.msra.mxu1 %v7318_v35  ;;  %9070 = vst [vmem:[#allocation59_spill] sm:$0xff] %v7342_v13  ;;  %v7346_v35 = vld [vmem:[#allocation4 + $0x210] sm:$0xff]  ;;  %v7348_v28 = vld [vmem:[#allocation4 + $0x220] sm:$0xff] }
 0xa70   :  { %2026 = vmatprep.subr.mxu0 %v7322_v26  ;;  %5200 = vmatprep.subr.mxu1 %v8985_v25  ;;  %9071 = vst [vmem:[#allocation60_spill] sm:$0xff] %v7346_v35  ;;  %9072 = vst [vmem:[#allocation61_spill] sm:$0xff] %v7348_v28  ;;  %v7352_v26 = vld [vmem:[#allocation4 + $0x200] sm:$0xff] }
 0xa71   :  { %2027 = vmatpush1.msra.mxu0 %v7326_v38  ;;  %5201 = vmatpush3.msra.mxu1 %v7328_v23  ;;  %9073 = vst [vmem:[#allocation62_spill] sm:$0xff] %v7352_v26  ;;  %v7356_v23 = vld [vmem:[#allocation4 + $0x1f8] sm:$0xff]  ;;  %v7358_v38 = vld [vmem:[#allocation4 + $0x208] sm:$0xff] }
 0xa72   :  { %2028 = vmatprep.subr.mxu0 %v7332_v4  ;;  %5202 = vmatprep.subr.mxu1 %v8985_v25  ;;  %9074 = vst [vmem:[#allocation63_spill] sm:$0xff] %v7356_v23  ;;  %9075 = vst [vmem:[#allocation64_spill] sm:$0xff] %v7358_v38  ;;  %v7362_v4 = vld [vmem:[#allocation4 + $0x1e8] sm:$0xff] }
 0xa73   :  { %2029 = vmatpush1.msra.mxu0 %v7336_v10  ;;  %5203 = vmatpush3.msra.mxu1 %v7338_v17  ;;  %9076 = vst [vmem:[#allocation65_spill] sm:$0xff] %v7362_v4  ;;  %v7366_v17 = vld [vmem:[#allocation4 + $0x1e0] sm:$0xff]  ;;  %v7368_v10 = vld [vmem:[#allocation4 + $0x1f0] sm:$0xff] }
 0xa74   :  { %2030 = vmatprep.subr.mxu0 %v7342_v13  ;;  %5204 = vmatprep.subr.mxu1 %v8985_v25  ;;  %9077 = vst [vmem:[#allocation66_spill] sm:$0xff] %v7366_v17  ;;  %9078 = vst [vmem:[#allocation67_spill] sm:$0xff] %v7368_v10  ;;  %v7372_v13 = vld [vmem:[#allocation4 + $0x1d0] sm:$0xff] }
 0xa75   :  { %2031 = vmatpush1.msra.mxu0 %v7346_v35  ;;  %5205 = vmatpush3.msra.mxu1 %v7348_v28  ;;  %9079 = vst [vmem:[#allocation68_spill] sm:$0xff] %v7372_v13  ;;  %v7376_v28 = vld [vmem:[#allocation4 + $0x1c8] sm:$0xff]  ;;  %v7378_v35 = vld [vmem:[#allocation4 + $0x1d8] sm:$0xff] }
 0xa76   :  { %2032 = vmatprep.subr.mxu0 %v7352_v26  ;;  %5206 = vmatprep.subr.mxu1 %v8985_v25  ;;  %9080 = vst [vmem:[#allocation69_spill] sm:$0xff] %v7376_v28  ;;  %9081 = vst [vmem:[#allocation70_spill] sm:$0xff] %v7378_v35  ;;  %v7382_v26 = vld [vmem:[#allocation4 + $0x1b8] sm:$0xff] }
 0xa77   :  { %2033 = vmatpush1.msra.mxu0 %v7356_v23  ;;  %5207 = vmatpush3.msra.mxu1 %v7358_v38  ;;  %9082 = vst [vmem:[#allocation71_spill] sm:$0xff] %v7382_v26  ;;  %v7386_v38 = vld [vmem:[#allocation4 + $0x1b0] sm:$0xff]  ;;  %v7388_v23 = vld [vmem:[#allocation4 + $0x1c0] sm:$0xff] }
 0xa78   :  { %2034 = vmatprep.subr.mxu0 %v7362_v4  ;;  %5208 = vmatprep.subr.mxu1 %v8985_v25  ;;  %9083 = vst [vmem:[#allocation72_spill] sm:$0xff] %v7386_v38  ;;  %9084 = vst [vmem:[#allocation73_spill] sm:$0xff] %v7388_v23  ;;  %v7392_v4 = vld [vmem:[#allocation4 + $0x1a0] sm:$0xff] }
 0xa79   :  { %2035 = vmatpush1.msra.mxu0 %v7366_v17  ;;  %5209 = vmatpush3.msra.mxu1 %v7368_v10  ;;  %9085 = vst [vmem:[#allocation74_spill] sm:$0xff] %v7392_v4  ;;  %v7396_v10 = vld [vmem:[#allocation4 + $0x198] sm:$0xff]  ;;  %v7398_v17 = vld [vmem:[#allocation4 + $0x1a8] sm:$0xff] }
 0xa7a   :  { %2036 = vmatprep.subr.mxu0 %v7372_v13  ;;  %5210 = vmatprep.subr.mxu1 %v8985_v25  ;;  %9086 = vst [vmem:[#allocation75_spill] sm:$0xff] %v7396_v10  ;;  %9087 = vst [vmem:[#allocation76_spill] sm:$0xff] %v7398_v17  ;;  %v7402_v13 = vld [vmem:[#allocation4 + $0x188] sm:$0xff] }
 0xa7b   :  { %2037 = vmatpush1.msra.mxu0 %v7376_v28  ;;  %5211 = vmatpush3.msra.mxu1 %v7378_v35  ;;  %9088 = vst [vmem:[#allocation77_spill] sm:$0xff] %v7402_v13  ;;  %v7406_v35 = vld [vmem:[#allocation4 + $0x180] sm:$0xff] }
 0xa7c   :  { %2038 = vmatprep.subr.mxu0 %v7382_v26  ;;  %5212 = vmatprep.subr.mxu1 %v8985_v25  ;;  %9089 = vst [vmem:[#allocation78_spill] sm:$0xff] %v7406_v35  ;;  %v7410_v26 = vld [vmem:[#allocation4 + $0x190] sm:$0xff] }
 0xa7d   :  { %2039 = vmatpush1.msra.mxu0 %v7386_v38  ;;  %5213 = vmatpush3.msra.mxu1 %v7388_v23  ;;  %9090 = vst [vmem:[#allocation79_spill] sm:$0xff] %v7410_v26 }
 0xa7e   :  { %2040 = vmatprep.subr.mxu0 %v7392_v4  ;;  %5214 = vmatprep.subr.mxu1 %v8985_v25 }
 0xa7f   :  { %2041 = vmatpush1.msra.mxu0 %v7396_v10  ;;  %5215 = vmatpush3.msra.mxu1 %v7398_v17 }
 0xa80   :  { %2042 = vmatprep.subr.mxu0 %v7402_v13  ;;  %5216 = vmatprep.subr.mxu1 %v8985_v25 }
 0xa81   :  { %2043 = vmatpush1.msra.mxu0 %v7406_v35  ;;  %2076 = vmatprep.mubr.f32.mxu0 %v8985_v25 }
 0xa82   :  { %5217 = vmatpush3.msra.mxu1 %v7410_v26  ;;  %2077 = vmatmul.mubr.f32.vlgmr.msra.gmra.mxu0 %v8985_v25 }
 0xa83   :  { %5218 = vmatprep.mubr.msk.f32.mxu1 %vm6157_vm2, %v8985_v25  ;;  %2170 = vmatprep.subr.mxu0 %v7078_v32 }
 0xa84   :  { %5221 = vmatprep.subr.mxu1 %v8985_v25  ;;  %5219 = vmatmul.mubr.f32.vlgmr.msra.gmra.mxu1 %v8985_v25 }
 0xa85   :  { %2171 = vmatpush1.msra.mxu0 %v7093_v20  ;;  %5222 = vmatpush3.msra.mxu1 %v7095_v15 }
 0xa86   :  { %2172 = vmatprep.subr.mxu0 %v7097_v16  ;;  %5223 = vmatprep.subr.mxu1 %v8985_v25 }
 0xa87   :  { %2173 = vmatpush1.msra.mxu0 %v7101_v0  ;;  %5224 = vmatpush3.msra.mxu1 %v7103_v34 }
 0xa88   :  { %2174 = vmatprep.subr.mxu0 %v7107_v24  ;;  %5225 = vmatprep.subr.mxu1 %v8985_v25 }
 0xa89   :  { %2175 = vmatpush1.msra.mxu0 %v7111_v27  ;;  %5226 = vmatpush3.msra.mxu1 %v7113_v50 }
 0xa8a   :  { %2176 = vmatprep.subr.mxu0 %v7117_v43  ;;  %5227 = vmatprep.subr.mxu1 %v8985_v25 }
 0xa8b   :  { %2177 = vmatpush1.msra.mxu0 %v7121_v5  ;;  %5228 = vmatpush3.msra.mxu1 %v7123_v6 }
 0xa8c   :  { %2178 = vmatprep.subr.mxu0 %v7127_v7  ;;  %5229 = vmatprep.subr.mxu1 %v8985_v25 }
 0xa8d   :  { %2179 = vmatpush1.msra.mxu0 %v7131_v46  ;;  %5230 = vmatpush3.msra.mxu1 %v7133_v12 }
 0xa8e   :  { %2180 = vmatprep.subr.mxu0 %v7137_v19  ;;  %5231 = vmatprep.subr.mxu1 %v8985_v25 }
 0xa8f   :  { %2181 = vmatpush1.msra.mxu0 %v7141_v3  ;;  %5232 = vmatpush3.msra.mxu1 %v7143_v29 }
 0xa90   :  { %2182 = vmatprep.subr.mxu0 %v7147_v62  ;;  %5233 = vmatprep.subr.mxu1 %v8985_v25 }
 0xa91   :  { %2183 = vmatpush1.msra.mxu0 %v7151_v33  ;;  %5234 = vmatpush3.msra.mxu1 %v7153_v55 }
 0xa92   :  { %2184 = vmatprep.subr.mxu0 %v7157_v18  ;;  %5235 = vmatprep.subr.mxu1 %v8985_v25 }
 0xa93   :  { %2185 = vmatpush1.msra.mxu0 %v7161_v22  ;;  %5236 = vmatpush3.msra.mxu1 %v7163_v21 }
 0xa94   :  { %2186 = vmatprep.subr.mxu0 %v7167_v30  ;;  %5237 = vmatprep.subr.mxu1 %v8985_v25 }
 0xa95   :  { %2187 = vmatpush1.msra.mxu0 %v7171_v42  ;;  %5238 = vmatpush3.msra.mxu1 %v7173_v36 }
 0xa96   :  { %2188 = vmatprep.subr.mxu0 %v7177_v37  ;;  %5239 = vmatprep.subr.mxu1 %v8985_v25 }
 0xa97   :  { %2189 = vmatpush1.msra.mxu0 %v7181_v44  ;;  %5240 = vmatpush3.msra.mxu1 %v7183_v45 }
 0xa98   :  { %2190 = vmatprep.subr.mxu0 %v7187_v39  ;;  %5241 = vmatprep.subr.mxu1 %v8985_v25 }
 0xa99   :  { %2191 = vmatpush1.msra.mxu0 %v7191_v47  ;;  %5242 = vmatpush3.msra.mxu1 %v7193_v40 }
 0xa9a   :  { %2192 = vmatprep.subr.mxu0 %v7197_v48  ;;  %5243 = vmatprep.subr.mxu1 %v8985_v25 }
 0xa9b   :  { %2193 = vmatpush1.msra.mxu0 %v7201_v41  ;;  %5244 = vmatpush3.msra.mxu1 %v7203_v51 }
 0xa9c   :  { %2194 = vmatprep.subr.mxu0 %v7207_v52  ;;  %5245 = vmatprep.subr.mxu1 %v8985_v25 }
 0xa9d   :  { %2195 = vmatpush1.msra.mxu0 %v7211_v53  ;;  %5246 = vmatpush3.msra.mxu1 %v7213_v54 }
 0xa9e   :  { %2196 = vmatprep.subr.mxu0 %v7217_v58  ;;  %5247 = vmatprep.subr.mxu1 %v8985_v25 }
 0xa9f   :  { %2197 = vmatpush1.msra.mxu0 %v7221_v56  ;;  %5248 = vmatpush3.msra.mxu1 %v7223_v60  ;;  %v9136_v60 = vld [vmem:[#allocation22_spill] sm:$0xff] }
 0xaa0   :  { %2198 = vmatprep.subr.mxu0 %v7227_v57  ;;  %5249 = vmatprep.subr.mxu1 %v8985_v25  ;;  %v9091_v57 = vld [vmem:[#allocation26_spill] sm:$0xff] }
 0xaa1   :  { %2199 = vmatpush1.msra.mxu0 %v7231_v63  ;;  %5250 = vmatpush3.msra.mxu1 %v7233_v59 }
 0xaa2   :  { %2200 = vmatprep.subr.mxu0 %v7237_v1  ;;  %5251 = vmatprep.subr.mxu1 %v8985_v25 }
 0xaa3   :  { %2201 = vmatpush1.msra.mxu0 %v7241_v61  ;;  %2234 = vmatprep.mubr.f32.mxu0 %v8985_v25  ;;  %v9095_v61 = vld [vmem:[#allocation41_spill] sm:$0xff] }
 0xaa4   :  { %5252 = vmatpush3.msra.mxu1 %v7245_v2  ;;  %5253 = vmatprep.mubr.msk.f32.mxu1 %vm6157_vm2, %v8985_v25  ;;  %v9092_v2 = vld [vmem:[#allocation38_spill] sm:$0xff] }
 0xaa5   :  { %2235 = vmatmul.mubr.f32.vlgmr.msra.gmra.mxu0 %v9091_v57  ;;  %5254 = vmatmul.mubr.f32.vlgmr.msra.gmra.mxu1 %v9091_v57  ;;  %v9093_v57 = vld [vmem:[#allocation39_spill] sm:$0xff] }
 0xaa6   :  { %2311 = vmatprep.subr.mxu0 %v7251_v8  ;;  %5256 = vmatprep.subr.mxu1 %v8985_v25  ;;  %v9094_v8 = vld [vmem:[#allocation40_spill] sm:$0xff] }
 0xaa7   :  { %2312 = vmatpush1.msra.mxu0 %v7256_v9  ;;  %5257 = vmatpush3.msra.mxu1 %v7258_v31  ;;  %v9096_v31 = vld [vmem:[#allocation42_spill] sm:$0xff]  ;;  %v9098_v9 = vld [vmem:[#allocation44_spill] sm:$0xff] }
 0xaa8   :  { %2313 = vmatprep.subr.mxu0 %v7262_v49  ;;  %5258 = vmatprep.subr.mxu1 %v8985_v25  ;;  %v9097_v49 = vld [vmem:[#allocation43_spill] sm:$0xff] }
 0xaa9   :  { %2314 = vmatpush1.msra.mxu0 %v7266_v11  ;;  %5259 = vmatpush3.msra.mxu1 %v7268_v14  ;;  %v9099_v14 = vld [vmem:[#allocation45_spill] sm:$0xff]  ;;  %v9101_v11 = vld [vmem:[#allocation47_spill] sm:$0xff] }
 0xaaa   :  { %2315 = vmatprep.subr.mxu0 %v9092_v2  ;;  %5260 = vmatprep.subr.mxu1 %v8985_v25  ;;  %v9100_v2 = vld [vmem:[#allocation46_spill] sm:$0xff] }
 0xaab   :  { %2316 = vmatpush1.msra.mxu0 %v9093_v57  ;;  %5261 = vmatpush3.msra.mxu1 %v9094_v8  ;;  %v9102_v8 = vld [vmem:[#allocation48_spill] sm:$0xff]  ;;  %v9104_v57 = vld [vmem:[#allocation50_spill] sm:$0xff] }
 0xaac   :  { %2317 = vmatprep.subr.mxu0 %v9095_v61  ;;  %5262 = vmatprep.subr.mxu1 %v8985_v25  ;;  %v9103_v61 = vld [vmem:[#allocation49_spill] sm:$0xff] }
 0xaad   :  { %2318 = vmatpush1.msra.mxu0 %v9096_v31  ;;  %5263 = vmatpush3.msra.mxu1 %v9097_v49  ;;  %v9105_v49 = vld [vmem:[#allocation51_spill] sm:$0xff]  ;;  %v9107_v31 = vld [vmem:[#allocation53_spill] sm:$0xff] }
 0xaae   :  { %2319 = vmatprep.subr.mxu0 %v9098_v9  ;;  %5264 = vmatprep.subr.mxu1 %v8985_v25  ;;  %v9106_v9 = vld [vmem:[#allocation52_spill] sm:$0xff] }
 0xaaf   :  { %2320 = vmatpush1.msra.mxu0 %v9099_v14  ;;  %5265 = vmatpush3.msra.mxu1 %v9100_v2  ;;  %v9108_v2 = vld [vmem:[#allocation54_spill] sm:$0xff]  ;;  %v9110_v14 = vld [vmem:[#allocation56_spill] sm:$0xff] }
 0xab0   :  { %2321 = vmatprep.subr.mxu0 %v9101_v11  ;;  %5266 = vmatprep.subr.mxu1 %v8985_v25  ;;  %v9109_v11 = vld [vmem:[#allocation55_spill] sm:$0xff] }
 0xab1   :  { %2322 = vmatpush1.msra.mxu0 %v9102_v8  ;;  %5267 = vmatpush3.msra.mxu1 %v9103_v61  ;;  %v9111_v61 = vld [vmem:[#allocation57_spill] sm:$0xff]  ;;  %v9113_v8 = vld [vmem:[#allocation59_spill] sm:$0xff] }
 0xab2   :  { %2323 = vmatprep.subr.mxu0 %v9104_v57  ;;  %5268 = vmatprep.subr.mxu1 %v8985_v25  ;;  %v9112_v57 = vld [vmem:[#allocation58_spill] sm:$0xff] }
 0xab3   :  { %2324 = vmatpush1.msra.mxu0 %v9105_v49  ;;  %5269 = vmatpush3.msra.mxu1 %v9106_v9  ;;  %v9114_v9 = vld [vmem:[#allocation60_spill] sm:$0xff]  ;;  %v9116_v49 = vld [vmem:[#allocation62_spill] sm:$0xff] }
 0xab4   :  { %2325 = vmatprep.subr.mxu0 %v9107_v31  ;;  %5270 = vmatprep.subr.mxu1 %v8985_v25  ;;  %v9115_v31 = vld [vmem:[#allocation61_spill] sm:$0xff] }
 0xab5   :  { %2326 = vmatpush1.msra.mxu0 %v9108_v2  ;;  %5271 = vmatpush3.msra.mxu1 %v9109_v11  ;;  %v9117_v11 = vld [vmem:[#allocation63_spill] sm:$0xff]  ;;  %v9119_v2 = vld [vmem:[#allocation65_spill] sm:$0xff] }
 0xab6   :  { %2327 = vmatprep.subr.mxu0 %v9110_v14  ;;  %5272 = vmatprep.subr.mxu1 %v8985_v25  ;;  %v9118_v14 = vld [vmem:[#allocation64_spill] sm:$0xff] }
 0xab7   :  { %2328 = vmatpush1.msra.mxu0 %v9111_v61  ;;  %5273 = vmatpush3.msra.mxu1 %v9112_v57  ;;  %v9120_v57 = vld [vmem:[#allocation66_spill] sm:$0xff]  ;;  %v9122_v61 = vld [vmem:[#allocation68_spill] sm:$0xff] }
 0xab8   :  { %2329 = vmatprep.subr.mxu0 %v9113_v8  ;;  %5274 = vmatprep.subr.mxu1 %v8985_v25  ;;  %v9121_v8 = vld [vmem:[#allocation67_spill] sm:$0xff] }
 0xab9   :  { %2330 = vmatpush1.msra.mxu0 %v9114_v9  ;;  %5275 = vmatpush3.msra.mxu1 %v9115_v31  ;;  %v9124_v31 = vld [vmem:[#allocation71_spill] sm:$0xff] }
 0xaba   :  { %2331 = vmatprep.subr.mxu0 %v9116_v49  ;;  %5276 = vmatprep.subr.mxu1 %v8985_v25  ;;  %v9123_v49 = vld [vmem:[#allocation70_spill] sm:$0xff] }
 0xabb   :  { %2332 = vmatpush1.msra.mxu0 %v9117_v11  ;;  %5277 = vmatpush3.msra.mxu1 %v9118_v14 }
 0xabc   :  { %2333 = vmatprep.subr.mxu0 %v9119_v2  ;;  %5278 = vmatprep.subr.mxu1 %v8985_v25 }
 0xabd   :  { %2334 = vmatpush1.msra.mxu0 %v9120_v57  ;;  %5279 = vmatpush3.msra.mxu1 %v9121_v8  ;;  %v9128_v57 = vld [vmem:[#allocation21_spill] sm:$0xff] }
 0xabe   :  { %2335 = vmatprep.subr.mxu0 %v9122_v61  ;;  %5280 = vmatprep.subr.mxu1 %v8985_v25 }
 0xabf   :  { %2336 = vmatpush1.msra.mxu0 %v7376_v28  ;;  %5281 = vmatpush3.msra.mxu1 %v9123_v49  ;;  %v9126_v49 = vld [vmem:[#allocation20_spill] sm:$0xff]  ;;  %v9127_v28 = vld [vmem:[#allocation18_spill] sm:$0xff] }
 0xac0   :  { %2337 = vmatprep.subr.mxu0 %v9124_v31  ;;  %5282 = vmatprep.subr.mxu1 %v8985_v25 }
 0xac1   :  { %2338 = vmatpush1.msra.mxu0 %v7386_v38  ;;  %5283 = vmatpush3.msra.mxu1 %v7388_v23 }
 0xac2   :  { %2339 = vmatprep.subr.mxu0 %v7392_v4  ;;  %5284 = vmatprep.subr.mxu1 %v8985_v25 }
 0xac3   :  { %2340 = vmatpush1.msra.mxu0 %v7396_v10  ;;  %5285 = vmatpush3.msra.mxu1 %v7398_v17  ;;  %v9125_v17 = vld [vmem:[#allocation17_spill] sm:$0xff] }
 0xac4   :  { %2341 = vmatprep.subr.mxu0 %v7402_v13  ;;  %5286 = vmatprep.subr.mxu1 %v8985_v25 }
 0xac5   :  { %2342 = vmatpush1.msra.mxu0 %v7406_v35  ;;  %5287 = vmatpush3.msra.mxu1 %v7410_v26 }
 0xac6   :  { %2375 = vmatprep.mubr.f32.mxu0 %v8985_v25  ;;  %5288 = vmatprep.mubr.msk.f32.mxu1 %vm6157_vm2, %v8985_v25 }
 0xac7   :  { %2469 = vmatprep.subr.mxu0 %v7078_v32  ;;  %5291 = vmatprep.subr.mxu1 %v8985_v25  ;;  %v9129_v32 = vld [vmem:[#allocation23_spill] sm:$0xff] }
 0xb00   :  { %v1634_v10 = vpop.f32.mrf.mxu0  ;;  %v1705_v4 = vpop.f32.mrf.mxu1 }
 0xb01   :  { %v1635_v23 = vadd.f32 %v1634_v10, %v9125_v17  ;;  %v1706_v11 = vadd.f32 %v1705_v4, %v9129_v32 }
 0xb02   :  { %v1636_v13 = vpop.f32.mrf.mxu0  ;;  %v5150_v38 = vpop.f32.mrf.mxu1 }
 0xb03   :  { %v1710_v31 = vrot.slane %v1635_v23, 1  ;;  %v1637_v35 = vadd.f32 %v1636_v13, %v9126_v49  ;;  %v1726_v10 = vrot.slane %v1706_v11, 1  ;;  %v9130_v23 = vld [vmem:[#allocation15_spill] sm:$0xff]  ;;  %v9133_v11 = vld [vmem:[#allocation16_spill] sm:$0xff] }
 0xb04   :  { %v1733_v63 = vrot.slane %v9130_v23, 7 }
 0xb05   :  { %v1712_v26 = vadd.f32 %v1710_v31, %v9127_v28  ;;  %v1718_v61 = vrot.slane %v1637_v35, 1  ;;  %v9131_v28 = vld [vmem:[#allocation24_spill] sm:$0xff] }
 0xb07   :  { %v1713_v8 = vmul.f32 0.5, %v1712_v26  ;;  %v1720_v2 = vadd.f32 %v1718_v61, %v9128_v57 }
 0xb09   :  { %5811 = vtanh.f32 %v1713_v8  ;;  %v1721_v14 = vmul.f32 0.5, %v1720_v2 }
 0xb0b   :  { %5813 = vtanh.f32 %v1721_v14 }
 0xb16   :  { %v5812_v9 = vpop.eup %5811 }
 0xb17   :  { %v1715_v1 = vadd.f32 1.0, %v5812_v9 }
 0xb18   :  { %v5814_v59 = vpop.eup %5813 }
 0xb19   :  { %v1716_v17 = vmul.f32 0.5, %v1715_v1  ;;  %v1723_v38 = vadd.f32 1.0, %v5814_v59  ;;  %v4427_v1 = vld [vmem:[%s8690_s3 + $0x3] sm:$0x7] }
 0xb1a   :  { %v4428_v59 = vld [vmem:[%s8691_s4 + $0x3] sm:$0x7]  ;;  %v7575_v57 = vrot.slane %v4427_v1, %v9133_v11 }
 0xb1b   :  { %v1728_v13 = vmul.f32 %v1726_v10, %v1716_v17  ;;  %v1724_v49 = vmul.f32 0.5, %v1723_v38  ;;  %v9134_v10 = vld [vmem:[#allocation19_spill] sm:$0xff]  ;;  %v7591_v56 = vrot.slane %v4428_v59, %v9136_v60 }
 0xb1c   :  { %v7581_v38 = vrot.slane %v4428_v59, %v9134_v10 }
 0xb1d   :  { %v1729_v35 = vadd.f32 %v1728_v13, %v9131_v28  ;;  %v1735_v26 = vmul.f32 %v1733_v63, %v1724_v49  ;;  %v1731_v2 = vsub.f32 1.0, %v1724_v49  ;;  %v7578_v63 = vrot.slane %v4428_v59, %v9133_v11 }
 0xb1f   :  { %5815 = vtanh.f32 %v1729_v35  ;;  %v7586_v35 = vrot.slane %v4427_v1, %v9134_v10 }
 0xb21   :  { %v1992_v61 = vpop.f32.mrf.mxu1  ;;  %v1921_v9 = vpop.f32.mrf.mxu0  ;;  %9135 = vst [vmem:[#allocation17_spill] sm:$0xff] %v7586_v35 }
 0xb22   :  { %v1922_v23 = vadd.f32 %v1921_v9, %v7575_v57 }
 0xb23   :  { %v5185_v8 = vpop.f32.mrf.mxu1  ;;  %v1923_v32 = vpop.f32.mrf.mxu0 }
 0xb2c   :  { %v5816_v14 = vpop.eup %5815 }
 0xb2d   :  { %v1732_v31 = vmul.f32 %v5816_v14, %v1731_v2 }
 0xb2f   :  { %v7566_v4 = vadd.f32 %v1735_v26, %v1732_v31  ;;  %v1924_v31 = vadd.f32 %v1923_v32, %v7586_v35 }
 0xb31   :  { %9132 = vst [vmem:[#allocation26_spill] sm:$0xff] %v7566_v4 }
 0xb42   :  { %v2078_v17 = vpop.f32.mrf.mxu0 }
 0xb43   :  { %v2079_v13 = vadd.f32 %v2078_v17, %v7578_v63  ;;  %v7594_v17 = vrot.slane %v4427_v1, %v9136_v60 }
 0xb44   :  { %v2080_v49 = vpop.f32.mrf.mxu0  ;;  %v2149_v28 = vpop.f32.mrf.mxu1 }
 0xb45   :  { %v2153_v26 = vadd.f32 %v2079_v13, %v1922_v23  ;;  %v2081_v14 = vadd.f32 %v2080_v49, %v7581_v38  ;;  %v2150_v10 = vadd.f32 %v2149_v28, %v7591_v56  ;;  %v9178_v28 = vld [vmem:[#allocation63_spill] sm:$0xff] }
 0xb46   :  { %v5220_v8 = vpop.f32.mrf.mxu1 }
 0xb47   :  { %v2154_v2 = vmul.f32 0.5, %v2153_v26  ;;  %v2158_v11 = vadd.f32 %v2081_v14, %v1924_v31  ;;  %v1993_v26 = vadd.f32 %v1992_v61, %v7594_v17  ;;  %v9177_v61 = vld [vmem:[#allocation62_spill] sm:$0xff] }
 0xb49   :  { %5817 = vtanh.f32 %v2154_v2  ;;  %v2159_v4 = vmul.f32 0.5, %v2158_v11 }
 0xb4b   :  { %5819 = vtanh.f32 %v2159_v4 }
 0xb56   :  { %v5818_v9 = vpop.eup %5817 }
 0xb57   :  { %v2156_v23 = vadd.f32 1.0, %v5818_v9  ;;  %v9180_v9 = vld [vmem:[#allocation65_spill] sm:$0xff] }
 0xb58   :  { %v5820_v32 = vpop.eup %5819 }
 0xb59   :  { %v2157_v13 = vmul.f32 0.5, %v2156_v23  ;;  %v2161_v2 = vadd.f32 1.0, %v5820_v32  ;;  %v9182_v23 = vld [vmem:[#allocation67_spill] sm:$0xff]  ;;  %v9187_v32 = vld [vmem:[#allocation72_spill] sm:$0xff] }
 0xb5b   :  { %v2163_v49 = vmul.f32 %v2157_v13, %v2150_v10  ;;  %v2162_v59 = vmul.f32 0.5, %v2161_v2  ;;  %v9181_v10 = vld [vmem:[#allocation66_spill] sm:$0xff]  ;;  %v9183_v13 = vld [vmem:[#allocation68_spill] sm:$0xff]  ;;  %v9188_v2 = vld [vmem:[#allocation73_spill] sm:$0xff] }
 0xb5d   :  { %v2164_v8 = vadd.f32 %v2163_v49, %v1993_v26  ;;  %v2166_v4 = vsub.f32 1.0, %v2162_v59  ;;  %v2168_v60 = vmul.f32 0.0, %v2162_v59  ;;  %v9184_v26 = vld [vmem:[#allocation69_spill] sm:$0xff]  ;;  %v9185_v49 = vld [vmem:[#allocation70_spill] sm:$0xff] }
 0xb5e   :  { %v9189_v59 = vld [vmem:[#allocation74_spill] sm:$0xff] }
 0xb5f   :  { %5821 = vtanh.f32 %v2164_v8  ;;  %v9186_v8 = vld [vmem:[#allocation71_spill] sm:$0xff] }
 0xb65   :  { %v7598_v14 = vpop.f32.mrf.mxu1 }
 0xb67   :  { %v5255_v31 = vpop.f32.mrf.mxu1 }
 0xb68   :  { %v9190_v31 = vld [vmem:[#allocation75_spill] sm:$0xff] }
 0xb6c   :  { %v5822_v11 = vpop.eup %5821 }
 0xb6d   :  { %v2167_v35 = vmul.f32 %v5822_v11, %v2166_v4  ;;  %v9191_v4 = vld [vmem:[#allocation76_spill] sm:$0xff]  ;;  %v9192_v11 = vld [vmem:[#allocation77_spill] sm:$0xff] }
 0xb6f   :  { %v7600_v1 = vadd.f32 %v2168_v60, %v2167_v35  ;;  %v9179_v35 = vld [vmem:[#allocation64_spill] sm:$0xff]  ;;  %v9193_v60 = vld [vmem:[#allocation78_spill] sm:$0xff] }
 0xb71   :  { %9137 = vst [vmem:[#allocation20_spill] sm:$0xff] %v7600_v1  ;;  %2376 = vmatmul.mubr.f32.vlgmr.msra.gmra.mxu0 %v7600_v1  ;;  %5289 = vmatmul.mubr.f32.vlgmr.msra.gmra.mxu1 %v7600_v1 }
 0xb72   :  { %2470 = vmatpush1.msra.mxu0 %v7093_v20  ;;  %5292 = vmatpush3.msra.mxu1 %v7095_v15  ;;  %v9138_v20 = vld [vmem:[#allocation10_spill] sm:$0xff]  ;;  %v9139_v15 = vld [vmem:[#allocation27_spill] sm:$0xff] }
 0xb73   :  { %2471 = vmatprep.subr.mxu0 %v7097_v16  ;;  %5293 = vmatprep.subr.mxu1 %v8985_v25  ;;  %v9140_v16 = vld [vmem:[#allocation14_spill] sm:$0xff] }
 0xb74   :  { %2472 = vmatpush1.msra.mxu0 %v7101_v0  ;;  %5294 = vmatpush3.msra.mxu1 %v7103_v34  ;;  %v9141_v0 = vld [vmem:[#allocation11_spill] sm:$0xff]  ;;  %v9142_v34 = vld [vmem:[#allocation28_spill] sm:$0xff] }
 0xb75   :  { %2473 = vmatprep.subr.mxu0 %v7107_v24  ;;  %5295 = vmatprep.subr.mxu1 %v8985_v25  ;;  %v9143_v24 = vld [vmem:[#allocation30_spill] sm:$0xff] }
 0xb76   :  { %2474 = vmatpush1.msra.mxu0 %v7111_v27  ;;  %5296 = vmatpush3.msra.mxu1 %v7113_v50  ;;  %v9144_v27 = vld [vmem:[#allocation31_spill] sm:$0xff]  ;;  %v9145_v50 = vld [vmem:[#allocation32_spill] sm:$0xff] }
 0xb77   :  { %2475 = vmatprep.subr.mxu0 %v7117_v43  ;;  %5297 = vmatprep.subr.mxu1 %v8985_v25  ;;  %v9146_v43 = vld [vmem:[#allocation8_spill] sm:$0xff] }
 0xb78   :  { %2476 = vmatpush1.msra.mxu0 %v7121_v5  ;;  %5298 = vmatpush3.msra.mxu1 %v7123_v6  ;;  %v9147_v5 = vld [vmem:[#allocation33_spill] sm:$0xff]  ;;  %v9148_v6 = vld [vmem:[#allocation34_spill] sm:$0xff] }
 0xb79   :  { %2477 = vmatprep.subr.mxu0 %v7127_v7  ;;  %5299 = vmatprep.subr.mxu1 %v8985_v25  ;;  %v9149_v7 = vld [vmem:[#allocation35_spill] sm:$0xff] }
 0xb7a   :  { %2478 = vmatpush1.msra.mxu0 %v7131_v46  ;;  %5300 = vmatpush3.msra.mxu1 %v7133_v12  ;;  %v9150_v46 = vld [vmem:[#allocation25_spill] sm:$0xff]  ;;  %v9151_v12 = vld [vmem:[#allocation36_spill] sm:$0xff] }
 0xb7b   :  { %2479 = vmatprep.subr.mxu0 %v7137_v19  ;;  %5301 = vmatprep.subr.mxu1 %v8985_v25  ;;  %v9152_v19 = vld [vmem:[#allocation37_spill] sm:$0xff] }
 0xb7c   :  { %2480 = vmatpush1.msra.mxu0 %v7141_v3  ;;  %5302 = vmatpush3.msra.mxu1 %v7143_v29  ;;  %v9153_v3 = vld [vmem:[#allocation38_spill] sm:$0xff]  ;;  %v9154_v29 = vld [vmem:[#allocation39_spill] sm:$0xff] }
 0xb7d   :  { %2481 = vmatprep.subr.mxu0 %v7147_v62  ;;  %5303 = vmatprep.subr.mxu1 %v8985_v25  ;;  %v9155_v62 = vld [vmem:[#allocation40_spill] sm:$0xff] }
 0xb7e   :  { %2482 = vmatpush1.msra.mxu0 %v7151_v33  ;;  %5304 = vmatpush3.msra.mxu1 %v7153_v55  ;;  %v9156_v33 = vld [vmem:[#allocation41_spill] sm:$0xff]  ;;  %v9157_v55 = vld [vmem:[#allocation42_spill] sm:$0xff] }
 0xb7f   :  { %2483 = vmatprep.subr.mxu0 %v7157_v18  ;;  %5305 = vmatprep.subr.mxu1 %v8985_v25  ;;  %v9158_v18 = vld [vmem:[#allocation43_spill] sm:$0xff] }
 0xb80   :  { %2484 = vmatpush1.msra.mxu0 %v7161_v22  ;;  %5306 = vmatpush3.msra.mxu1 %v7163_v21  ;;  %v9159_v22 = vld [vmem:[#allocation44_spill] sm:$0xff]  ;;  %v9160_v21 = vld [vmem:[#allocation45_spill] sm:$0xff] }
 0xb81   :  { %2485 = vmatprep.subr.mxu0 %v7167_v30  ;;  %5307 = vmatprep.subr.mxu1 %v8985_v25  ;;  %v9161_v30 = vld [vmem:[#allocation46_spill] sm:$0xff] }
 0xb82   :  { %2486 = vmatpush1.msra.mxu0 %v7171_v42  ;;  %5308 = vmatpush3.msra.mxu1 %v7173_v36  ;;  %v9162_v42 = vld [vmem:[#allocation47_spill] sm:$0xff]  ;;  %v9163_v36 = vld [vmem:[#allocation48_spill] sm:$0xff] }
 0xb83   :  { %2487 = vmatprep.subr.mxu0 %v7177_v37  ;;  %5309 = vmatprep.subr.mxu1 %v8985_v25  ;;  %v9164_v37 = vld [vmem:[#allocation49_spill] sm:$0xff] }
 0xb84   :  { %2488 = vmatpush1.msra.mxu0 %v7181_v44  ;;  %5310 = vmatpush3.msra.mxu1 %v7183_v45  ;;  %v9165_v44 = vld [vmem:[#allocation50_spill] sm:$0xff]  ;;  %v9166_v45 = vld [vmem:[#allocation51_spill] sm:$0xff] }
 0xb85   :  { %2489 = vmatprep.subr.mxu0 %v7187_v39  ;;  %5311 = vmatprep.subr.mxu1 %v8985_v25  ;;  %v9167_v39 = vld [vmem:[#allocation52_spill] sm:$0xff] }
 0xb86   :  { %2490 = vmatpush1.msra.mxu0 %v7191_v47  ;;  %5312 = vmatpush3.msra.mxu1 %v7193_v40  ;;  %v9168_v47 = vld [vmem:[#allocation53_spill] sm:$0xff]  ;;  %v9169_v40 = vld [vmem:[#allocation54_spill] sm:$0xff] }
 0xb87   :  { %2491 = vmatprep.subr.mxu0 %v7197_v48  ;;  %5313 = vmatprep.subr.mxu1 %v8985_v25  ;;  %v9170_v48 = vld [vmem:[#allocation55_spill] sm:$0xff] }
 0xb88   :  { %2492 = vmatpush1.msra.mxu0 %v7201_v41  ;;  %5314 = vmatpush3.msra.mxu1 %v7203_v51  ;;  %v9171_v41 = vld [vmem:[#allocation56_spill] sm:$0xff]  ;;  %v9172_v51 = vld [vmem:[#allocation57_spill] sm:$0xff] }
 0xb89   :  { %2493 = vmatprep.subr.mxu0 %v7207_v52  ;;  %5315 = vmatprep.subr.mxu1 %v8985_v25  ;;  %v9173_v52 = vld [vmem:[#allocation58_spill] sm:$0xff] }
 0xb8a   :  { %2494 = vmatpush1.msra.mxu0 %v7211_v53  ;;  %5316 = vmatpush3.msra.mxu1 %v7213_v54  ;;  %v9174_v53 = vld [vmem:[#allocation59_spill] sm:$0xff]  ;;  %v9175_v54 = vld [vmem:[#allocation60_spill] sm:$0xff] }
 0xb8b   :  { %2495 = vmatprep.subr.mxu0 %v7217_v58  ;;  %5317 = vmatprep.subr.mxu1 %v8985_v25  ;;  %v9176_v58 = vld [vmem:[#allocation61_spill] sm:$0xff] }
 0xb8c   :  { %2496 = vmatpush1.msra.mxu0 %v9138_v20  ;;  %5318 = vmatpush3.msra.mxu1 %v9139_v15  ;;  %v9194_v20 = vld [vmem:[#allocation79_spill] sm:$0xff]  ;;  %v7738_v15 = vld [vmem:[#allocation2 + $0x2f0] sm:$0xff] }
 0xb8d   :  { %2497 = vmatprep.subr.mxu0 %v9140_v16  ;;  %5319 = vmatprep.subr.mxu1 %v8985_v25  ;;  %9195 = vst [vmem:[#allocation18_spill] sm:$0xff] %v7738_v15  ;;  %v2236_v16 = vpop.f32.mrf.mxu0 }
 0xb8e   :  { %2498 = vmatpush1.msra.mxu0 %v9141_v0  ;;  %5320 = vmatpush3.msra.mxu1 %v9142_v34 }
 0xb8f   :  { %2499 = vmatprep.subr.mxu0 %v9143_v24  ;;  %5321 = vmatprep.subr.mxu1 %v8985_v25  ;;  %v2238_v0 = vpop.f32.mrf.mxu0 }
 0xb90   :  { %2500 = vmatpush1.msra.mxu0 %v9144_v27  ;;  %2533 = vmatprep.mubr.f32.mxu0 %v8985_v25  ;;  %v2237_v27 = vadd.f32 %v2236_v16, %v7575_v57  ;;  %v7836_v16 = vld [vmem:[#allocation2 + $0x228] sm:$0xff] }
 0xb91   :  { %5322 = vmatpush3.msra.mxu1 %v9145_v50  ;;  %5323 = vmatprep.mubr.msk.f32.mxu1 %vm6157_vm2, %v8985_v25 }
 0xb92   :  { %2534 = vmatmul.mubr.f32.vlgmr.msra.gmra.mxu0 %v9146_v43  ;;  %5324 = vmatmul.mubr.f32.vlgmr.msra.gmra.mxu1 %v9146_v43 }
 0xb93   :  { %2610 = vmatprep.subr.mxu0 %v9147_v5  ;;  %5326 = vmatprep.subr.mxu1 %v8985_v25 }
 0xb94   :  { %2611 = vmatpush1.msra.mxu0 %v9148_v6  ;;  %5327 = vmatpush3.msra.mxu1 %v9149_v7 }
 0xb95   :  { %2612 = vmatprep.subr.mxu0 %v9150_v46  ;;  %5328 = vmatprep.subr.mxu1 %v8985_v25 }
 0xb96   :  { %2613 = vmatpush1.msra.mxu0 %v9151_v12  ;;  %5329 = vmatpush3.msra.mxu1 %v9152_v19  ;;  %v9196_v12 = vld [vmem:[#allocation17_spill] sm:$0xff] }
 0xb97   :  { %2614 = vmatprep.subr.mxu0 %v9153_v3  ;;  %5330 = vmatprep.subr.mxu1 %v8985_v25  ;;  %v2239_v19 = vadd.f32 %v2238_v0, %v9196_v12  ;;  %v7839_v0 = vld [vmem:[#allocation2 + $0x238] sm:$0xff] }
 0xb98   :  { %2615 = vmatpush1.msra.mxu0 %v9154_v29  ;;  %5331 = vmatpush3.msra.mxu1 %v9155_v62 }
 0xb99   :  { %2616 = vmatprep.subr.mxu0 %v9156_v33  ;;  %5332 = vmatprep.subr.mxu1 %v8985_v25 }
 0xb9a   :  { %2617 = vmatpush1.msra.mxu0 %v9157_v55  ;;  %5333 = vmatpush3.msra.mxu1 %v9158_v18 }
 0xb9b   :  { %2618 = vmatprep.subr.mxu0 %v9159_v22  ;;  %5334 = vmatprep.subr.mxu1 %v8985_v25  ;;  %v2308_v22 = vadd.f32 %v7598_v14, %v7594_v17  ;;  %v7756_v14 = vld [vmem:[#allocation2 + $0x2e8] sm:$0xff] }
 0xb9c   :  { %2619 = vmatpush1.msra.mxu0 %v9160_v21  ;;  %5335 = vmatpush3.msra.mxu1 %v9161_v30 }
 0xb9d   :  { %2620 = vmatprep.subr.mxu0 %v9162_v42  ;;  %5336 = vmatprep.subr.mxu1 %v8985_v25 }
 0xb9e   :  { %2621 = vmatpush1.msra.mxu0 %v9163_v36  ;;  %5337 = vmatpush3.msra.mxu1 %v9164_v37 }
 0xb9f   :  { %2622 = vmatprep.subr.mxu0 %v9165_v44  ;;  %5338 = vmatprep.subr.mxu1 %v8985_v25 }
 0xba0   :  { %2623 = vmatpush1.msra.mxu0 %v9166_v45  ;;  %5339 = vmatpush3.msra.mxu1 %v9167_v39 }
 0xba1   :  { %2624 = vmatprep.subr.mxu0 %v9168_v47  ;;  %5340 = vmatprep.subr.mxu1 %v8985_v25 }
 0xba2   :  { %2625 = vmatpush1.msra.mxu0 %v9169_v40  ;;  %5341 = vmatpush3.msra.mxu1 %v9170_v48 }
 0xba3   :  { %2626 = vmatprep.subr.mxu0 %v9171_v41  ;;  %5342 = vmatprep.subr.mxu1 %v8985_v25 }
 0xba4   :  { %2627 = vmatpush1.msra.mxu0 %v9172_v51  ;;  %5343 = vmatpush3.msra.mxu1 %v9173_v52  ;;  %v7759_v51 = vld [vmem:[#allocation2 + $0x2f8] sm:$0xff] }
 0xba5   :  { %2628 = vmatprep.subr.mxu0 %v9174_v53  ;;  %5344 = vmatprep.subr.mxu1 %v8985_v25  ;;  %v7762_v52 = vld [vmem:[#allocation2 + $0x2d8] sm:$0xff]  ;;  %v7766_v53 = vld [vmem:[#allocation2 + $0x2d0] sm:$0xff] }
 0xba6   :  { %2629 = vmatpush1.msra.mxu0 %v9175_v54  ;;  %5345 = vmatpush3.msra.mxu1 %v9176_v58  ;;  %v7769_v54 = vld [vmem:[#allocation2 + $0x2e0] sm:$0xff] }
 0xba7   :  { %2630 = vmatprep.subr.mxu0 %v9177_v61  ;;  %5346 = vmatprep.subr.mxu1 %v8985_v25  ;;  %v7772_v58 = vld [vmem:[#allocation2 + $0x2c0] sm:$0xff]  ;;  %v7776_v61 = vld [vmem:[#allocation2 + $0x2b8] sm:$0xff] }
 0xba8   :  { %2631 = vmatpush1.msra.mxu0 %v9178_v28  ;;  %5347 = vmatpush3.msra.mxu1 %v9179_v35  ;;  %v7779_v28 = vld [vmem:[#allocation2 + $0x2c8] sm:$0xff] }
 0xba9   :  { %2632 = vmatprep.subr.mxu0 %v9180_v9  ;;  %5348 = vmatprep.subr.mxu1 %v8985_v25  ;;  %v7782_v35 = vld [vmem:[#allocation2 + $0x2a8] sm:$0xff]  ;;  %v7786_v9 = vld [vmem:[#allocation2 + $0x2a0] sm:$0xff] }
 0xbaa   :  { %2633 = vmatpush1.msra.mxu0 %v9181_v10  ;;  %5349 = vmatpush3.msra.mxu1 %v9182_v23  ;;  %v7789_v10 = vld [vmem:[#allocation2 + $0x2b0] sm:$0xff] }
 0xbab   :  { %2634 = vmatprep.subr.mxu0 %v9183_v13  ;;  %5350 = vmatprep.subr.mxu1 %v8985_v25  ;;  %v7792_v23 = vld [vmem:[#allocation2 + $0x290] sm:$0xff]  ;;  %v7796_v13 = vld [vmem:[#allocation2 + $0x288] sm:$0xff] }
 0xbac   :  { %2635 = vmatpush1.msra.mxu0 %v9184_v26  ;;  %5351 = vmatpush3.msra.mxu1 %v9185_v49  ;;  %v7799_v26 = vld [vmem:[#allocation2 + $0x298] sm:$0xff] }
 0xbad   :  { %2636 = vmatprep.subr.mxu0 %v9186_v8  ;;  %5352 = vmatprep.subr.mxu1 %v8985_v25  ;;  %v7802_v49 = vld [vmem:[#allocation2 + $0x278] sm:$0xff]  ;;  %v7806_v8 = vld [vmem:[#allocation2 + $0x270] sm:$0xff] }
 0xbae   :  { %2637 = vmatpush1.msra.mxu0 %v9187_v32  ;;  %5353 = vmatpush3.msra.mxu1 %v9188_v2  ;;  %v7809_v32 = vld [vmem:[#allocation2 + $0x280] sm:$0xff] }
 0xbaf   :  { %2638 = vmatprep.subr.mxu0 %v9189_v59  ;;  %5354 = vmatprep.subr.mxu1 %v8985_v25  ;;  %v7812_v2 = vld [vmem:[#allocation2 + $0x260] sm:$0xff]  ;;  %v7816_v59 = vld [vmem:[#allocation2 + $0x258] sm:$0xff] }
 0xbb0   :  { %2639 = vmatpush1.msra.mxu0 %v9190_v31  ;;  %5355 = vmatpush3.msra.mxu1 %v9191_v4  ;;  %v7819_v31 = vld [vmem:[#allocation2 + $0x268] sm:$0xff] }
 0xbb1   :  { %2640 = vmatprep.subr.mxu0 %v9192_v11  ;;  %5356 = vmatprep.subr.mxu1 %v8985_v25  ;;  %v7822_v4 = vld [vmem:[#allocation2 + $0x248] sm:$0xff]  ;;  %v7826_v11 = vld [vmem:[#allocation2 + $0x240] sm:$0xff] }
 0xbb2   :  { %2641 = vmatpush1.msra.mxu0 %v9193_v60  ;;  %5357 = vmatpush3.msra.mxu1 %v9194_v20  ;;  %v7829_v60 = vld [vmem:[#allocation2 + $0x250] sm:$0xff] }
 0xbb3   :  { %2674 = vmatprep.mubr.f32.mxu0 %v8985_v25  ;;  %5358 = vmatprep.mubr.msk.f32.mxu1 %vm6157_vm2, %v8985_v25  ;;  %v7832_v20 = vld [vmem:[#allocation2 + $0x230] sm:$0xff] }
 0xbb4   :  { %2768 = vmatprep.subr.mxu0 %v7738_v15  ;;  %5361 = vmatprep.subr.mxu1 %v8985_v25 }
 0xc31   :  { %v2377_v34 = vpop.f32.mrf.mxu0  ;;  %v2448_v24 = vpop.f32.mrf.mxu1 }
 0xc32   :  { %v2378_v50 = vadd.f32 %v2377_v34, %v7578_v63  ;;  %v2449_v55 = vadd.f32 %v2448_v24, %v7591_v56  ;;  %v7842_v34 = vld [vmem:[#allocation2 + $0x218] sm:$0xff]  ;;  %v7846_v24 = vld [vmem:[#allocation2 + $0x210] sm:$0xff] }
 0xc33   :  { %v2379_v43 = vpop.f32.mrf.mxu0  ;;  %v5290_v5 = vpop.f32.mrf.mxu1 }
 0xc34   :  { %v2452_v6 = vadd.f32 %v2378_v50, %v2237_v27  ;;  %v2380_v46 = vadd.f32 %v2379_v43, %v7581_v38  ;;  %v7849_v27 = vld [vmem:[#allocation2 + $0x220] sm:$0xff]  ;;  %v7856_v43 = vld [vmem:[#allocation2 + $0x1f8] sm:$0xff]  ;;  %v7859_v5 = vld [vmem:[#allocation2 + $0x208] sm:$0xff] }
 0xc35   :  { %v7852_v50 = vld [vmem:[#allocation2 + $0x200] sm:$0xff] }
 0xc36   :  { %v2453_v7 = vmul.f32 0.5, %v2452_v6  ;;  %v2457_v3 = vadd.f32 %v2380_v46, %v2239_v19  ;;  %v7862_v6 = vld [vmem:[#allocation2 + $0x1e8] sm:$0xff]  ;;  %v7869_v46 = vld [vmem:[#allocation2 + $0x1f0] sm:$0xff] }
 0xc37   :  { %v7872_v19 = vld [vmem:[#allocation2 + $0x1d0] sm:$0xff] }
 0xc38   :  { %5823 = vtanh.f32 %v2453_v7  ;;  %v2458_v29 = vmul.f32 0.5, %v2457_v3  ;;  %v7866_v7 = vld [vmem:[#allocation2 + $0x1e0] sm:$0xff]  ;;  %v7876_v3 = vld [vmem:[#allocation2 + $0x1c8] sm:$0xff] }
 0xc3a   :  { %5825 = vtanh.f32 %v2458_v29  ;;  %v7879_v29 = vld [vmem:[#allocation2 + $0x1d8] sm:$0xff] }
 0xc3b   :  { %9198 = vst [vmem:[#allocation23_spill] sm:$0xff] %v7879_v29 }
 0xc45   :  { %v5824_v62 = vpop.eup %5823 }
 0xc46   :  { %v2455_v33 = vadd.f32 1.0, %v5824_v62  ;;  %v7882_v62 = vld [vmem:[#allocation2 + $0x1b8] sm:$0xff] }
 0xc47   :  { %v5826_v42 = vpop.eup %5825  ;;  %9199 = vst [vmem:[#allocation15_spill] sm:$0xff] %v7882_v62 }
 0xc48   :  { %v2456_v18 = vmul.f32 0.5, %v2455_v33  ;;  %v2460_v36 = vadd.f32 1.0, %v5826_v42  ;;  %v7886_v33 = vld [vmem:[#allocation2 + $0x1b0] sm:$0xff]  ;;  %v7906_v42 = vld [vmem:[#allocation2 + $0x180] sm:$0xff] }
 0xc49   :  { %9200 = vst [vmem:[#allocation24_spill] sm:$0xff] %v7886_v33  ;;  %9206 = vst [vmem:[#allocation14_spill] sm:$0xff] %v7906_v42 }
 0xc4a   :  { %v2462_v21 = vmul.f32 %v2456_v18, %v2449_v55  ;;  %v2461_v45 = vmul.f32 0.5, %v2460_v36  ;;  %v7889_v55 = vld [vmem:[#allocation2 + $0x1c0] sm:$0xff]  ;;  %v7910_v36 = vld [vmem:[#allocation2 + $0x190] sm:$0xff] }
 0xc4b   :  { %9201 = vst [vmem:[#allocation16_spill] sm:$0xff] %v7889_v55  ;;  %v7892_v18 = vld [vmem:[#allocation2 + $0x1a0] sm:$0xff]  ;;  %9207 = vst [vmem:[#allocation11_spill] sm:$0xff] %v7910_v36 }
 0xc4c   :  { %v2463_v30 = vadd.f32 %v2462_v21, %v2308_v22  ;;  %v2465_v39 = vsub.f32 1.0, %v2461_v45  ;;  %v2467_v48 = vmul.f32 %v2461_v45, %v7600_v1  ;;  %9202 = vst [vmem:[#allocation19_spill] sm:$0xff] %v7892_v18  ;;  %v7896_v22 = vld [vmem:[#allocation2 + $0x198] sm:$0xff]  ;;  %v7899_v21 = vld [vmem:[#allocation2 + $0x1a8] sm:$0xff]  ;;  %v7917_v45 = vld [vmem:[#allocation4 + $0x2f0] sm:$0xff] }
 0xc4d   :  { %9203 = vst [vmem:[#allocation22_spill] sm:$0xff] %v7896_v22  ;;  %9204 = vst [vmem:[#allocation10_spill] sm:$0xff] %v7899_v21  ;;  %v7937_v1 = vld [vmem:[#allocation4 + $0x2c0] sm:$0xff] }
 0xc4e   :  { %5827 = vtanh.f32 %v2463_v30  ;;  %v7902_v30 = vld [vmem:[#allocation2 + $0x188] sm:$0xff]  ;;  %9209 = vst [vmem:[#allocation28_spill] sm:$0xff] %v7917_v45  ;;  %9215 = vst [vmem:[#allocation34_spill] sm:$0xff] %v7937_v1 }
 0xc4f   :  { %9205 = vst [vmem:[#allocation27_spill] sm:$0xff] %v7902_v30 }
 0xc52   :  { %v7749_v37 = vpop.f32.mrf.mxu1 }
 0xc54   :  { %v5325_v44 = vpop.f32.mrf.mxu1 }
 0xc55   :  { %v9208_v44 = vld [vmem:[#allocation13_spill] sm:$0xff] }
 0xc5b   :  { %v5828_v47 = vpop.eup %5827 }
 0xc5c   :  { %v2466_v40 = vmul.f32 %v5828_v47, %v2465_v39  ;;  %v7921_v39 = vld [vmem:[#allocation4 + $0x2e8] sm:$0xff]  ;;  %v7924_v47 = vld [vmem:[#allocation4 + $0x2f8] sm:$0xff] }
 0xc5d   :  { %9210 = vst [vmem:[#allocation30_spill] sm:$0xff] %v7921_v39  ;;  %9211 = vst [vmem:[#allocation31_spill] sm:$0xff] %v7924_v47 }
 0xc5e   :  { %v7752_v41 = vadd.f32 %v2467_v48, %v2466_v40  ;;  %v7927_v40 = vld [vmem:[#allocation4 + $0x2d8] sm:$0xff]  ;;  %v7931_v48 = vld [vmem:[#allocation4 + $0x2d0] sm:$0xff] }
 0xc5f   :  { %9212 = vst [vmem:[#allocation32_spill] sm:$0xff] %v7927_v40  ;;  %9213 = vst [vmem:[#allocation8_spill] sm:$0xff] %v7931_v48 }
 0xc60   :  { %9197 = vst [vmem:[#allocation21_spill] sm:$0xff] %v7752_v41  ;;  %2675 = vmatmul.mubr.f32.vlgmr.msra.gmra.mxu0 %v7752_v41  ;;  %5359 = vmatmul.mubr.f32.vlgmr.msra.gmra.mxu1 %v7752_v41 }
 0xc61   :  { %2769 = vmatpush1.msra.mxu0 %v7756_v14  ;;  %5362 = vmatpush3.msra.mxu1 %v7759_v51 }
 0xc62   :  { %2770 = vmatprep.subr.mxu0 %v7762_v52  ;;  %5363 = vmatprep.subr.mxu1 %v8985_v25 }
 0xc63   :  { %2771 = vmatpush1.msra.mxu0 %v7766_v53  ;;  %5364 = vmatpush3.msra.mxu1 %v7769_v54 }
 0xc64   :  { %2772 = vmatprep.subr.mxu0 %v7772_v58  ;;  %5365 = vmatprep.subr.mxu1 %v8985_v25 }
 0xc65   :  { %2773 = vmatpush1.msra.mxu0 %v7776_v61  ;;  %5366 = vmatpush3.msra.mxu1 %v7779_v28 }
 0xc66   :  { %2774 = vmatprep.subr.mxu0 %v7782_v35  ;;  %5367 = vmatprep.subr.mxu1 %v8985_v25 }
 0xc67   :  { %2775 = vmatpush1.msra.mxu0 %v7786_v9  ;;  %5368 = vmatpush3.msra.mxu1 %v7789_v10 }
 0xc68   :  { %2776 = vmatprep.subr.mxu0 %v7792_v23  ;;  %5369 = vmatprep.subr.mxu1 %v8985_v25 }
 0xc69   :  { %2777 = vmatpush1.msra.mxu0 %v7796_v13  ;;  %5370 = vmatpush3.msra.mxu1 %v7799_v26 }
 0xc6a   :  { %2778 = vmatprep.subr.mxu0 %v7802_v49  ;;  %5371 = vmatprep.subr.mxu1 %v8985_v25 }
 0xc6b   :  { %2779 = vmatpush1.msra.mxu0 %v7806_v8  ;;  %5372 = vmatpush3.msra.mxu1 %v7809_v32 }
 0xc6c   :  { %2780 = vmatprep.subr.mxu0 %v7812_v2  ;;  %5373 = vmatprep.subr.mxu1 %v8985_v25 }
 0xc6d   :  { %2781 = vmatpush1.msra.mxu0 %v7816_v59  ;;  %5374 = vmatpush3.msra.mxu1 %v7819_v31 }
 0xc6e   :  { %2782 = vmatprep.subr.mxu0 %v7822_v4  ;;  %5375 = vmatprep.subr.mxu1 %v8985_v25 }
 0xc6f   :  { %2783 = vmatpush1.msra.mxu0 %v7826_v11  ;;  %5376 = vmatpush3.msra.mxu1 %v7829_v60 }
 0xc70   :  { %2784 = vmatprep.subr.mxu0 %v7832_v20  ;;  %5377 = vmatprep.subr.mxu1 %v8985_v25 }
 0xc71   :  { %2785 = vmatpush1.msra.mxu0 %v7836_v16  ;;  %5378 = vmatpush3.msra.mxu1 %v7839_v0 }
 0xc72   :  { %2786 = vmatprep.subr.mxu0 %v7842_v34  ;;  %5379 = vmatprep.subr.mxu1 %v8985_v25 }
 0xc73   :  { %2787 = vmatpush1.msra.mxu0 %v7846_v24  ;;  %5380 = vmatpush3.msra.mxu1 %v7849_v27 }
 0xc74   :  { %2788 = vmatprep.subr.mxu0 %v7852_v50  ;;  %5381 = vmatprep.subr.mxu1 %v8985_v25 }
 0xc75   :  { %2789 = vmatpush1.msra.mxu0 %v7856_v43  ;;  %5382 = vmatpush3.msra.mxu1 %v7859_v5 }
 0xc76   :  { %2790 = vmatprep.subr.mxu0 %v7862_v6  ;;  %5383 = vmatprep.subr.mxu1 %v8985_v25 }
 0xc77   :  { %2791 = vmatpush1.msra.mxu0 %v7866_v7  ;;  %5384 = vmatpush3.msra.mxu1 %v7869_v46 }
 0xc78   :  { %2792 = vmatprep.subr.mxu0 %v7872_v19  ;;  %5385 = vmatprep.subr.mxu1 %v8985_v25 }
 0xc79   :  { %2793 = vmatpush1.msra.mxu0 %v7876_v3  ;;  %5386 = vmatpush3.msra.mxu1 %v7879_v29 }
 0xc7a   :  { %2794 = vmatprep.subr.mxu0 %v7882_v62  ;;  %5387 = vmatprep.subr.mxu1 %v8985_v25 }
 0xc7b   :  { %2795 = vmatpush1.msra.mxu0 %v7886_v33  ;;  %5388 = vmatpush3.msra.mxu1 %v7889_v55 }
 0xc7c   :  { %2796 = vmatprep.subr.mxu0 %v7892_v18  ;;  %5389 = vmatprep.subr.mxu1 %v8985_v25 }
 0xc7d   :  { %2797 = vmatpush1.msra.mxu0 %v7896_v22  ;;  %5390 = vmatpush3.msra.mxu1 %v7899_v21 }
 0xc7e   :  { %2798 = vmatprep.subr.mxu0 %v7902_v30  ;;  %5391 = vmatprep.subr.mxu1 %v8985_v25 }
 0xc7f   :  { %2799 = vmatpush1.msra.mxu0 %v7906_v42  ;;  %2832 = vmatprep.mubr.f32.mxu0 %v8985_v25 }
 0xc80   :  { %5392 = vmatpush3.msra.mxu1 %v7910_v36  ;;  %5393 = vmatprep.mubr.msk.f32.mxu1 %vm6157_vm2, %v8985_v25 }
 0xc81   :  { %2833 = vmatmul.mubr.f32.vlgmr.msra.gmra.mxu0 %v9208_v44  ;;  %5394 = vmatmul.mubr.f32.vlgmr.msra.gmra.mxu1 %v9208_v44  ;;  %v7934_v44 = vld [vmem:[#allocation4 + $0x2e0] sm:$0xff] }
 0xc82   :  { %2909 = vmatprep.subr.mxu0 %v7917_v45  ;;  %5396 = vmatprep.subr.mxu1 %v8985_v25  ;;  %9214 = vst [vmem:[#allocation33_spill] sm:$0xff] %v7934_v44 }
 0xc83   :  { %2910 = vmatpush1.msra.mxu0 %v7921_v39  ;;  %5397 = vmatpush3.msra.mxu1 %v7924_v47  ;;  %v7941_v47 = vld [vmem:[#allocation4 + $0x2b8] sm:$0xff]  ;;  %v7947_v39 = vld [vmem:[#allocation4 + $0x2a8] sm:$0xff] }
 0xc84   :  { %2911 = vmatprep.subr.mxu0 %v7927_v40  ;;  %5398 = vmatprep.subr.mxu1 %v8985_v25  ;;  %9216 = vst [vmem:[#allocation35_spill] sm:$0xff] %v7941_v47  ;;  %v7944_v40 = vld [vmem:[#allocation4 + $0x2c8] sm:$0xff]  ;;  %9218 = vst [vmem:[#allocation36_spill] sm:$0xff] %v7947_v39 }
 0xc85   :  { %2912 = vmatpush1.msra.mxu0 %v7931_v48  ;;  %5399 = vmatpush3.msra.mxu1 %v7934_v44  ;;  %9217 = vst [vmem:[#allocation25_spill] sm:$0xff] %v7944_v40  ;;  %v7951_v44 = vld [vmem:[#allocation4 + $0x2a0] sm:$0xff]  ;;  %v7957_v48 = vld [vmem:[#allocation4 + $0x290] sm:$0xff] }
 0xc86   :  { %2913 = vmatprep.subr.mxu0 %v7937_v1  ;;  %5400 = vmatprep.subr.mxu1 %v8985_v25  ;;  %9219 = vst [vmem:[#allocation37_spill] sm:$0xff] %v7951_v44  ;;  %v7954_v1 = vld [vmem:[#allocation4 + $0x2b0] sm:$0xff]  ;;  %9221 = vst [vmem:[#allocation39_spill] sm:$0xff] %v7957_v48 }
 0xc87   :  { %2914 = vmatpush1.msra.mxu0 %v7941_v47  ;;  %5401 = vmatpush3.msra.mxu1 %v7944_v40  ;;  %9220 = vst [vmem:[#allocation38_spill] sm:$0xff] %v7954_v1  ;;  %v7961_v40 = vld [vmem:[#allocation4 + $0x288] sm:$0xff]  ;;  %v7967_v47 = vld [vmem:[#allocation4 + $0x278] sm:$0xff] }
 0xc88   :  { %2915 = vmatprep.subr.mxu0 %v7947_v39  ;;  %5402 = vmatprep.subr.mxu1 %v8985_v25  ;;  %9222 = vst [vmem:[#allocation40_spill] sm:$0xff] %v7961_v40  ;;  %v7964_v39 = vld [vmem:[#allocation4 + $0x298] sm:$0xff]  ;;  %9224 = vst [vmem:[#allocation42_spill] sm:$0xff] %v7967_v47 }
 0xc89   :  { %2916 = vmatpush1.msra.mxu0 %v7951_v44  ;;  %5403 = vmatpush3.msra.mxu1 %v7954_v1  ;;  %9223 = vst [vmem:[#allocation41_spill] sm:$0xff] %v7964_v39  ;;  %v7971_v1 = vld [vmem:[#allocation4 + $0x270] sm:$0xff]  ;;  %v7977_v44 = vld [vmem:[#allocation4 + $0x260] sm:$0xff] }
 0xc8a   :  { %2917 = vmatprep.subr.mxu0 %v7957_v48  ;;  %5404 = vmatprep.subr.mxu1 %v8985_v25  ;;  %9225 = vst [vmem:[#allocation43_spill] sm:$0xff] %v7971_v1  ;;  %v7974_v48 = vld [vmem:[#allocation4 + $0x280] sm:$0xff]  ;;  %9227 = vst [vmem:[#allocation45_spill] sm:$0xff] %v7977_v44 }
 0xc8b   :  { %2918 = vmatpush1.msra.mxu0 %v7961_v40  ;;  %5405 = vmatpush3.msra.mxu1 %v7964_v39  ;;  %9226 = vst [vmem:[#allocation44_spill] sm:$0xff] %v7974_v48  ;;  %v7981_v39 = vld [vmem:[#allocation4 + $0x258] sm:$0xff]  ;;  %v7987_v40 = vld [vmem:[#allocation4 + $0x248] sm:$0xff] }
 0xc8c   :  { %2919 = vmatprep.subr.mxu0 %v7967_v47  ;;  %5406 = vmatprep.subr.mxu1 %v8985_v25  ;;  %9228 = vst [vmem:[#allocation46_spill] sm:$0xff] %v7981_v39  ;;  %v7984_v47 = vld [vmem:[#allocation4 + $0x268] sm:$0xff]  ;;  %9230 = vst [vmem:[#allocation48_spill] sm:$0xff] %v7987_v40 }
 0xc8d   :  { %2920 = vmatpush1.msra.mxu0 %v7971_v1  ;;  %5407 = vmatpush3.msra.mxu1 %v7974_v48  ;;  %9229 = vst [vmem:[#allocation47_spill] sm:$0xff] %v7984_v47  ;;  %v7991_v48 = vld [vmem:[#allocation4 + $0x240] sm:$0xff]  ;;  %v7997_v1 = vld [vmem:[#allocation4 + $0x230] sm:$0xff] }
 0xc8e   :  { %2921 = vmatprep.subr.mxu0 %v7977_v44  ;;  %5408 = vmatprep.subr.mxu1 %v8985_v25  ;;  %9231 = vst [vmem:[#allocation49_spill] sm:$0xff] %v7991_v48  ;;  %v7994_v44 = vld [vmem:[#allocation4 + $0x250] sm:$0xff]  ;;  %9233 = vst [vmem:[#allocation51_spill] sm:$0xff] %v7997_v1 }
 0xc8f   :  { %2922 = vmatpush1.msra.mxu0 %v7981_v39  ;;  %5409 = vmatpush3.msra.mxu1 %v7984_v47  ;;  %9232 = vst [vmem:[#allocation50_spill] sm:$0xff] %v7994_v44  ;;  %v8001_v47 = vld [vmem:[#allocation4 + $0x228] sm:$0xff]  ;;  %v8007_v39 = vld [vmem:[#allocation4 + $0x218] sm:$0xff] }
 0xc90   :  { %2923 = vmatprep.subr.mxu0 %v7987_v40  ;;  %5410 = vmatprep.subr.mxu1 %v8985_v25  ;;  %9234 = vst [vmem:[#allocation52_spill] sm:$0xff] %v8001_v47  ;;  %v8004_v40 = vld [vmem:[#allocation4 + $0x238] sm:$0xff]  ;;  %9236 = vst [vmem:[#allocation54_spill] sm:$0xff] %v8007_v39 }
 0xc91   :  { %2924 = vmatpush1.msra.mxu0 %v7991_v48  ;;  %5411 = vmatpush3.msra.mxu1 %v7994_v44  ;;  %9235 = vst [vmem:[#allocation53_spill] sm:$0xff] %v8004_v40  ;;  %v8011_v44 = vld [vmem:[#allocation4 + $0x210] sm:$0xff]  ;;  %v8017_v48 = vld [vmem:[#allocation4 + $0x200] sm:$0xff] }
 0xc92   :  { %2925 = vmatprep.subr.mxu0 %v7997_v1  ;;  %5412 = vmatprep.subr.mxu1 %v8985_v25  ;;  %9237 = vst [vmem:[#allocation55_spill] sm:$0xff] %v8011_v44  ;;  %v8014_v1 = vld [vmem:[#allocation4 + $0x220] sm:$0xff]  ;;  %9239 = vst [vmem:[#allocation57_spill] sm:$0xff] %v8017_v48 }
 0xc93   :  { %2926 = vmatpush1.msra.mxu0 %v8001_v47  ;;  %5413 = vmatpush3.msra.mxu1 %v8004_v40  ;;  %9238 = vst [vmem:[#allocation56_spill] sm:$0xff] %v8014_v1  ;;  %v8021_v40 = vld [vmem:[#allocation4 + $0x1f8] sm:$0xff]  ;;  %v8027_v47 = vld [vmem:[#allocation4 + $0x1e8] sm:$0xff] }
 0xc94   :  { %2927 = vmatprep.subr.mxu0 %v8007_v39  ;;  %5414 = vmatprep.subr.mxu1 %v8985_v25  ;;  %9240 = vst [vmem:[#allocation58_spill] sm:$0xff] %v8021_v40  ;;  %v8024_v39 = vld [vmem:[#allocation4 + $0x208] sm:$0xff]  ;;  %9242 = vst [vmem:[#allocation60_spill] sm:$0xff] %v8027_v47 }
 0xc95   :  { %2928 = vmatpush1.msra.mxu0 %v8011_v44  ;;  %5415 = vmatpush3.msra.mxu1 %v8014_v1  ;;  %9241 = vst [vmem:[#allocation59_spill] sm:$0xff] %v8024_v39  ;;  %v8031_v1 = vld [vmem:[#allocation4 + $0x1e0] sm:$0xff]  ;;  %v8037_v44 = vld [vmem:[#allocation4 + $0x1d0] sm:$0xff] }
 0xc96   :  { %2929 = vmatprep.subr.mxu0 %v8017_v48  ;;  %5416 = vmatprep.subr.mxu1 %v8985_v25  ;;  %9243 = vst [vmem:[#allocation61_spill] sm:$0xff] %v8031_v1  ;;  %v8034_v48 = vld [vmem:[#allocation4 + $0x1f0] sm:$0xff]  ;;  %9245 = vst [vmem:[#allocation63_spill] sm:$0xff] %v8037_v44 }
 0xc97   :  { %2930 = vmatpush1.msra.mxu0 %v8021_v40  ;;  %5417 = vmatpush3.msra.mxu1 %v8024_v39  ;;  %9244 = vst [vmem:[#allocation62_spill] sm:$0xff] %v8034_v48  ;;  %v8041_v39 = vld [vmem:[#allocation4 + $0x1c8] sm:$0xff]  ;;  %v8047_v40 = vld [vmem:[#allocation4 + $0x1b8] sm:$0xff] }
 0xc98   :  { %2931 = vmatprep.subr.mxu0 %v8027_v47  ;;  %5418 = vmatprep.subr.mxu1 %v8985_v25  ;;  %9246 = vst [vmem:[#allocation64_spill] sm:$0xff] %v8041_v39  ;;  %v8044_v47 = vld [vmem:[#allocation4 + $0x1d8] sm:$0xff]  ;;  %9248 = vst [vmem:[#allocation66_spill] sm:$0xff] %v8047_v40 }
 0xc99   :  { %2932 = vmatpush1.msra.mxu0 %v8031_v1  ;;  %5419 = vmatpush3.msra.mxu1 %v8034_v48  ;;  %9247 = vst [vmem:[#allocation65_spill] sm:$0xff] %v8044_v47  ;;  %v8051_v48 = vld [vmem:[#allocation4 + $0x1b0] sm:$0xff]  ;;  %v8057_v1 = vld [vmem:[#allocation4 + $0x1a0] sm:$0xff] }
 0xc9a   :  { %2933 = vmatprep.subr.mxu0 %v8037_v44  ;;  %5420 = vmatprep.subr.mxu1 %v8985_v25  ;;  %9249 = vst [vmem:[#allocation67_spill] sm:$0xff] %v8051_v48  ;;  %v8054_v44 = vld [vmem:[#allocation4 + $0x1c0] sm:$0xff]  ;;  %9251 = vst [vmem:[#allocation69_spill] sm:$0xff] %v8057_v1 }
 0xc9b   :  { %2934 = vmatpush1.msra.mxu0 %v8041_v39  ;;  %5421 = vmatpush3.msra.mxu1 %v8044_v47  ;;  %9250 = vst [vmem:[#allocation68_spill] sm:$0xff] %v8054_v44  ;;  %v8061_v47 = vld [vmem:[#allocation4 + $0x198] sm:$0xff]  ;;  %v8067_v39 = vld [vmem:[#allocation4 + $0x188] sm:$0xff] }
 0xc9c   :  { %2935 = vmatprep.subr.mxu0 %v8047_v40  ;;  %5422 = vmatprep.subr.mxu1 %v8985_v25  ;;  %9252 = vst [vmem:[#allocation70_spill] sm:$0xff] %v8061_v47  ;;  %v8064_v40 = vld [vmem:[#allocation4 + $0x1a8] sm:$0xff]  ;;  %9254 = vst [vmem:[#allocation72_spill] sm:$0xff] %v8067_v39 }
 0xc9d   :  { %2936 = vmatpush1.msra.mxu0 %v8051_v48  ;;  %5423 = vmatpush3.msra.mxu1 %v8054_v44  ;;  %9253 = vst [vmem:[#allocation71_spill] sm:$0xff] %v8064_v40  ;;  %v8071_v44 = vld [vmem:[#allocation4 + $0x180] sm:$0xff] }
 0xc9e   :  { %2937 = vmatprep.subr.mxu0 %v8057_v1  ;;  %5424 = vmatprep.subr.mxu1 %v8985_v25  ;;  %9255 = vst [vmem:[#allocation73_spill] sm:$0xff] %v8071_v44  ;;  %v8074_v1 = vld [vmem:[#allocation4 + $0x190] sm:$0xff] }
 0xc9f   :  { %2938 = vmatpush1.msra.mxu0 %v8061_v47  ;;  %5425 = vmatpush3.msra.mxu1 %v8064_v40  ;;  %9256 = vst [vmem:[#allocation74_spill] sm:$0xff] %v8074_v1 }
 0xca0   :  { %2939 = vmatprep.subr.mxu0 %v8067_v39  ;;  %5426 = vmatprep.subr.mxu1 %v8985_v25  ;;  %v2535_v39 = vpop.f32.mrf.mxu0 }
 0xca1   :  { %2940 = vmatpush1.msra.mxu0 %v8071_v44  ;;  %5427 = vmatpush3.msra.mxu1 %v8074_v1  ;;  %v2536_v45 = vadd.f32 %v2535_v39, %v7575_v57  ;;  %v2607_v39 = vadd.f32 %v7749_v37, %v7594_v17  ;;  %v9258_v37 = vld [vmem:[#allocation23_spill] sm:$0xff] }
 0xca2   :  { %2973 = vmatprep.mubr.f32.mxu0 %v8985_v25  ;;  %5428 = vmatprep.mubr.msk.f32.mxu1 %vm6157_vm2, %v8985_v25  ;;  %v2537_v40 = vpop.f32.mrf.mxu0 }
 0xca3   :  { %3067 = vmatprep.subr.mxu0 %v7738_v15  ;;  %5431 = vmatprep.subr.mxu1 %v8985_v25  ;;  %v2538_v22 = vadd.f32 %v2537_v40, %v9196_v12 }
 0xd20   :  { %v2676_v47 = vpop.f32.mrf.mxu0  ;;  %v2747_v48 = vpop.f32.mrf.mxu1 }
 0xd21   :  { %v2677_v44 = vadd.f32 %v2676_v47, %v7578_v63  ;;  %v2748_v62 = vadd.f32 %v2747_v48, %v7591_v56  ;;  %v9262_v48 = vld [vmem:[#allocation19_spill] sm:$0xff] }
 0xd22   :  { %v2678_v36 = vpop.f32.mrf.mxu0  ;;  %v5360_v42 = vpop.f32.mrf.mxu1 }
 0xd23   :  { %v2751_v1 = vadd.f32 %v2677_v44, %v2536_v45  ;;  %v2679_v21 = vadd.f32 %v2678_v36, %v7581_v38  ;;  %v9263_v44 = vld [vmem:[#allocation22_spill] sm:$0xff] }
 0xd25   :  { %v2752_v30 = vmul.f32 0.5, %v2751_v1  ;;  %v2756_v15 = vadd.f32 %v2679_v21, %v2538_v22 }
 0xd27   :  { %5829 = vtanh.f32 %v2752_v30  ;;  %v2757_v18 = vmul.f32 0.5, %v2756_v15 }
 0xd29   :  { %5831 = vtanh.f32 %v2757_v18 }
 0xd34   :  { %v5830_v55 = vpop.eup %5829 }
 0xd35   :  { %v2754_v33 = vadd.f32 1.0, %v5830_v55 }
 0xd36   :  { %v5832_v1 = vpop.eup %5831 }
 0xd37   :  { %v2755_v29 = vmul.f32 0.5, %v2754_v33  ;;  %v2759_v45 = vadd.f32 1.0, %v5832_v1  ;;  %v9261_v33 = vld [vmem:[#allocation16_spill] sm:$0xff]  ;;  %v9267_v1 = vld [vmem:[#allocation11_spill] sm:$0xff] }
 0xd39   :  { %v2761_v47 = vmul.f32 %v2755_v29, %v2748_v62  ;;  %v2760_v30 = vmul.f32 0.5, %v2759_v45  ;;  %v9259_v29 = vld [vmem:[#allocation15_spill] sm:$0xff]  ;;  %v9260_v62 = vld [vmem:[#allocation24_spill] sm:$0xff] }
 0xd3a   :  { %v9268_v45 = vld [vmem:[#allocation12_spill] sm:$0xff] }
 0xd3b   :  { %v2762_v42 = vadd.f32 %v2761_v47, %v2607_v39  ;;  %v2764_v22 = vsub.f32 1.0, %v2760_v30  ;;  %v2766_v55 = vmul.f32 %v2760_v30, %v7752_v41  ;;  %v9264_v39 = vld [vmem:[#allocation10_spill] sm:$0xff]  ;;  %v9265_v47 = vld [vmem:[#allocation27_spill] sm:$0xff] }
 0xd3c   :  { %v9270_v30 = vld [vmem:[#allocation30_spill] sm:$0xff] }
 0xd3d   :  { %5833 = vtanh.f32 %v2762_v42  ;;  %v9266_v42 = vld [vmem:[#allocation14_spill] sm:$0xff] }
 0xd3e   :  { %v9275_v41 = vld [vmem:[#allocation34_spill] sm:$0xff] }
 0xd41   :  { %v8089_v36 = vpop.f32.mrf.mxu1 }
 0xd43   :  { %v5395_v40 = vpop.f32.mrf.mxu1 }
 0xd44   :  { %v9269_v40 = vld [vmem:[#allocation28_spill] sm:$0xff] }
 0xd4a   :  { %v5834_v15 = vpop.eup %5833 }
 0xd4b   :  { %v2765_v18 = vmul.f32 %v5834_v15, %v2764_v22  ;;  %v9271_v22 = vld [vmem:[#allocation31_spill] sm:$0xff]  ;;  %v9272_v15 = vld [vmem:[#allocation32_spill] sm:$0xff] }
 0xd4d   :  { %v8092_v21 = vadd.f32 %v2766_v55, %v2765_v18  ;;  %v9273_v18 = vld [vmem:[#allocation8_spill] sm:$0xff]  ;;  %v9274_v55 = vld [vmem:[#allocation33_spill] sm:$0xff] }
 0xd4f   :  { %9257 = vst [vmem:[#allocation75_spill] sm:$0xff] %v8092_v21  ;;  %2974 = vmatmul.mubr.f32.vlgmr.msra.gmra.mxu0 %v8092_v21  ;;  %5429 = vmatmul.mubr.f32.vlgmr.msra.gmra.mxu1 %v8092_v21 }
 0xd50   :  { %3068 = vmatpush1.msra.mxu0 %v7756_v14  ;;  %5432 = vmatpush3.msra.mxu1 %v7759_v51 }
 0xd51   :  { %3069 = vmatprep.subr.mxu0 %v7762_v52  ;;  %5433 = vmatprep.subr.mxu1 %v8985_v25 }
 0xd52   :  { %3070 = vmatpush1.msra.mxu0 %v7766_v53  ;;  %5434 = vmatpush3.msra.mxu1 %v7769_v54 }
 0xd53   :  { %3071 = vmatprep.subr.mxu0 %v7772_v58  ;;  %5435 = vmatprep.subr.mxu1 %v8985_v25 }
 0xd54   :  { %3072 = vmatpush1.msra.mxu0 %v7776_v61  ;;  %5436 = vmatpush3.msra.mxu1 %v7779_v28 }
 0xd55   :  { %3073 = vmatprep.subr.mxu0 %v7782_v35  ;;  %5437 = vmatprep.subr.mxu1 %v8985_v25 }
 0xd56   :  { %3074 = vmatpush1.msra.mxu0 %v7786_v9  ;;  %5438 = vmatpush3.msra.mxu1 %v7789_v10 }
 0xd57   :  { %3075 = vmatprep.subr.mxu0 %v7792_v23  ;;  %5439 = vmatprep.subr.mxu1 %v8985_v25 }
 0xd58   :  { %3076 = vmatpush1.msra.mxu0 %v7796_v13  ;;  %5440 = vmatpush3.msra.mxu1 %v7799_v26 }
 0xd59   :  { %3077 = vmatprep.subr.mxu0 %v7802_v49  ;;  %5441 = vmatprep.subr.mxu1 %v8985_v25 }
 0xd5a   :  { %3078 = vmatpush1.msra.mxu0 %v7806_v8  ;;  %5442 = vmatpush3.msra.mxu1 %v7809_v32 }
 0xd5b   :  { %3079 = vmatprep.subr.mxu0 %v7812_v2  ;;  %5443 = vmatprep.subr.mxu1 %v8985_v25 }
 0xd5c   :  { %3080 = vmatpush1.msra.mxu0 %v7816_v59  ;;  %5444 = vmatpush3.msra.mxu1 %v7819_v31 }
 0xd5d   :  { %3081 = vmatprep.subr.mxu0 %v7822_v4  ;;  %5445 = vmatprep.subr.mxu1 %v8985_v25 }
 0xd5e   :  { %3082 = vmatpush1.msra.mxu0 %v7826_v11  ;;  %5446 = vmatpush3.msra.mxu1 %v7829_v60 }
 0xd5f   :  { %3083 = vmatprep.subr.mxu0 %v7832_v20  ;;  %5447 = vmatprep.subr.mxu1 %v8985_v25 }
 0xd60   :  { %3084 = vmatpush1.msra.mxu0 %v7836_v16  ;;  %5448 = vmatpush3.msra.mxu1 %v7839_v0 }
 0xd61   :  { %3085 = vmatprep.subr.mxu0 %v7842_v34  ;;  %5449 = vmatprep.subr.mxu1 %v8985_v25 }
 0xd62   :  { %3086 = vmatpush1.msra.mxu0 %v7846_v24  ;;  %5450 = vmatpush3.msra.mxu1 %v7849_v27 }
 0xd63   :  { %3087 = vmatprep.subr.mxu0 %v7852_v50  ;;  %5451 = vmatprep.subr.mxu1 %v8985_v25 }
 0xd64   :  { %3088 = vmatpush1.msra.mxu0 %v7856_v43  ;;  %5452 = vmatpush3.msra.mxu1 %v7859_v5 }
 0xd65   :  { %3089 = vmatprep.subr.mxu0 %v7862_v6  ;;  %5453 = vmatprep.subr.mxu1 %v8985_v25 }
 0xd66   :  { %3090 = vmatpush1.msra.mxu0 %v7866_v7  ;;  %5454 = vmatpush3.msra.mxu1 %v7869_v46 }
 0xd67   :  { %3091 = vmatprep.subr.mxu0 %v7872_v19  ;;  %5455 = vmatprep.subr.mxu1 %v8985_v25 }
 0xd68   :  { %3092 = vmatpush1.msra.mxu0 %v7876_v3  ;;  %5456 = vmatpush3.msra.mxu1 %v9258_v37 }
 0xd69   :  { %3093 = vmatprep.subr.mxu0 %v9259_v29  ;;  %5457 = vmatprep.subr.mxu1 %v8985_v25 }
 0xd6a   :  { %3094 = vmatpush1.msra.mxu0 %v9260_v62  ;;  %5458 = vmatpush3.msra.mxu1 %v9261_v33 }
 0xd6b   :  { %3095 = vmatprep.subr.mxu0 %v9262_v48  ;;  %5459 = vmatprep.subr.mxu1 %v8985_v25 }
 0xd6c   :  { %3096 = vmatpush1.msra.mxu0 %v9263_v44  ;;  %5460 = vmatpush3.msra.mxu1 %v9264_v39 }
 0xd6d   :  { %3097 = vmatprep.subr.mxu0 %v9265_v47  ;;  %5461 = vmatprep.subr.mxu1 %v8985_v25 }
 0xd6e   :  { %3098 = vmatpush1.msra.mxu0 %v9266_v42  ;;  %3131 = vmatprep.mubr.f32.mxu0 %v8985_v25 }
 0xd6f   :  { %5462 = vmatpush3.msra.mxu1 %v9267_v1  ;;  %5463 = vmatprep.mubr.msk.f32.mxu1 %vm6157_vm2, %v8985_v25  ;;  %v9278_v1 = vld [vmem:[#allocation36_spill] sm:$0xff] }
 0xd70   :  { %3132 = vmatmul.mubr.f32.vlgmr.msra.gmra.mxu0 %v9268_v45  ;;  %5464 = vmatmul.mubr.f32.vlgmr.msra.gmra.mxu1 %v9268_v45  ;;  %v9276_v45 = vld [vmem:[#allocation35_spill] sm:$0xff] }
 0xd71   :  { %3208 = vmatprep.subr.mxu0 %v9269_v40  ;;  %5466 = vmatprep.subr.mxu1 %v8985_v25  ;;  %v9277_v40 = vld [vmem:[#allocation25_spill] sm:$0xff] }
 0xd72   :  { %3209 = vmatpush1.msra.mxu0 %v9270_v30  ;;  %5467 = vmatpush3.msra.mxu1 %v9271_v22  ;;  %v9279_v22 = vld [vmem:[#allocation37_spill] sm:$0xff]  ;;  %v9281_v30 = vld [vmem:[#allocation39_spill] sm:$0xff] }
 0xd73   :  { %3210 = vmatprep.subr.mxu0 %v9272_v15  ;;  %5468 = vmatprep.subr.mxu1 %v8985_v25  ;;  %v9280_v15 = vld [vmem:[#allocation38_spill] sm:$0xff] }
 0xd74   :  { %3211 = vmatpush1.msra.mxu0 %v9273_v18  ;;  %5469 = vmatpush3.msra.mxu1 %v9274_v55  ;;  %v9282_v55 = vld [vmem:[#allocation40_spill] sm:$0xff]  ;;  %v9284_v18 = vld [vmem:[#allocation42_spill] sm:$0xff] }
 0xd75   :  { %3212 = vmatprep.subr.mxu0 %v9275_v41  ;;  %5470 = vmatprep.subr.mxu1 %v8985_v25  ;;  %v9283_v41 = vld [vmem:[#allocation41_spill] sm:$0xff] }
 0xd76   :  { %3213 = vmatpush1.msra.mxu0 %v9276_v45  ;;  %5471 = vmatpush3.msra.mxu1 %v9277_v40  ;;  %v9285_v40 = vld [vmem:[#allocation43_spill] sm:$0xff]  ;;  %v9287_v45 = vld [vmem:[#allocation45_spill] sm:$0xff] }
 0xd77   :  { %3214 = vmatprep.subr.mxu0 %v9278_v1  ;;  %5472 = vmatprep.subr.mxu1 %v8985_v25  ;;  %v9286_v1 = vld [vmem:[#allocation44_spill] sm:$0xff] }
 0xd78   :  { %3215 = vmatpush1.msra.mxu0 %v9279_v22  ;;  %5473 = vmatpush3.msra.mxu1 %v9280_v15  ;;  %v9288_v15 = vld [vmem:[#allocation46_spill] sm:$0xff]  ;;  %v9290_v22 = vld [vmem:[#allocation48_spill] sm:$0xff] }
 0xd79   :  { %3216 = vmatprep.subr.mxu0 %v9281_v30  ;;  %5474 = vmatprep.subr.mxu1 %v8985_v25  ;;  %v9289_v30 = vld [vmem:[#allocation47_spill] sm:$0xff] }
 0xd7a   :  { %3217 = vmatpush1.msra.mxu0 %v9282_v55  ;;  %5475 = vmatpush3.msra.mxu1 %v9283_v41  ;;  %v9291_v41 = vld [vmem:[#allocation49_spill] sm:$0xff]  ;;  %v9293_v55 = vld [vmem:[#allocation51_spill] sm:$0xff] }
 0xd7b   :  { %3218 = vmatprep.subr.mxu0 %v9284_v18  ;;  %5476 = vmatprep.subr.mxu1 %v8985_v25  ;;  %v9292_v18 = vld [vmem:[#allocation50_spill] sm:$0xff] }
 0xd7c   :  { %3219 = vmatpush1.msra.mxu0 %v9285_v40  ;;  %5477 = vmatpush3.msra.mxu1 %v9286_v1  ;;  %v9294_v1 = vld [vmem:[#allocation52_spill] sm:$0xff]  ;;  %v9296_v40 = vld [vmem:[#allocation54_spill] sm:$0xff] }
 0xd7d   :  { %3220 = vmatprep.subr.mxu0 %v9287_v45  ;;  %5478 = vmatprep.subr.mxu1 %v8985_v25  ;;  %v9295_v45 = vld [vmem:[#allocation53_spill] sm:$0xff] }
 0xd7e   :  { %3221 = vmatpush1.msra.mxu0 %v9288_v15  ;;  %5479 = vmatpush3.msra.mxu1 %v9289_v30  ;;  %v9297_v30 = vld [vmem:[#allocation55_spill] sm:$0xff]  ;;  %v9299_v15 = vld [vmem:[#allocation57_spill] sm:$0xff] }
 0xd7f   :  { %3222 = vmatprep.subr.mxu0 %v9290_v22  ;;  %5480 = vmatprep.subr.mxu1 %v8985_v25  ;;  %v9298_v22 = vld [vmem:[#allocation56_spill] sm:$0xff] }
 0xd80   :  { %3223 = vmatpush1.msra.mxu0 %v9291_v41  ;;  %5481 = vmatpush3.msra.mxu1 %v9292_v18  ;;  %v9300_v18 = vld [vmem:[#allocation58_spill] sm:$0xff]  ;;  %v9302_v41 = vld [vmem:[#allocation60_spill] sm:$0xff] }
 0xd81   :  { %3224 = vmatprep.subr.mxu0 %v9293_v55  ;;  %5482 = vmatprep.subr.mxu1 %v8985_v25  ;;  %v9301_v55 = vld [vmem:[#allocation59_spill] sm:$0xff] }
 0xd82   :  { %3225 = vmatpush1.msra.mxu0 %v9294_v1  ;;  %5483 = vmatpush3.msra.mxu1 %v9295_v45  ;;  %v9303_v45 = vld [vmem:[#allocation61_spill] sm:$0xff]  ;;  %v9305_v1 = vld [vmem:[#allocation63_spill] sm:$0xff] }
 0xd83   :  { %3226 = vmatprep.subr.mxu0 %v9296_v40  ;;  %5484 = vmatprep.subr.mxu1 %v8985_v25  ;;  %v9304_v40 = vld [vmem:[#allocation62_spill] sm:$0xff] }
 0xd84   :  { %3227 = vmatpush1.msra.mxu0 %v9297_v30  ;;  %5485 = vmatpush3.msra.mxu1 %v9298_v22  ;;  %v9306_v22 = vld [vmem:[#allocation64_spill] sm:$0xff]  ;;  %v9308_v30 = vld [vmem:[#allocation66_spill] sm:$0xff] }
 0xd85   :  { %3228 = vmatprep.subr.mxu0 %v9299_v15  ;;  %5486 = vmatprep.subr.mxu1 %v8985_v25  ;;  %v9307_v15 = vld [vmem:[#allocation65_spill] sm:$0xff] }
 0xd86   :  { %3229 = vmatpush1.msra.mxu0 %v9300_v18  ;;  %5487 = vmatpush3.msra.mxu1 %v9301_v55  ;;  %v9309_v55 = vld [vmem:[#allocation67_spill] sm:$0xff]  ;;  %v9311_v18 = vld [vmem:[#allocation69_spill] sm:$0xff] }
 0xd87   :  { %3230 = vmatprep.subr.mxu0 %v9302_v41  ;;  %5488 = vmatprep.subr.mxu1 %v8985_v25  ;;  %v9310_v41 = vld [vmem:[#allocation68_spill] sm:$0xff] }
 0xd88   :  { %3231 = vmatpush1.msra.mxu0 %v9303_v45  ;;  %5489 = vmatpush3.msra.mxu1 %v9304_v40  ;;  %v9312_v40 = vld [vmem:[#allocation70_spill] sm:$0xff]  ;;  %v9314_v45 = vld [vmem:[#allocation72_spill] sm:$0xff] }
 0xd89   :  { %3232 = vmatprep.subr.mxu0 %v9305_v1  ;;  %5490 = vmatprep.subr.mxu1 %v8985_v25  ;;  %v9313_v1 = vld [vmem:[#allocation71_spill] sm:$0xff] }
 0xd8a   :  { %3233 = vmatpush1.msra.mxu0 %v9306_v22  ;;  %5491 = vmatpush3.msra.mxu1 %v9307_v15  ;;  %v9315_v15 = vld [vmem:[#allocation73_spill] sm:$0xff] }
 0xd8b   :  { %3234 = vmatprep.subr.mxu0 %v9308_v30  ;;  %5492 = vmatprep.subr.mxu1 %v8985_v25  ;;  %v9316_v30 = vld [vmem:[#allocation74_spill] sm:$0xff] }
 0xd8c   :  { %3235 = vmatpush1.msra.mxu0 %v9309_v55  ;;  %5493 = vmatpush3.msra.mxu1 %v9310_v41 }
 0xd8d   :  { %3236 = vmatprep.subr.mxu0 %v9311_v18  ;;  %5494 = vmatprep.subr.mxu1 %v8985_v25  ;;  %v9317_v18 = vld [vmem:[#allocation18_spill] sm:$0xff] }
 0xd8e   :  { %3237 = vmatpush1.msra.mxu0 %v9312_v40  ;;  %5495 = vmatpush3.msra.mxu1 %v9313_v1  ;;  %v2834_v40 = vpop.f32.mrf.mxu0 }
 0xd8f   :  { %3238 = vmatprep.subr.mxu0 %v9314_v45  ;;  %5496 = vmatprep.subr.mxu1 %v8985_v25  ;;  %v2835_v45 = vadd.f32 %v2834_v40, %v7575_v57 }
 0xd90   :  { %3239 = vmatpush1.msra.mxu0 %v9315_v15  ;;  %5497 = vmatpush3.msra.mxu1 %v9316_v30  ;;  %v2836_v41 = vpop.f32.mrf.mxu0 }
 0xd91   :  { %3272 = vmatprep.mubr.f32.mxu0 %v8985_v25  ;;  %5498 = vmatprep.mubr.msk.f32.mxu1 %vm6157_vm2, %v8985_v25  ;;  %v2837_v44 = vadd.f32 %v2836_v41, %v9196_v12 }
 0xd92   :  { %3366 = vmatprep.subr.mxu0 %v9317_v18  ;;  %5501 = vmatprep.subr.mxu1 %v8985_v25 }
 0xe0f   :  { %v2975_v1 = vpop.f32.mrf.mxu0  ;;  %v3046_v55 = vpop.f32.mrf.mxu1 }
 0xe10   :  { %v2976_v22 = vadd.f32 %v2975_v1, %v7578_v63  ;;  %v3047_v29 = vadd.f32 %v3046_v55, %v7591_v56  ;;  %v2906_v1 = vadd.f32 %v8089_v36, %v7594_v17  ;;  %v9318_v36 = vld [vmem:[#allocation23_spill] sm:$0xff] }
 0xe11   :  { %v2977_v15 = vpop.f32.mrf.mxu0  ;;  %v5430_v42 = vpop.f32.mrf.mxu1  ;;  %v9322_v55 = vld [vmem:[#allocation19_spill] sm:$0xff] }
 0xe12   :  { %v3050_v30 = vadd.f32 %v2976_v22, %v2835_v45  ;;  %v2978_v39 = vadd.f32 %v2977_v15, %v7581_v38  ;;  %v9323_v45 = vld [vmem:[#allocation22_spill] sm:$0xff] }
 0xe14   :  { %v3051_v47 = vmul.f32 0.5, %v3050_v30  ;;  %v3055_v18 = vadd.f32 %v2978_v39, %v2837_v44 }
 0xe16   :  { %5835 = vtanh.f32 %v3051_v47  ;;  %v3056_v48 = vmul.f32 0.5, %v3055_v18 }
 0xe18   :  { %5837 = vtanh.f32 %v3056_v48 }
 0xe23   :  { %v5836_v33 = vpop.eup %5835 }
 0xe24   :  { %v3053_v62 = vadd.f32 1.0, %v5836_v33 }
 0xe25   :  { %v5838_v30 = vpop.eup %5837 }
 0xe26   :  { %v3054_v37 = vmul.f32 0.5, %v3053_v62  ;;  %v3058_v22 = vadd.f32 1.0, %v5838_v30  ;;  %v9321_v62 = vld [vmem:[#allocation16_spill] sm:$0xff]  ;;  %v9327_v30 = vld [vmem:[#allocation11_spill] sm:$0xff] }
 0xe28   :  { %v3060_v40 = vmul.f32 %v3054_v37, %v3047_v29  ;;  %v3059_v47 = vmul.f32 0.5, %v3058_v22  ;;  %v9319_v37 = vld [vmem:[#allocation15_spill] sm:$0xff]  ;;  %v9320_v29 = vld [vmem:[#allocation24_spill] sm:$0xff]  ;;  %v9328_v22 = vld [vmem:[#allocation29_spill] sm:$0xff] }
 0xe2a   :  { %v3061_v42 = vadd.f32 %v3060_v40, %v2906_v1  ;;  %v3063_v44 = vsub.f32 1.0, %v3059_v47  ;;  %v3065_v33 = vmul.f32 %v3059_v47, %v8092_v21  ;;  %v9324_v1 = vld [vmem:[#allocation10_spill] sm:$0xff]  ;;  %v9325_v40 = vld [vmem:[#allocation27_spill] sm:$0xff] }
 0xe2b   :  { %v9330_v47 = vld [vmem:[#allocation30_spill] sm:$0xff] }
 0xe2c   :  { %5839 = vtanh.f32 %v3061_v42  ;;  %v9326_v42 = vld [vmem:[#allocation14_spill] sm:$0xff] }
 0xe2d   :  { %v9335_v21 = vld [vmem:[#allocation34_spill] sm:$0xff] }
 0xe30   :  { %v8239_v15 = vpop.f32.mrf.mxu1 }
 0xe32   :  { %v5465_v41 = vpop.f32.mrf.mxu1 }
 0xe33   :  { %v9329_v41 = vld [vmem:[#allocation28_spill] sm:$0xff] }
 0xe39   :  { %v5840_v39 = vpop.eup %5839 }
 0xe3a   :  { %v3064_v48 = vmul.f32 %v5840_v39, %v3063_v44  ;;  %v9331_v44 = vld [vmem:[#allocation31_spill] sm:$0xff]  ;;  %v9332_v39 = vld [vmem:[#allocation32_spill] sm:$0xff] }
 0xe3c   :  { %v8242_v18 = vadd.f32 %v3065_v33, %v3064_v48  ;;  %v9333_v48 = vld [vmem:[#allocation8_spill] sm:$0xff]  ;;  %v9334_v33 = vld [vmem:[#allocation33_spill] sm:$0xff] }
 0xe3e   :  { %3273 = vmatmul.mubr.f32.vlgmr.msra.gmra.mxu0 %v8242_v18  ;;  %5499 = vmatmul.mubr.f32.vlgmr.msra.gmra.mxu1 %v8242_v18 }
 0xe3f   :  { %3367 = vmatpush1.msra.mxu0 %v7756_v14  ;;  %5502 = vmatpush3.msra.mxu1 %v7759_v51 }
 0xe40   :  { %3368 = vmatprep.subr.mxu0 %v7762_v52  ;;  %5503 = vmatprep.subr.mxu1 %v8985_v25 }
 0xe41   :  { %3369 = vmatpush1.msra.mxu0 %v7766_v53  ;;  %5504 = vmatpush3.msra.mxu1 %v7769_v54 }
 0xe42   :  { %3370 = vmatprep.subr.mxu0 %v7772_v58  ;;  %5505 = vmatprep.subr.mxu1 %v8985_v25 }
 0xe43   :  { %3371 = vmatpush1.msra.mxu0 %v7776_v61  ;;  %5506 = vmatpush3.msra.mxu1 %v7779_v28 }
 0xe44   :  { %3372 = vmatprep.subr.mxu0 %v7782_v35  ;;  %5507 = vmatprep.subr.mxu1 %v8985_v25 }
 0xe45   :  { %3373 = vmatpush1.msra.mxu0 %v7786_v9  ;;  %5508 = vmatpush3.msra.mxu1 %v7789_v10 }
 0xe46   :  { %3374 = vmatprep.subr.mxu0 %v7792_v23  ;;  %5509 = vmatprep.subr.mxu1 %v8985_v25 }
 0xe47   :  { %3375 = vmatpush1.msra.mxu0 %v7796_v13  ;;  %5510 = vmatpush3.msra.mxu1 %v7799_v26 }
 0xe48   :  { %3376 = vmatprep.subr.mxu0 %v7802_v49  ;;  %5511 = vmatprep.subr.mxu1 %v8985_v25 }
 0xe49   :  { %3377 = vmatpush1.msra.mxu0 %v7806_v8  ;;  %5512 = vmatpush3.msra.mxu1 %v7809_v32 }
 0xe4a   :  { %3378 = vmatprep.subr.mxu0 %v7812_v2  ;;  %5513 = vmatprep.subr.mxu1 %v8985_v25 }
 0xe4b   :  { %3379 = vmatpush1.msra.mxu0 %v7816_v59  ;;  %5514 = vmatpush3.msra.mxu1 %v7819_v31 }
 0xe4c   :  { %3380 = vmatprep.subr.mxu0 %v7822_v4  ;;  %5515 = vmatprep.subr.mxu1 %v8985_v25 }
 0xe4d   :  { %3381 = vmatpush1.msra.mxu0 %v7826_v11  ;;  %5516 = vmatpush3.msra.mxu1 %v7829_v60 }
 0xe4e   :  { %3382 = vmatprep.subr.mxu0 %v7832_v20  ;;  %5517 = vmatprep.subr.mxu1 %v8985_v25 }
 0xe4f   :  { %3383 = vmatpush1.msra.mxu0 %v7836_v16  ;;  %5518 = vmatpush3.msra.mxu1 %v7839_v0 }
 0xe50   :  { %3384 = vmatprep.subr.mxu0 %v7842_v34  ;;  %5519 = vmatprep.subr.mxu1 %v8985_v25 }
 0xe51   :  { %3385 = vmatpush1.msra.mxu0 %v7846_v24  ;;  %5520 = vmatpush3.msra.mxu1 %v7849_v27 }
 0xe52   :  { %3386 = vmatprep.subr.mxu0 %v7852_v50  ;;  %5521 = vmatprep.subr.mxu1 %v8985_v25 }
 0xe53   :  { %3387 = vmatpush1.msra.mxu0 %v7856_v43  ;;  %5522 = vmatpush3.msra.mxu1 %v7859_v5 }
 0xe54   :  { %3388 = vmatprep.subr.mxu0 %v7862_v6  ;;  %5523 = vmatprep.subr.mxu1 %v8985_v25 }
 0xe55   :  { %3389 = vmatpush1.msra.mxu0 %v7866_v7  ;;  %5524 = vmatpush3.msra.mxu1 %v7869_v46 }
 0xe56   :  { %3390 = vmatprep.subr.mxu0 %v7872_v19  ;;  %5525 = vmatprep.subr.mxu1 %v8985_v25 }
 0xe57   :  { %3391 = vmatpush1.msra.mxu0 %v7876_v3  ;;  %5526 = vmatpush3.msra.mxu1 %v9318_v36 }
 0xe58   :  { %3392 = vmatprep.subr.mxu0 %v9319_v37  ;;  %5527 = vmatprep.subr.mxu1 %v8985_v25 }
 0xe59   :  { %3393 = vmatpush1.msra.mxu0 %v9320_v29  ;;  %5528 = vmatpush3.msra.mxu1 %v9321_v62 }
 0xe5a   :  { %3394 = vmatprep.subr.mxu0 %v9322_v55  ;;  %5529 = vmatprep.subr.mxu1 %v8985_v25 }
 0xe5b   :  { %3395 = vmatpush1.msra.mxu0 %v9323_v45  ;;  %5530 = vmatpush3.msra.mxu1 %v9324_v1 }
 0xe5c   :  { %3396 = vmatprep.subr.mxu0 %v9325_v40  ;;  %5531 = vmatprep.subr.mxu1 %v8985_v25 }
 0xe5d   :  { %3397 = vmatpush1.msra.mxu0 %v9326_v42  ;;  %3430 = vmatprep.mubr.f32.mxu0 %v8985_v25 }
 0xe5e   :  { %5532 = vmatpush3.msra.mxu1 %v9327_v30  ;;  %5533 = vmatprep.mubr.msk.f32.mxu1 %vm6157_vm2, %v8985_v25  ;;  %v9338_v30 = vld [vmem:[#allocation36_spill] sm:$0xff] }
 0xe5f   :  { %3431 = vmatmul.mubr.f32.vlgmr.msra.gmra.mxu0 %v9328_v22  ;;  %5534 = vmatmul.mubr.f32.vlgmr.msra.gmra.mxu1 %v9328_v22  ;;  %v9336_v22 = vld [vmem:[#allocation35_spill] sm:$0xff] }
 0xe60   :  { %3507 = vmatprep.subr.mxu0 %v9329_v41  ;;  %5536 = vmatprep.subr.mxu1 %v8985_v25  ;;  %v9337_v41 = vld [vmem:[#allocation25_spill] sm:$0xff] }
 0xe61   :  { %3508 = vmatpush1.msra.mxu0 %v9330_v47  ;;  %5537 = vmatpush3.msra.mxu1 %v9331_v44  ;;  %v9339_v44 = vld [vmem:[#allocation37_spill] sm:$0xff]  ;;  %v9341_v47 = vld [vmem:[#allocation39_spill] sm:$0xff] }
 0xe62   :  { %3509 = vmatprep.subr.mxu0 %v9332_v39  ;;  %5538 = vmatprep.subr.mxu1 %v8985_v25  ;;  %v9340_v39 = vld [vmem:[#allocation38_spill] sm:$0xff] }
 0xe63   :  { %3510 = vmatpush1.msra.mxu0 %v9333_v48  ;;  %5539 = vmatpush3.msra.mxu1 %v9334_v33  ;;  %v9342_v33 = vld [vmem:[#allocation40_spill] sm:$0xff]  ;;  %v9344_v48 = vld [vmem:[#allocation42_spill] sm:$0xff] }
 0xe64   :  { %3511 = vmatprep.subr.mxu0 %v9335_v21  ;;  %5540 = vmatprep.subr.mxu1 %v8985_v25  ;;  %v9343_v21 = vld [vmem:[#allocation41_spill] sm:$0xff] }
 0xe65   :  { %3512 = vmatpush1.msra.mxu0 %v9336_v22  ;;  %5541 = vmatpush3.msra.mxu1 %v9337_v41  ;;  %v9345_v41 = vld [vmem:[#allocation43_spill] sm:$0xff]  ;;  %v9347_v22 = vld [vmem:[#allocation45_spill] sm:$0xff] }
 0xe66   :  { %3513 = vmatprep.subr.mxu0 %v9338_v30  ;;  %5542 = vmatprep.subr.mxu1 %v8985_v25  ;;  %v9346_v30 = vld [vmem:[#allocation44_spill] sm:$0xff] }
 0xe67   :  { %3514 = vmatpush1.msra.mxu0 %v9339_v44  ;;  %5543 = vmatpush3.msra.mxu1 %v9340_v39  ;;  %v9348_v39 = vld [vmem:[#allocation46_spill] sm:$0xff]  ;;  %v9350_v44 = vld [vmem:[#allocation48_spill] sm:$0xff] }
 0xe68   :  { %3515 = vmatprep.subr.mxu0 %v9341_v47  ;;  %5544 = vmatprep.subr.mxu1 %v8985_v25  ;;  %v9349_v47 = vld [vmem:[#allocation47_spill] sm:$0xff] }
 0xe69   :  { %3516 = vmatpush1.msra.mxu0 %v9342_v33  ;;  %5545 = vmatpush3.msra.mxu1 %v9343_v21  ;;  %v9351_v21 = vld [vmem:[#allocation49_spill] sm:$0xff]  ;;  %v9353_v33 = vld [vmem:[#allocation51_spill] sm:$0xff] }
 0xe6a   :  { %3517 = vmatprep.subr.mxu0 %v9344_v48  ;;  %5546 = vmatprep.subr.mxu1 %v8985_v25  ;;  %v9352_v48 = vld [vmem:[#allocation50_spill] sm:$0xff] }
 0xe6b   :  { %3518 = vmatpush1.msra.mxu0 %v9345_v41  ;;  %5547 = vmatpush3.msra.mxu1 %v9346_v30  ;;  %v9354_v30 = vld [vmem:[#allocation52_spill] sm:$0xff]  ;;  %v9356_v41 = vld [vmem:[#allocation54_spill] sm:$0xff] }
 0xe6c   :  { %3519 = vmatprep.subr.mxu0 %v9347_v22  ;;  %5548 = vmatprep.subr.mxu1 %v8985_v25  ;;  %v9355_v22 = vld [vmem:[#allocation53_spill] sm:$0xff] }
 0xe6d   :  { %3520 = vmatpush1.msra.mxu0 %v9348_v39  ;;  %5549 = vmatpush3.msra.mxu1 %v9349_v47  ;;  %v9357_v47 = vld [vmem:[#allocation55_spill] sm:$0xff]  ;;  %v9359_v39 = vld [vmem:[#allocation57_spill] sm:$0xff] }
 0xe6e   :  { %3521 = vmatprep.subr.mxu0 %v9350_v44  ;;  %5550 = vmatprep.subr.mxu1 %v8985_v25  ;;  %v9358_v44 = vld [vmem:[#allocation56_spill] sm:$0xff] }
 0xe6f   :  { %3522 = vmatpush1.msra.mxu0 %v9351_v21  ;;  %5551 = vmatpush3.msra.mxu1 %v9352_v48  ;;  %v9360_v48 = vld [vmem:[#allocation58_spill] sm:$0xff]  ;;  %v9362_v21 = vld [vmem:[#allocation60_spill] sm:$0xff] }
 0xe70   :  { %3523 = vmatprep.subr.mxu0 %v9353_v33  ;;  %5552 = vmatprep.subr.mxu1 %v8985_v25  ;;  %v9361_v33 = vld [vmem:[#allocation59_spill] sm:$0xff] }
 0xe71   :  { %3524 = vmatpush1.msra.mxu0 %v9354_v30  ;;  %5553 = vmatpush3.msra.mxu1 %v9355_v22  ;;  %v9363_v22 = vld [vmem:[#allocation61_spill] sm:$0xff]  ;;  %v9365_v30 = vld [vmem:[#allocation63_spill] sm:$0xff] }
 0xe72   :  { %3525 = vmatprep.subr.mxu0 %v9356_v41  ;;  %5554 = vmatprep.subr.mxu1 %v8985_v25  ;;  %v9364_v41 = vld [vmem:[#allocation62_spill] sm:$0xff] }
 0xe73   :  { %3526 = vmatpush1.msra.mxu0 %v9357_v47  ;;  %5555 = vmatpush3.msra.mxu1 %v9358_v44  ;;  %v9366_v44 = vld [vmem:[#allocation64_spill] sm:$0xff]  ;;  %v9368_v47 = vld [vmem:[#allocation66_spill] sm:$0xff] }
 0xe74   :  { %3527 = vmatprep.subr.mxu0 %v9359_v39  ;;  %5556 = vmatprep.subr.mxu1 %v8985_v25  ;;  %v9367_v39 = vld [vmem:[#allocation65_spill] sm:$0xff] }
 0xe75   :  { %3528 = vmatpush1.msra.mxu0 %v9360_v48  ;;  %5557 = vmatpush3.msra.mxu1 %v9361_v33  ;;  %v9369_v33 = vld [vmem:[#allocation67_spill] sm:$0xff]  ;;  %v9371_v48 = vld [vmem:[#allocation69_spill] sm:$0xff] }
 0xe76   :  { %3529 = vmatprep.subr.mxu0 %v9362_v21  ;;  %5558 = vmatprep.subr.mxu1 %v8985_v25  ;;  %v9370_v21 = vld [vmem:[#allocation68_spill] sm:$0xff] }
 0xe77   :  { %3530 = vmatpush1.msra.mxu0 %v9363_v22  ;;  %5559 = vmatpush3.msra.mxu1 %v9364_v41  ;;  %v9372_v41 = vld [vmem:[#allocation70_spill] sm:$0xff]  ;;  %v9374_v22 = vld [vmem:[#allocation72_spill] sm:$0xff] }
 0xe78   :  { %3531 = vmatprep.subr.mxu0 %v9365_v30  ;;  %5560 = vmatprep.subr.mxu1 %v8985_v25  ;;  %v9373_v30 = vld [vmem:[#allocation71_spill] sm:$0xff] }
 0xe79   :  { %3532 = vmatpush1.msra.mxu0 %v9366_v44  ;;  %5561 = vmatpush3.msra.mxu1 %v9367_v39  ;;  %v9375_v39 = vld [vmem:[#allocation73_spill] sm:$0xff] }
 0xe7a   :  { %3533 = vmatprep.subr.mxu0 %v9368_v47  ;;  %5562 = vmatprep.subr.mxu1 %v8985_v25  ;;  %v9376_v47 = vld [vmem:[#allocation74_spill] sm:$0xff] }
 0xe7b   :  { %3534 = vmatpush1.msra.mxu0 %v9369_v33  ;;  %5563 = vmatpush3.msra.mxu1 %v9370_v21 }
 0xe7c   :  { %3535 = vmatprep.subr.mxu0 %v9371_v48  ;;  %5564 = vmatprep.subr.mxu1 %v8985_v25  ;;  %v9377_v48 = vld [vmem:[#allocation18_spill] sm:$0xff] }
 0xe7d   :  { %3536 = vmatpush1.msra.mxu0 %v9372_v41  ;;  %5565 = vmatpush3.msra.mxu1 %v9373_v30  ;;  %v3133_v41 = vpop.f32.mrf.mxu0 }
 0xe7e   :  { %3537 = vmatprep.subr.mxu0 %v9374_v22  ;;  %5566 = vmatprep.subr.mxu1 %v8985_v25  ;;  %v3134_v22 = vadd.f32 %v3133_v41, %v7575_v57 }
 0xe7f   :  { %3538 = vmatpush1.msra.mxu0 %v9375_v39  ;;  %5567 = vmatpush3.msra.mxu1 %v9376_v47  ;;  %v3135_v21 = vpop.f32.mrf.mxu0 }
 0xe80   :  { %3571 = vmatprep.mubr.f32.mxu0 %v8985_v25  ;;  %5568 = vmatprep.mubr.msk.f32.mxu1 %vm6157_vm2, %v8985_v25  ;;  %v3136_v45 = vadd.f32 %v3135_v21, %v9196_v12 }
 0xe81   :  { %3665 = vmatprep.subr.mxu0 %v9377_v48  ;;  %5571 = vmatprep.subr.mxu1 %v8985_v25 }
 0xefe   :  { %v3274_v30 = vpop.f32.mrf.mxu0  ;;  %v3345_v33 = vpop.f32.mrf.mxu1 }
 0xeff   :  { %v3275_v44 = vadd.f32 %v3274_v30, %v7578_v63  ;;  %v3346_v37 = vadd.f32 %v3345_v33, %v7591_v56  ;;  %v3205_v30 = vadd.f32 %v8239_v15, %v7594_v17  ;;  %v9415_v15 = vld [vmem:[#allocation53_spill] sm:$0xff] }
 0xf00   :  { %v3276_v39 = vpop.f32.mrf.mxu0  ;;  %v5500_v42 = vpop.f32.mrf.mxu1  ;;  %v9419_v33 = vld [vmem:[#allocation57_spill] sm:$0xff] }
 0xf01   :  { %v3349_v47 = vadd.f32 %v3275_v44, %v3134_v22  ;;  %v3277_v1 = vadd.f32 %v3276_v39, %v7581_v38 }
 0xf03   :  { %v3350_v40 = vmul.f32 0.5, %v3349_v47  ;;  %v3354_v48 = vadd.f32 %v3277_v1, %v3136_v45 }
 0xf05   :  { %5841 = vtanh.f32 %v3350_v40  ;;  %v3355_v55 = vmul.f32 0.5, %v3354_v48  ;;  %v9420_v48 = vld [vmem:[#allocation58_spill] sm:$0xff] }
 0xf07   :  { %5843 = vtanh.f32 %v3355_v55 }
 0xf12   :  { %v5842_v62 = vpop.eup %5841 }
 0xf13   :  { %v3352_v29 = vadd.f32 1.0, %v5842_v62 }
 0xf14   :  { %v5844_v47 = vpop.eup %5843 }
 0xf15   :  { %v3353_v36 = vmul.f32 0.5, %v3352_v29  ;;  %v3357_v44 = vadd.f32 1.0, %v5844_v47  ;;  %v9418_v29 = vld [vmem:[#allocation56_spill] sm:$0xff]  ;;  %v9424_v47 = vld [vmem:[#allocation62_spill] sm:$0xff] }
 0xf17   :  { %v3359_v41 = vmul.f32 %v3353_v36, %v3346_v37  ;;  %v3358_v40 = vmul.f32 0.5, %v3357_v44  ;;  %v9416_v36 = vld [vmem:[#allocation54_spill] sm:$0xff]  ;;  %v9417_v37 = vld [vmem:[#allocation55_spill] sm:$0xff] }
 0xf18   :  { %v9425_v44 = vld [vmem:[#allocation63_spill] sm:$0xff] }
 0xf19   :  { %v3360_v42 = vadd.f32 %v3359_v41, %v3205_v30  ;;  %v3362_v45 = vsub.f32 1.0, %v3358_v40  ;;  %v3364_v62 = vmul.f32 %v3358_v40, %v8242_v18  ;;  %v9421_v30 = vld [vmem:[#allocation59_spill] sm:$0xff]  ;;  %v9422_v41 = vld [vmem:[#allocation60_spill] sm:$0xff]  ;;  %v9427_v40 = vld [vmem:[#allocation65_spill] sm:$0xff] }
 0xf1b   :  { %5845 = vtanh.f32 %v3360_v42  ;;  %v9423_v42 = vld [vmem:[#allocation61_spill] sm:$0xff] }
 0xf1f   :  { %v8389_v39 = vpop.f32.mrf.mxu1 }
 0xf21   :  { %v5535_v21 = vpop.f32.mrf.mxu1 }
 0xf22   :  { %v9426_v21 = vld [vmem:[#allocation64_spill] sm:$0xff] }
 0xf28   :  { %v5846_v1 = vpop.eup %5845 }
 0xf29   :  { %v3363_v55 = vmul.f32 %v5846_v1, %v3362_v45  ;;  %v9428_v45 = vld [vmem:[#allocation66_spill] sm:$0xff]  ;;  %v9429_v1 = vld [vmem:[#allocation67_spill] sm:$0xff] }
 0xf2b   :  { %v8392_v22 = vadd.f32 %v3364_v62, %v3363_v55  ;;  %v9430_v55 = vld [vmem:[#allocation68_spill] sm:$0xff]  ;;  %v9431_v62 = vld [vmem:[#allocation69_spill] sm:$0xff] }
 0xf2d   :  { %3572 = vmatmul.mubr.f32.vlgmr.msra.gmra.mxu0 %v8392_v22  ;;  %5569 = vmatmul.mubr.f32.vlgmr.msra.gmra.mxu1 %v8392_v22 }
 0xf2e   :  { %3666 = vmatpush1.msra.mxu0 %v7756_v14  ;;  %5572 = vmatpush3.msra.mxu1 %v7759_v51  ;;  %v9378_v14 = vld [vmem:[#allocation23_spill] sm:$0xff] }
 0xf2f   :  { %3667 = vmatprep.subr.mxu0 %v7762_v52  ;;  %5573 = vmatprep.subr.mxu1 %v8985_v25  ;;  %v9379_v51 = vld [vmem:[#allocation15_spill] sm:$0xff]  ;;  %v9380_v52 = vld [vmem:[#allocation24_spill] sm:$0xff] }
 0xf30   :  { %3668 = vmatpush1.msra.mxu0 %v7766_v53  ;;  %5574 = vmatpush3.msra.mxu1 %v7769_v54  ;;  %v9381_v53 = vld [vmem:[#allocation16_spill] sm:$0xff]  ;;  %v9382_v54 = vld [vmem:[#allocation19_spill] sm:$0xff] }
 0xf31   :  { %3669 = vmatprep.subr.mxu0 %v7772_v58  ;;  %5575 = vmatprep.subr.mxu1 %v8985_v25  ;;  %v9383_v58 = vld [vmem:[#allocation22_spill] sm:$0xff] }
 0xf32   :  { %3670 = vmatpush1.msra.mxu0 %v7776_v61  ;;  %5576 = vmatpush3.msra.mxu1 %v7779_v28  ;;  %v9384_v61 = vld [vmem:[#allocation10_spill] sm:$0xff]  ;;  %v9385_v28 = vld [vmem:[#allocation27_spill] sm:$0xff] }
 0xf33   :  { %3671 = vmatprep.subr.mxu0 %v7782_v35  ;;  %5577 = vmatprep.subr.mxu1 %v8985_v25  ;;  %v9386_v35 = vld [vmem:[#allocation14_spill] sm:$0xff] }
 0xf34   :  { %3672 = vmatpush1.msra.mxu0 %v7786_v9  ;;  %5578 = vmatpush3.msra.mxu1 %v7789_v10  ;;  %v9387_v9 = vld [vmem:[#allocation11_spill] sm:$0xff]  ;;  %v9388_v10 = vld [vmem:[#allocation9_spill] sm:$0xff] }
 0xf35   :  { %3673 = vmatprep.subr.mxu0 %v7792_v23  ;;  %5579 = vmatprep.subr.mxu1 %v8985_v25  ;;  %v9389_v23 = vld [vmem:[#allocation28_spill] sm:$0xff] }
 0xf36   :  { %3674 = vmatpush1.msra.mxu0 %v7796_v13  ;;  %5580 = vmatpush3.msra.mxu1 %v7799_v26  ;;  %v9390_v13 = vld [vmem:[#allocation30_spill] sm:$0xff]  ;;  %v9391_v26 = vld [vmem:[#allocation31_spill] sm:$0xff] }
 0xf37   :  { %3675 = vmatprep.subr.mxu0 %v7802_v49  ;;  %5581 = vmatprep.subr.mxu1 %v8985_v25  ;;  %v9392_v49 = vld [vmem:[#allocation32_spill] sm:$0xff] }
 0xf38   :  { %3676 = vmatpush1.msra.mxu0 %v7806_v8  ;;  %5582 = vmatpush3.msra.mxu1 %v7809_v32  ;;  %v9393_v8 = vld [vmem:[#allocation8_spill] sm:$0xff]  ;;  %v9394_v32 = vld [vmem:[#allocation33_spill] sm:$0xff] }
 0xf39   :  { %3677 = vmatprep.subr.mxu0 %v7812_v2  ;;  %5583 = vmatprep.subr.mxu1 %v8985_v25  ;;  %v9395_v2 = vld [vmem:[#allocation34_spill] sm:$0xff] }
 0xf3a   :  { %3678 = vmatpush1.msra.mxu0 %v7816_v59  ;;  %5584 = vmatpush3.msra.mxu1 %v7819_v31  ;;  %v9396_v59 = vld [vmem:[#allocation35_spill] sm:$0xff]  ;;  %v9397_v31 = vld [vmem:[#allocation25_spill] sm:$0xff] }
 0xf3b   :  { %3679 = vmatprep.subr.mxu0 %v7822_v4  ;;  %5585 = vmatprep.subr.mxu1 %v8985_v25  ;;  %v9398_v4 = vld [vmem:[#allocation36_spill] sm:$0xff] }
 0xf3c   :  { %3680 = vmatpush1.msra.mxu0 %v7826_v11  ;;  %5586 = vmatpush3.msra.mxu1 %v7829_v60  ;;  %v9399_v11 = vld [vmem:[#allocation37_spill] sm:$0xff]  ;;  %v9400_v60 = vld [vmem:[#allocation38_spill] sm:$0xff] }
 0xf3d   :  { %3681 = vmatprep.subr.mxu0 %v7832_v20  ;;  %5587 = vmatprep.subr.mxu1 %v8985_v25  ;;  %v9401_v20 = vld [vmem:[#allocation39_spill] sm:$0xff] }
 0xf3e   :  { %3682 = vmatpush1.msra.mxu0 %v7836_v16  ;;  %5588 = vmatpush3.msra.mxu1 %v7839_v0  ;;  %v9402_v16 = vld [vmem:[#allocation40_spill] sm:$0xff]  ;;  %v9403_v0 = vld [vmem:[#allocation41_spill] sm:$0xff] }
 0xf3f   :  { %3683 = vmatprep.subr.mxu0 %v7842_v34  ;;  %5589 = vmatprep.subr.mxu1 %v8985_v25  ;;  %v9404_v34 = vld [vmem:[#allocation42_spill] sm:$0xff] }
 0xf40   :  { %3684 = vmatpush1.msra.mxu0 %v7846_v24  ;;  %5590 = vmatpush3.msra.mxu1 %v7849_v27  ;;  %v9405_v24 = vld [vmem:[#allocation43_spill] sm:$0xff]  ;;  %v9406_v27 = vld [vmem:[#allocation44_spill] sm:$0xff] }
 0xf41   :  { %3685 = vmatprep.subr.mxu0 %v7852_v50  ;;  %5591 = vmatprep.subr.mxu1 %v8985_v25  ;;  %v9407_v50 = vld [vmem:[#allocation45_spill] sm:$0xff] }
 0xf42   :  { %3686 = vmatpush1.msra.mxu0 %v7856_v43  ;;  %5592 = vmatpush3.msra.mxu1 %v7859_v5  ;;  %v9408_v43 = vld [vmem:[#allocation46_spill] sm:$0xff]  ;;  %v9409_v5 = vld [vmem:[#allocation47_spill] sm:$0xff] }
 0xf43   :  { %3687 = vmatprep.subr.mxu0 %v7862_v6  ;;  %5593 = vmatprep.subr.mxu1 %v8985_v25  ;;  %v9410_v6 = vld [vmem:[#allocation48_spill] sm:$0xff] }
 0xf44   :  { %3688 = vmatpush1.msra.mxu0 %v7866_v7  ;;  %5594 = vmatpush3.msra.mxu1 %v7869_v46  ;;  %v9411_v7 = vld [vmem:[#allocation49_spill] sm:$0xff]  ;;  %v9412_v46 = vld [vmem:[#allocation50_spill] sm:$0xff] }
 0xf45   :  { %3689 = vmatprep.subr.mxu0 %v7872_v19  ;;  %5595 = vmatprep.subr.mxu1 %v8985_v25  ;;  %v9413_v19 = vld [vmem:[#allocation51_spill] sm:$0xff] }
 0xf46   :  { %3690 = vmatpush1.msra.mxu0 %v7876_v3  ;;  %5596 = vmatpush3.msra.mxu1 %v9378_v14  ;;  %v9414_v3 = vld [vmem:[#allocation52_spill] sm:$0xff]  ;;  %v9432_v14 = vld [vmem:[#allocation70_spill] sm:$0xff] }
 0xf47   :  { %3691 = vmatprep.subr.mxu0 %v9379_v51  ;;  %5597 = vmatprep.subr.mxu1 %v8985_v25  ;;  %v9433_v51 = vld [vmem:[#allocation71_spill] sm:$0xff] }
 0xf48   :  { %3692 = vmatpush1.msra.mxu0 %v9380_v52  ;;  %5598 = vmatpush3.msra.mxu1 %v9381_v53  ;;  %v9434_v52 = vld [vmem:[#allocation72_spill] sm:$0xff]  ;;  %v9435_v53 = vld [vmem:[#allocation73_spill] sm:$0xff] }
 0xf49   :  { %3693 = vmatprep.subr.mxu0 %v9382_v54  ;;  %5599 = vmatprep.subr.mxu1 %v8985_v25  ;;  %v9436_v54 = vld [vmem:[#allocation74_spill] sm:$0xff] }
 0xf4a   :  { %3694 = vmatpush1.msra.mxu0 %v9383_v58  ;;  %5600 = vmatpush3.msra.mxu1 %v9384_v61  ;;  %v6011_v58 = vld [vmem:[#allocation2 + $0x2f0] sm:$0xff]  ;;  %v3432_v61 = vpop.f32.mrf.mxu0 }
 0xf4b   :  { %3695 = vmatprep.subr.mxu0 %v9385_v28  ;;  %5601 = vmatprep.subr.mxu1 %v8985_v25 }
 0xf4c   :  { %3696 = vmatpush1.msra.mxu0 %v9386_v35  ;;  %3729 = vmatprep.mubr.f32.mxu0 %v8985_v25  ;;  %v3434_v28 = vpop.f32.mrf.mxu0 }
 0xf4d   :  { %5602 = vmatpush3.msra.mxu1 %v9387_v9  ;;  %5603 = vmatprep.mubr.msk.f32.mxu1 %vm6157_vm2, %v8985_v25 }
 0xf4e   :  { %3730 = vmatmul.mubr.f32.vlgmr.msra.gmra.mxu0 %v9388_v10  ;;  %5604 = vmatmul.mubr.f32.vlgmr.msra.gmra.mxu1 %v9388_v10  ;;  %v3433_v10 = vadd.f32 %v3432_v61, %v7575_v57  ;;  %v6036_v61 = vld [vmem:[#allocation2 + $0x228] sm:$0xff] }
 0xf4f   :  { %3806 = vmatprep.subr.mxu0 %v9389_v23  ;;  %5606 = vmatprep.subr.mxu1 %v8985_v25 }
 0xf50   :  { %3807 = vmatpush1.msra.mxu0 %v9390_v13  ;;  %5607 = vmatpush3.msra.mxu1 %v9391_v26 }
 0xf51   :  { %3808 = vmatprep.subr.mxu0 %v9392_v49  ;;  %5608 = vmatprep.subr.mxu1 %v8985_v25 }
 0xf52   :  { %3809 = vmatpush1.msra.mxu0 %v9393_v8  ;;  %5609 = vmatpush3.msra.mxu1 %v9394_v32 }
 0xf53   :  { %3810 = vmatprep.subr.mxu0 %v9395_v2  ;;  %5610 = vmatprep.subr.mxu1 %v8985_v25  ;;  %v3435_v2 = vadd.f32 %v3434_v28, %v9196_v12  ;;  %v6037_v28 = vld [vmem:[#allocation2 + $0x238] sm:$0xff] }
 0xf54   :  { %3811 = vmatpush1.msra.mxu0 %v9396_v59  ;;  %5611 = vmatpush3.msra.mxu1 %v9397_v31 }
 0xf55   :  { %3812 = vmatprep.subr.mxu0 %v9398_v4  ;;  %5612 = vmatprep.subr.mxu1 %v8985_v25 }
 0xf56   :  { %3813 = vmatpush1.msra.mxu0 %v9399_v11  ;;  %5613 = vmatpush3.msra.mxu1 %v9400_v60 }
 0xf57   :  { %3814 = vmatprep.subr.mxu0 %v9401_v20  ;;  %5614 = vmatprep.subr.mxu1 %v8985_v25 }
 0xf58   :  { %3815 = vmatpush1.msra.mxu0 %v9402_v16  ;;  %5615 = vmatpush3.msra.mxu1 %v9403_v0  ;;  %v3504_v16 = vadd.f32 %v8389_v39, %v7594_v17  ;;  %v6012_v39 = vld [vmem:[#allocation2 + $0x2e8] sm:$0xff] }
 0xf59   :  { %3816 = vmatprep.subr.mxu0 %v9404_v34  ;;  %5616 = vmatprep.subr.mxu1 %v8985_v25 }
 0xf5a   :  { %3817 = vmatpush1.msra.mxu0 %v9405_v24  ;;  %5617 = vmatpush3.msra.mxu1 %v9406_v27 }
 0xf5b   :  { %3818 = vmatprep.subr.mxu0 %v9407_v50  ;;  %5618 = vmatprep.subr.mxu1 %v8985_v25 }
 0xf5c   :  { %3819 = vmatpush1.msra.mxu0 %v9408_v43  ;;  %5619 = vmatpush3.msra.mxu1 %v9409_v5 }
 0xf5d   :  { %3820 = vmatprep.subr.mxu0 %v9410_v6  ;;  %5620 = vmatprep.subr.mxu1 %v8985_v25 }
 0xf5e   :  { %3821 = vmatpush1.msra.mxu0 %v9411_v7  ;;  %5621 = vmatpush3.msra.mxu1 %v9412_v46 }
 0xf5f   :  { %3822 = vmatprep.subr.mxu0 %v9413_v19  ;;  %5622 = vmatprep.subr.mxu1 %v8985_v25 }
 0xf60   :  { %3823 = vmatpush1.msra.mxu0 %v9414_v3  ;;  %5623 = vmatpush3.msra.mxu1 %v9415_v15  ;;  %v6013_v15 = vld [vmem:[#allocation2 + $0x2f8] sm:$0xff] }
 0xf61   :  { %3824 = vmatprep.subr.mxu0 %v9416_v36  ;;  %5624 = vmatprep.subr.mxu1 %v8985_v25  ;;  %v6014_v36 = vld [vmem:[#allocation2 + $0x2d8] sm:$0xff] }
 0xf62   :  { %3825 = vmatpush1.msra.mxu0 %v9417_v37  ;;  %5625 = vmatpush3.msra.mxu1 %v9418_v29  ;;  %v6015_v37 = vld [vmem:[#allocation2 + $0x2d0] sm:$0xff]  ;;  %v6016_v29 = vld [vmem:[#allocation2 + $0x2e0] sm:$0xff] }
 0xf63   :  { %3826 = vmatprep.subr.mxu0 %v9419_v33  ;;  %5626 = vmatprep.subr.mxu1 %v8985_v25  ;;  %v6017_v33 = vld [vmem:[#allocation2 + $0x2c0] sm:$0xff] }
 0xf64   :  { %3827 = vmatpush1.msra.mxu0 %v9420_v48  ;;  %5627 = vmatpush3.msra.mxu1 %v9421_v30  ;;  %v6018_v48 = vld [vmem:[#allocation2 + $0x2b8] sm:$0xff]  ;;  %v6019_v30 = vld [vmem:[#allocation2 + $0x2c8] sm:$0xff] }
 0xf65   :  { %3828 = vmatprep.subr.mxu0 %v9422_v41  ;;  %5628 = vmatprep.subr.mxu1 %v8985_v25  ;;  %v6020_v41 = vld [vmem:[#allocation2 + $0x2a8] sm:$0xff] }
 0xf66   :  { %3829 = vmatpush1.msra.mxu0 %v9423_v42  ;;  %5629 = vmatpush3.msra.mxu1 %v9424_v47  ;;  %v6021_v42 = vld [vmem:[#allocation2 + $0x2a0] sm:$0xff]  ;;  %v6022_v47 = vld [vmem:[#allocation2 + $0x2b0] sm:$0xff] }
 0xf67   :  { %3830 = vmatprep.subr.mxu0 %v9425_v44  ;;  %5630 = vmatprep.subr.mxu1 %v8985_v25  ;;  %v6023_v44 = vld [vmem:[#allocation2 + $0x290] sm:$0xff] }
 0xf68   :  { %3831 = vmatpush1.msra.mxu0 %v9426_v21  ;;  %5631 = vmatpush3.msra.mxu1 %v9427_v40  ;;  %v6024_v21 = vld [vmem:[#allocation2 + $0x288] sm:$0xff]  ;;  %v6025_v40 = vld [vmem:[#allocation2 + $0x298] sm:$0xff] }
 0xf69   :  { %3832 = vmatprep.subr.mxu0 %v9428_v45  ;;  %5632 = vmatprep.subr.mxu1 %v8985_v25  ;;  %v6026_v45 = vld [vmem:[#allocation2 + $0x278] sm:$0xff] }
 0xf6a   :  { %3833 = vmatpush1.msra.mxu0 %v9429_v1  ;;  %5633 = vmatpush3.msra.mxu1 %v9430_v55  ;;  %v6027_v1 = vld [vmem:[#allocation2 + $0x270] sm:$0xff]  ;;  %v6028_v55 = vld [vmem:[#allocation2 + $0x280] sm:$0xff] }
 0xf6b   :  { %3834 = vmatprep.subr.mxu0 %v9431_v62  ;;  %5634 = vmatprep.subr.mxu1 %v8985_v25  ;;  %v6029_v62 = vld [vmem:[#allocation2 + $0x260] sm:$0xff] }
 0xf6c   :  { %3835 = vmatpush1.msra.mxu0 %v9432_v14  ;;  %5635 = vmatpush3.msra.mxu1 %v9433_v51  ;;  %v6030_v14 = vld [vmem:[#allocation2 + $0x258] sm:$0xff]  ;;  %v6031_v51 = vld [vmem:[#allocation2 + $0x268] sm:$0xff] }
 0xf6d   :  { %3836 = vmatprep.subr.mxu0 %v9434_v52  ;;  %5636 = vmatprep.subr.mxu1 %v8985_v25  ;;  %v6032_v52 = vld [vmem:[#allocation2 + $0x248] sm:$0xff] }
 0xf6e   :  { %3837 = vmatpush1.msra.mxu0 %v9435_v53  ;;  %5637 = vmatpush3.msra.mxu1 %v9436_v54  ;;  %v6033_v53 = vld [vmem:[#allocation2 + $0x240] sm:$0xff]  ;;  %v6034_v54 = vld [vmem:[#allocation2 + $0x250] sm:$0xff] }
 0xf6f   :  { %3870 = vmatprep.mubr.f32.mxu0 %v8985_v25  ;;  %5638 = vmatprep.mubr.msk.f32.mxu1 %vm6157_vm2, %v8985_v25 }
 0xf70   :  { %3967 = vmatprep.subr.mxu0 %v6011_v58  ;;  %5641 = vmatprep.subr.mxu1 %v8985_v25  ;;  %v6035_v58 = vld [vmem:[#allocation2 + $0x230] sm:$0xff] }
 0xfed   :  { %v3573_v35 = vpop.f32.mrf.mxu0  ;;  %v3644_v9 = vpop.f32.mrf.mxu1 }
 0xfee   :  { %v3574_v23 = vadd.f32 %v3573_v35, %v7578_v63  ;;  %v3645_v60 = vadd.f32 %v3644_v9, %v7591_v56  ;;  %v6038_v35 = vld [vmem:[#allocation2 + $0x218] sm:$0xff]  ;;  %v6039_v9 = vld [vmem:[#allocation2 + $0x210] sm:$0xff] }
 0xfef   :  { %v3575_v13 = vpop.f32.mrf.mxu0  ;;  %v5570_v26 = vpop.f32.mrf.mxu1 }
 0xff0   :  { %v3648_v49 = vadd.f32 %v3574_v23, %v3433_v10  ;;  %v3576_v32 = vadd.f32 %v3575_v13, %v7581_v38  ;;  %v6040_v10 = vld [vmem:[#allocation2 + $0x220] sm:$0xff]  ;;  %v6042_v13 = vld [vmem:[#allocation2 + $0x1f8] sm:$0xff]  ;;  %v6043_v26 = vld [vmem:[#allocation2 + $0x208] sm:$0xff] }
 0xff1   :  { %v6041_v23 = vld [vmem:[#allocation2 + $0x200] sm:$0xff] }
 0xff2   :  { %v3649_v8 = vmul.f32 0.5, %v3648_v49  ;;  %v3653_v59 = vadd.f32 %v3576_v32, %v3435_v2  ;;  %v6044_v49 = vld [vmem:[#allocation2 + $0x1e8] sm:$0xff]  ;;  %v6046_v32 = vld [vmem:[#allocation2 + $0x1f0] sm:$0xff] }
 0xff3   :  { %v6047_v2 = vld [vmem:[#allocation2 + $0x1d0] sm:$0xff] }
 0xff4   :  { %5847 = vtanh.f32 %v3649_v8  ;;  %v3654_v31 = vmul.f32 0.5, %v3653_v59  ;;  %v6045_v8 = vld [vmem:[#allocation2 + $0x1e0] sm:$0xff]  ;;  %v6048_v59 = vld [vmem:[#allocation2 + $0x1c8] sm:$0xff] }
 0xff6   :  { %5849 = vtanh.f32 %v3654_v31  ;;  %v6049_v31 = vld [vmem:[#allocation2 + $0x1d8] sm:$0xff] }
0x1001   :  { %v5848_v4 = vpop.eup %5847 }
0x1002   :  { %v3651_v11 = vadd.f32 1.0, %v5848_v4  ;;  %v6050_v4 = vld [vmem:[#allocation2 + $0x1b8] sm:$0xff] }
0x1003   :  { %v5850_v24 = vpop.eup %5849 }
0x1004   :  { %v3652_v20 = vmul.f32 0.5, %v3651_v11  ;;  %v3656_v27 = vadd.f32 1.0, %v5850_v24  ;;  %v6051_v11 = vld [vmem:[#allocation2 + $0x1b0] sm:$0xff]  ;;  %v6057_v24 = vld [vmem:[#allocation2 + $0x180] sm:$0xff] }
0x1006   :  { %v3658_v0 = vmul.f32 %v3652_v20, %v3645_v60  ;;  %v3657_v5 = vmul.f32 0.5, %v3656_v27  ;;  %v6052_v60 = vld [vmem:[#allocation2 + $0x1c0] sm:$0xff]  ;;  %v9437_v27 = vld [vmem:[#allocation26_spill] sm:$0xff] }
0x1007   :  { %v6053_v20 = vld [vmem:[#allocation2 + $0x1a0] sm:$0xff] }
0x1008   :  { %v3659_v34 = vadd.f32 %v3658_v0, %v3504_v16  ;;  %v3661_v6 = vsub.f32 1.0, %v3657_v5  ;;  %v3663_v19 = vmul.f32 %v3657_v5, %v8392_v22  ;;  %v6054_v16 = vld [vmem:[#allocation2 + $0x198] sm:$0xff]  ;;  %v6055_v0 = vld [vmem:[#allocation2 + $0x1a8] sm:$0xff]  ;;  %v6058_v5 = vld [vmem:[#allocation2 + $0x190] sm:$0xff] }
0x100a   :  { %5851 = vtanh.f32 %v3659_v34  ;;  %v6056_v34 = vld [vmem:[#allocation2 + $0x188] sm:$0xff] }
0x100e   :  { %v8538_v50 = vpop.f32.mrf.mxu1 }
0x1010   :  { %v5605_v43 = vpop.f32.mrf.mxu1 }
0x1011   :  { %v3965_v43 = vrot.slane %v9437_v27, 7 }
0x1017   :  { %v5852_v7 = vpop.eup %5851 }
0x1018   :  { %v3662_v46 = vmul.f32 %v5852_v7, %v3661_v6  ;;  %v6059_v6 = vld [vmem:[#allocation4 + $0x2f0] sm:$0xff]  ;;  %v6060_v7 = vld [vmem:[#allocation4 + $0x2e8] sm:$0xff] }
0x101a   :  { %v8541_v3 = vadd.f32 %v3663_v19, %v3662_v46  ;;  %v6061_v46 = vld [vmem:[#allocation4 + $0x2f8] sm:$0xff] }
0x101b   :  { %v6062_v19 = vld [vmem:[#allocation4 + $0x2d8] sm:$0xff] }
0x101c   :  { %3871 = vmatmul.mubr.f32.vlgmr.msra.gmra.mxu0 %v8541_v3  ;;  %5639 = vmatmul.mubr.f32.vlgmr.msra.gmra.mxu1 %v8541_v3 }
0x101d   :  { %3968 = vmatpush1.msra.mxu0 %v6012_v39  ;;  %5642 = vmatpush3.msra.mxu1 %v6013_v15  ;;  %v6063_v39 = vld [vmem:[#allocation4 + $0x2d0] sm:$0xff]  ;;  %v6064_v15 = vld [vmem:[#allocation4 + $0x2e0] sm:$0xff] }
0x101e   :  { %3969 = vmatprep.subr.mxu0 %v6014_v36  ;;  %5643 = vmatprep.subr.mxu1 %v8985_v25  ;;  %v6065_v36 = vld [vmem:[#allocation4 + $0x2c0] sm:$0xff] }
0x101f   :  { %3970 = vmatpush1.msra.mxu0 %v6015_v37  ;;  %5644 = vmatpush3.msra.mxu1 %v6016_v29  ;;  %v6066_v37 = vld [vmem:[#allocation4 + $0x2b8] sm:$0xff]  ;;  %v6067_v29 = vld [vmem:[#allocation4 + $0x2c8] sm:$0xff] }
0x1020   :  { %3971 = vmatprep.subr.mxu0 %v6017_v33  ;;  %5645 = vmatprep.subr.mxu1 %v8985_v25  ;;  %v6068_v33 = vld [vmem:[#allocation4 + $0x2a8] sm:$0xff] }
0x1021   :  { %3972 = vmatpush1.msra.mxu0 %v6018_v48  ;;  %5646 = vmatpush3.msra.mxu1 %v6019_v30  ;;  %v6069_v48 = vld [vmem:[#allocation4 + $0x2a0] sm:$0xff]  ;;  %v6070_v30 = vld [vmem:[#allocation4 + $0x2b0] sm:$0xff] }
0x1022   :  { %3973 = vmatprep.subr.mxu0 %v6020_v41  ;;  %5647 = vmatprep.subr.mxu1 %v8985_v25  ;;  %v6071_v41 = vld [vmem:[#allocation4 + $0x290] sm:$0xff] }
0x1023   :  { %3974 = vmatpush1.msra.mxu0 %v6021_v42  ;;  %5648 = vmatpush3.msra.mxu1 %v6022_v47  ;;  %v6072_v42 = vld [vmem:[#allocation4 + $0x288] sm:$0xff]  ;;  %v6073_v47 = vld [vmem:[#allocation4 + $0x298] sm:$0xff] }
0x1024   :  { %3975 = vmatprep.subr.mxu0 %v6023_v44  ;;  %5649 = vmatprep.subr.mxu1 %v8985_v25  ;;  %v6074_v44 = vld [vmem:[#allocation4 + $0x278] sm:$0xff] }
0x1025   :  { %3976 = vmatpush1.msra.mxu0 %v6024_v21  ;;  %5650 = vmatpush3.msra.mxu1 %v6025_v40  ;;  %v6075_v21 = vld [vmem:[#allocation4 + $0x270] sm:$0xff]  ;;  %v6076_v40 = vld [vmem:[#allocation4 + $0x280] sm:$0xff] }
0x1026   :  { %3977 = vmatprep.subr.mxu0 %v6026_v45  ;;  %5651 = vmatprep.subr.mxu1 %v8985_v25  ;;  %v6077_v45 = vld [vmem:[#allocation4 + $0x260] sm:$0xff] }
0x1027   :  { %3978 = vmatpush1.msra.mxu0 %v6027_v1  ;;  %5652 = vmatpush3.msra.mxu1 %v6028_v55  ;;  %v6078_v1 = vld [vmem:[#allocation4 + $0x258] sm:$0xff]  ;;  %v6079_v55 = vld [vmem:[#allocation4 + $0x268] sm:$0xff] }
0x1028   :  { %3979 = vmatprep.subr.mxu0 %v6029_v62  ;;  %5653 = vmatprep.subr.mxu1 %v8985_v25  ;;  %v6080_v62 = vld [vmem:[#allocation4 + $0x248] sm:$0xff] }
0x1029   :  { %3980 = vmatpush1.msra.mxu0 %v6030_v14  ;;  %5654 = vmatpush3.msra.mxu1 %v6031_v51  ;;  %v6081_v14 = vld [vmem:[#allocation4 + $0x240] sm:$0xff]  ;;  %v6082_v51 = vld [vmem:[#allocation4 + $0x250] sm:$0xff] }
0x102a   :  { %3981 = vmatprep.subr.mxu0 %v6032_v52  ;;  %5655 = vmatprep.subr.mxu1 %v8985_v25  ;;  %v6083_v52 = vld [vmem:[#allocation4 + $0x230] sm:$0xff] }
0x102b   :  { %3982 = vmatpush1.msra.mxu0 %v6033_v53  ;;  %5656 = vmatpush3.msra.mxu1 %v6034_v54  ;;  %v6084_v53 = vld [vmem:[#allocation4 + $0x228] sm:$0xff]  ;;  %v6085_v54 = vld [vmem:[#allocation4 + $0x238] sm:$0xff] }
0x102c   :  { %3983 = vmatprep.subr.mxu0 %v6035_v58  ;;  %5657 = vmatprep.subr.mxu1 %v8985_v25  ;;  %v6086_v58 = vld [vmem:[#allocation4 + $0x218] sm:$0xff] }
0x102d   :  { %3984 = vmatpush1.msra.mxu0 %v6036_v61  ;;  %5658 = vmatpush3.msra.mxu1 %v6037_v28  ;;  %v6087_v61 = vld [vmem:[#allocation4 + $0x210] sm:$0xff]  ;;  %v6088_v28 = vld [vmem:[#allocation4 + $0x220] sm:$0xff] }
0x102e   :  { %3985 = vmatprep.subr.mxu0 %v6038_v35  ;;  %5659 = vmatprep.subr.mxu1 %v8985_v25  ;;  %v6089_v35 = vld [vmem:[#allocation4 + $0x200] sm:$0xff] }
0x102f   :  { %3986 = vmatpush1.msra.mxu0 %v6039_v9  ;;  %5660 = vmatpush3.msra.mxu1 %v6040_v10  ;;  %v6090_v9 = vld [vmem:[#allocation4 + $0x1f8] sm:$0xff]  ;;  %v6091_v10 = vld [vmem:[#allocation4 + $0x208] sm:$0xff] }
0x1030   :  { %3987 = vmatprep.subr.mxu0 %v6041_v23  ;;  %5661 = vmatprep.subr.mxu1 %v8985_v25  ;;  %v6092_v23 = vld [vmem:[#allocation4 + $0x1e8] sm:$0xff] }
0x1031   :  { %3988 = vmatpush1.msra.mxu0 %v6042_v13  ;;  %5662 = vmatpush3.msra.mxu1 %v6043_v26  ;;  %v6093_v13 = vld [vmem:[#allocation4 + $0x1e0] sm:$0xff]  ;;  %v6094_v26 = vld [vmem:[#allocation4 + $0x1f0] sm:$0xff] }
0x1032   :  { %3989 = vmatprep.subr.mxu0 %v6044_v49  ;;  %5663 = vmatprep.subr.mxu1 %v8985_v25  ;;  %v6095_v49 = vld [vmem:[#allocation4 + $0x1d0] sm:$0xff] }
0x1033   :  { %3990 = vmatpush1.msra.mxu0 %v6045_v8  ;;  %5664 = vmatpush3.msra.mxu1 %v6046_v32  ;;  %v6096_v8 = vld [vmem:[#allocation4 + $0x1c8] sm:$0xff]  ;;  %v6097_v32 = vld [vmem:[#allocation4 + $0x1d8] sm:$0xff] }
0x1034   :  { %3991 = vmatprep.subr.mxu0 %v6047_v2  ;;  %5665 = vmatprep.subr.mxu1 %v8985_v25  ;;  %v6098_v2 = vld [vmem:[#allocation4 + $0x1b8] sm:$0xff] }
0x1035   :  { %3992 = vmatpush1.msra.mxu0 %v6048_v59  ;;  %5666 = vmatpush3.msra.mxu1 %v6049_v31  ;;  %v6099_v59 = vld [vmem:[#allocation4 + $0x1b0] sm:$0xff]  ;;  %v6100_v31 = vld [vmem:[#allocation4 + $0x1c0] sm:$0xff] }
0x1036   :  { %3993 = vmatprep.subr.mxu0 %v6050_v4  ;;  %5667 = vmatprep.subr.mxu1 %v8985_v25  ;;  %v6101_v4 = vld [vmem:[#allocation4 + $0x1a0] sm:$0xff] }
0x1037   :  { %3994 = vmatpush1.msra.mxu0 %v6051_v11  ;;  %5668 = vmatpush3.msra.mxu1 %v6052_v60  ;;  %v6102_v11 = vld [vmem:[#allocation4 + $0x198] sm:$0xff]  ;;  %v6103_v60 = vld [vmem:[#allocation4 + $0x1a8] sm:$0xff] }
0x1038   :  { %3995 = vmatprep.subr.mxu0 %v6053_v20  ;;  %5669 = vmatprep.subr.mxu1 %v8985_v25  ;;  %v6104_v20 = vld [vmem:[#allocation4 + $0x188] sm:$0xff] }
0x1039   :  { %3996 = vmatpush1.msra.mxu0 %v6054_v16  ;;  %5670 = vmatpush3.msra.mxu1 %v6055_v0  ;;  %v6105_v16 = vld [vmem:[#allocation4 + $0x180] sm:$0xff]  ;;  %v6106_v0 = vld [vmem:[#allocation4 + $0x190] sm:$0xff] }
0x103a   :  { %3997 = vmatprep.subr.mxu0 %v6056_v34  ;;  %5671 = vmatprep.subr.mxu1 %v8985_v25  ;;  %v3731_v34 = vpop.f32.mrf.mxu0 }
0x103b   :  { %3998 = vmatpush1.msra.mxu0 %v6057_v24  ;;  %4031 = vmatprep.mubr.f32.mxu0 %v8985_v25 }
0x103c   :  { %5672 = vmatpush3.msra.mxu1 %v6058_v5  ;;  %5673 = vmatprep.mubr.msk.f32.mxu1 %vm6157_vm2, %v8985_v25  ;;  %v3733_v24 = vpop.f32.mrf.mxu0  ;;  %v3732_v5 = vadd.f32 %v3731_v34, %v7575_v57 }
0x103d   :  { %4032 = vmatmul.mubr.f32.vlgmr.msra.gmra.mxu0 %v3965_v43  ;;  %5674 = vmatmul.mubr.f32.vlgmr.msra.gmra.mxu1 %v3965_v43 }
0x103e   :  { %4108 = vmatprep.subr.mxu0 %v6059_v6  ;;  %5676 = vmatprep.subr.mxu1 %v8985_v25 }
0x103f   :  { %4109 = vmatpush1.msra.mxu0 %v6060_v7  ;;  %5677 = vmatpush3.msra.mxu1 %v6061_v46 }
0x1040   :  { %4110 = vmatprep.subr.mxu0 %v6062_v19  ;;  %5678 = vmatprep.subr.mxu1 %v8985_v25 }
0x1041   :  { %4111 = vmatpush1.msra.mxu0 %v6063_v39  ;;  %5679 = vmatpush3.msra.mxu1 %v6064_v15 }
0x1042   :  { %4112 = vmatprep.subr.mxu0 %v6065_v36  ;;  %5680 = vmatprep.subr.mxu1 %v8985_v25  ;;  %v3734_v36 = vadd.f32 %v3733_v24, %v9196_v12 }
0x1043   :  { %4113 = vmatpush1.msra.mxu0 %v6066_v37  ;;  %5681 = vmatpush3.msra.mxu1 %v6067_v29 }
0x1044   :  { %4114 = vmatprep.subr.mxu0 %v6068_v33  ;;  %5682 = vmatprep.subr.mxu1 %v8985_v25 }
0x1045   :  { %4115 = vmatpush1.msra.mxu0 %v6069_v48  ;;  %5683 = vmatpush3.msra.mxu1 %v6070_v30 }
0x1046   :  { %4116 = vmatprep.subr.mxu0 %v6071_v41  ;;  %5684 = vmatprep.subr.mxu1 %v8985_v25 }
0x1047   :  { %4117 = vmatpush1.msra.mxu0 %v6072_v42  ;;  %5685 = vmatpush3.msra.mxu1 %v6073_v47  ;;  %v3803_v42 = vadd.f32 %v8538_v50, %v7594_v17  ;;  %v4316_v50 = vld [vmem:[%s8692_s5 + $0x78] sm:$0xff] }
0x1048   :  { %4118 = vmatprep.subr.mxu0 %v6074_v44  ;;  %5686 = vmatprep.subr.mxu1 %v8985_v25 }
0x1049   :  { %4119 = vmatpush1.msra.mxu0 %v6075_v21  ;;  %5687 = vmatpush3.msra.mxu1 %v6076_v40 }
0x104a   :  { %4120 = vmatprep.subr.mxu0 %v6077_v45  ;;  %5688 = vmatprep.subr.mxu1 %v8985_v25 }
0x104b   :  { %4121 = vmatpush1.msra.mxu0 %v6078_v1  ;;  %5689 = vmatpush3.msra.mxu1 %v6079_v55 }
0x104c   :  { %4122 = vmatprep.subr.mxu0 %v6080_v62  ;;  %5690 = vmatprep.subr.mxu1 %v8985_v25 }
0x104d   :  { %4123 = vmatpush1.msra.mxu0 %v6081_v14  ;;  %5691 = vmatpush3.msra.mxu1 %v6082_v51 }
0x104e   :  { %4124 = vmatprep.subr.mxu0 %v6083_v52  ;;  %5692 = vmatprep.subr.mxu1 %v8985_v25 }
0x104f   :  { %4125 = vmatpush1.msra.mxu0 %v6084_v53  ;;  %5693 = vmatpush3.msra.mxu1 %v6085_v54  ;;  %v4315_v54 = vld [vmem:[%s8692_s5 + $0x70] sm:$0xff] }
0x1050   :  { %4126 = vmatprep.subr.mxu0 %v6086_v58  ;;  %5694 = vmatprep.subr.mxu1 %v8985_v25  ;;  %v4314_v58 = vld [vmem:[%s8692_s5 + $0x68] sm:$0xff] }
0x1051   :  { %4127 = vmatpush1.msra.mxu0 %v6087_v61  ;;  %5695 = vmatpush3.msra.mxu1 %v6088_v28  ;;  %v4313_v61 = vld [vmem:[%s8692_s5 + $0x60] sm:$0xff]  ;;  %v4312_v28 = vld [vmem:[%s8692_s5 + $0x58] sm:$0xff] }
0x1052   :  { %4128 = vmatprep.subr.mxu0 %v6089_v35  ;;  %5696 = vmatprep.subr.mxu1 %v8985_v25  ;;  %v4311_v35 = vld [vmem:[%s8692_s5 + $0x50] sm:$0xff] }
0x1053   :  { %4129 = vmatpush1.msra.mxu0 %v6090_v9  ;;  %5697 = vmatpush3.msra.mxu1 %v6091_v10  ;;  %v4310_v9 = vld [vmem:[%s8692_s5 + $0x48] sm:$0xff]  ;;  %v4309_v10 = vld [vmem:[%s8692_s5 + $0x40] sm:$0xff] }
0x1054   :  { %4130 = vmatprep.subr.mxu0 %v6092_v23  ;;  %5698 = vmatprep.subr.mxu1 %v8985_v25  ;;  %v4308_v23 = vld [vmem:[%s8692_s5 + $0x38] sm:$0xff] }
0x1055   :  { %4131 = vmatpush1.msra.mxu0 %v6093_v13  ;;  %5699 = vmatpush3.msra.mxu1 %v6094_v26  ;;  %v4307_v13 = vld [vmem:[%s8692_s5 + $0x30] sm:$0xff]  ;;  %v4306_v26 = vld [vmem:[%s8692_s5 + $0x28] sm:$0xff] }
0x1056   :  { %4132 = vmatprep.subr.mxu0 %v6095_v49  ;;  %5700 = vmatprep.subr.mxu1 %v8985_v25  ;;  %v4305_v49 = vld [vmem:[%s8692_s5 + $0x20] sm:$0xff] }
0x1057   :  { %4133 = vmatpush1.msra.mxu0 %v6096_v8  ;;  %5701 = vmatpush3.msra.mxu1 %v6097_v32  ;;  %v4304_v8 = vld [vmem:[%s8692_s5 + $0x18] sm:$0xff]  ;;  %v4303_v32 = vld [vmem:[%s8692_s5 + $0x10] sm:$0xff] }
0x1058   :  { %4134 = vmatprep.subr.mxu0 %v6098_v2  ;;  %5702 = vmatprep.subr.mxu1 %v8985_v25  ;;  %v4302_v2 = vld [vmem:[%s8692_s5 + $0x8] sm:$0xff] }
0x1059   :  { %4135 = vmatpush1.msra.mxu0 %v6099_v59  ;;  %5703 = vmatpush3.msra.mxu1 %v6100_v31  ;;  %v4301_v59 = vld [vmem:[%s8692_s5] sm:$0xff] }
0x105a   :  { %4136 = vmatprep.subr.mxu0 %v6101_v4  ;;  %5704 = vmatprep.subr.mxu1 %v8985_v25 }
0x105b   :  { %4137 = vmatpush1.msra.mxu0 %v6102_v11  ;;  %5705 = vmatpush3.msra.mxu1 %v6103_v60 }
0x105c   :  { %4138 = vmatprep.subr.mxu0 %v6104_v20  ;;  %5706 = vmatprep.subr.mxu1 %v8985_v25 }
0x105d   :  { %4139 = vmatpush1.msra.mxu0 %v6105_v16  ;;  %4172 = vmatprep.mubr.f32.mxu0 %v8985_v25 }
0x105e   :  { %5707 = vmatpush3.msra.mxu1 %v6106_v0  ;;  %5708 = vmatprep.mubr.msk.f32.mxu1 %vm6157_vm2, %v8985_v25 }
0x105f   :  { %5711 = vmatprep.subr.mxu0 %v8985_v25 }
0x10dc   :  { %v3872_v27 = vpop.f32.mrf.mxu0  ;;  %v3943_v43 = vpop.f32.mrf.mxu1 }
0x10dd   :  { %v3873_v6 = vadd.f32 %v3872_v27, %v7578_v63  ;;  %v3944_v30 = vadd.f32 %v3943_v43, %v7591_v56 }
0x10de   :  { %v3874_v7 = vpop.f32.mrf.mxu0  ;;  %v5640_v46 = vpop.f32.mrf.mxu1 }
0x10df   :  { %v3947_v19 = vadd.f32 %v3873_v6, %v3732_v5  ;;  %v3875_v15 = vadd.f32 %v3874_v7, %v7581_v38 }
0x10e1   :  { %v3948_v39 = vmul.f32 0.5, %v3947_v19  ;;  %v3952_v37 = vadd.f32 %v3875_v15, %v3734_v36 }
0x10e3   :  { %5853 = vtanh.f32 %v3948_v39  ;;  %v3953_v29 = vmul.f32 0.5, %v3952_v37 }
0x10e5   :  { %5855 = vtanh.f32 %v3953_v29  ;;  %v9438_v29 = vld [vmem:[#allocation21_spill] sm:$0xff] }
0x10f0   :  { %v5854_v33 = vpop.eup %5853 }
0x10f1   :  { %v3950_v48 = vadd.f32 1.0, %v5854_v33  ;;  %v9439_v33 = vld [vmem:[#allocation75_spill] sm:$0xff] }
0x10f2   :  { %v5856_v21 = vpop.eup %5855 }
0x10f3   :  { %v3951_v41 = vmul.f32 0.5, %v3950_v48  ;;  %v3955_v40 = vadd.f32 1.0, %v5856_v21  ;;  %v4270_v48 = vrot.slane %v9439_v33, 6 }
0x10f5   :  { %v3957_v47 = vmul.f32 %v3951_v41, %v3944_v30  ;;  %v3956_v55 = vmul.f32 0.5, %v3955_v40  ;;  %v4273_v30 = vrot.slane %v8242_v18, 5  ;;  %v4279_v40 = vrot.slane %v8541_v3, 3 }
0x10f7   :  { %v3958_v44 = vadd.f32 %v3957_v47, %v3803_v42  ;;  %v3960_v62 = vsub.f32 1.0, %v3956_v55  ;;  %v3962_v52 = vmul.f32 %v3956_v55, %v8541_v3  ;;  %v4276_v42 = vrot.slane %v8392_v22, 4  ;;  %v9440_v47 = vld [vmem:[#allocation20_spill] sm:$0xff] }
0x10f9   :  { %5857 = vtanh.f32 %v3958_v44 }
0x10fd   :  { %v8591_v45 = vpop.f32.mrf.mxu1  ;;  %v4033_v31 = vpop.f32.mrf.mxu0 }
0x10fe   :  { %v4034_v20 = vadd.f32 %v4033_v31, %v7575_v57  ;;  %v4105_v57 = vadd.f32 %v8591_v45, %v7594_v17 }
0x10ff   :  { %v5675_v1 = vpop.f32.mrf.mxu1  ;;  %v4035_v4 = vpop.f32.mrf.mxu0 }
0x1100   :  { %v4036_v5 = vadd.f32 %v4035_v4, %v9196_v12  ;;  %v4267_v12 = vrot.slane %v9438_v29, 7 }
0x1102   :  { %v4288_v17 = vsel %vm4287_vm3, %v9440_v47, %v4267_v12 }
0x1103   :  { %v4290_v1 = vsel %vm4289_vm4, %v4288_v17, %v4270_v48 }
0x1104   :  { %v4292_v18 = vsel %vm4291_vm5, %v4290_v1, %v4273_v30 }
0x1106   :  { %v5858_v14 = vpop.eup %5857 }
0x1107   :  { %v3961_v51 = vmul.f32 %v5858_v14, %v3960_v62  ;;  %v4294_v62 = vsel %vm4293_vm6, %v4292_v18, %v4276_v42 }
0x1108   :  { %v4296_v22 = vsel %vm4295_vm7, %v4294_v62, %v4279_v40 }
0x1109   :  { %v8594_v53 = vadd.f32 %v3962_v52, %v3961_v51 }
0x110b   :  { %4173 = vmatmul.mubr.f32.vlgmr.msra.gmra.mxu0 %v8594_v53  ;;  %5709 = vmatmul.mubr.f32.vlgmr.msra.gmra.mxu1 %v8594_v53  ;;  %v4282_v45 = vrot.slane %v8594_v53, 2 }
0x110c   :  { %5743 = vmatprep.mubr.msk.f32.mxu0 %vm6157_vm2, %v8985_v25  ;;  %5712 = vmatpush3.msra.mxu0 %v4316_v50  ;;  %v4429_v50 = vld [vmem:[%s8693_s6] ss:$0 sm:$0xff] }
0x110d   :  { %5713 = vmatprep.subr.mxu0 %v8985_v25  ;;  %v4298_v51 = vsel %vm4297_vm8, %v4296_v22, %v4282_v45 }
0x110e   :  { %5714 = vmatpush3.msra.mxu0 %v4315_v54 }
0x110f   :  { %5715 = vmatprep.subr.mxu0 %v8985_v25 }
0x1110   :  { %5716 = vmatpush3.msra.mxu0 %v4314_v58 }
0x1111   :  { %5717 = vmatprep.subr.mxu0 %v8985_v25 }
0x1112   :  { %5718 = vmatpush3.msra.mxu0 %v4313_v61 }
0x1113   :  { %5719 = vmatprep.subr.mxu0 %v8985_v25 }
0x1114   :  { %5720 = vmatpush3.msra.mxu0 %v4312_v28 }
0x1115   :  { %5721 = vmatprep.subr.mxu0 %v8985_v25 }
0x1116   :  { %5722 = vmatpush3.msra.mxu0 %v4311_v35 }
0x1117   :  { %5723 = vmatprep.subr.mxu0 %v8985_v25 }
0x1118   :  { %5724 = vmatpush3.msra.mxu0 %v4310_v9 }
0x1119   :  { %5725 = vmatprep.subr.mxu0 %v8985_v25 }
0x111a   :  { %5726 = vmatpush3.msra.mxu0 %v4309_v10 }
0x111b   :  { %5727 = vmatprep.subr.mxu0 %v8985_v25 }
0x111c   :  { %5728 = vmatpush3.msra.mxu0 %v4308_v23 }
0x111d   :  { %5729 = vmatprep.subr.mxu0 %v8985_v25 }
0x111e   :  { %5730 = vmatpush3.msra.mxu0 %v4307_v13 }
0x111f   :  { %5731 = vmatprep.subr.mxu0 %v8985_v25 }
0x1120   :  { %5732 = vmatpush3.msra.mxu0 %v4306_v26 }
0x1121   :  { %5733 = vmatprep.subr.mxu0 %v8985_v25 }
0x1122   :  { %5734 = vmatpush3.msra.mxu0 %v4305_v49 }
0x1123   :  { %5735 = vmatprep.subr.mxu0 %v8985_v25 }
0x1124   :  { %5736 = vmatpush3.msra.mxu0 %v4304_v8 }
0x1125   :  { %5737 = vmatprep.subr.mxu0 %v8985_v25 }
0x1126   :  { %5738 = vmatpush3.msra.mxu0 %v4303_v32 }
0x1127   :  { %5739 = vmatprep.subr.mxu0 %v8985_v25 }
0x1128   :  { %5740 = vmatpush3.msra.mxu0 %v4302_v2 }
0x1129   :  { %5741 = vmatprep.subr.mxu0 %v8985_v25 }
0x112a   :  { %5742 = vmatpush3.msra.mxu0 %v4301_v59 }
0x11cb   :  { %v4174_v11 = vpop.f32.mrf.mxu0  ;;  %v4245_v60 = vpop.f32.mrf.mxu1 }
0x11cc   :  { %v4175_v16 = vadd.f32 %v4174_v11, %v7578_v63  ;;  %v4246_v19 = vadd.f32 %v4245_v60, %v7591_v56 }
0x11cd   :  { %v4176_v0 = vpop.f32.mrf.mxu0  ;;  %v5710_v34 = vpop.f32.mrf.mxu1 }
0x11ce   :  { %v4249_v24 = vadd.f32 %v4175_v16, %v4034_v20  ;;  %v4177_v43 = vadd.f32 %v4176_v0, %v7581_v38 }
0x11d0   :  { %v4250_v27 = vmul.f32 0.5, %v4249_v24  ;;  %v4254_v6 = vadd.f32 %v4177_v43, %v4036_v5 }
0x11d2   :  { %5859 = vtanh.f32 %v4250_v27  ;;  %v4255_v25 = vmul.f32 0.5, %v4254_v6 }
0x11d4   :  { %5861 = vtanh.f32 %v4255_v25 }
0x11df   :  { %v5860_v7 = vpop.eup %5859 }
0x11e0   :  { %v4252_v46 = vadd.f32 1.0, %v5860_v7 }
0x11e1   :  { %v5862_v36 = vpop.eup %5861 }
0x11e2   :  { %v4253_v39 = vmul.f32 0.5, %v4252_v46  ;;  %v4257_v37 = vadd.f32 1.0, %v5862_v36 }
0x11e4   :  { %v4259_v63 = vmul.f32 %v4253_v39, %v4246_v19  ;;  %v4258_v38 = vmul.f32 0.5, %v4257_v37 }
0x11e6   :  { %v4260_v15 = vadd.f32 %v4259_v63, %v4105_v57  ;;  %v4262_v41 = vsub.f32 1.0, %v4258_v38  ;;  %v4264_v44 = vmul.f32 %v4258_v38, %v8594_v53 }
0x11e8   :  { %5863 = vtanh.f32 %v4260_v15 }
0x11f5   :  { %v5864_v56 = vpop.eup %5863 }
0x11f6   :  { %v4263_v21 = vmul.f32 %v5864_v56, %v4262_v41 }
0x11f8   :  { %v4265_v55 = vadd.f32 %v4264_v44, %v4263_v21 }
0x11fa   :  { %v4285_v14 = vrot.slane %v4265_v55, 1 }
0x11fc   :  { %v4300_v52 = vsel %vm4299_vm9, %v4298_v51, %v4285_v14 }
0x11fd   :  { %5744 = vmatmul.mubr.f32.vlgmr.msra.gmra.mxu0 %v4300_v52 }
0x12bd   :  { %v4390_v3 = vpop.f32.mrf.mxu0 }
0x12be   :  { %v4391_v54 = vadd.f32 %v4429_v50, %v4390_v3 }
0x12bf   :  { %v5745_v53 = vpop.f32.mrf.mxu0 }
0x12c0   :  { %v4395_v58 = vsel %vm4394_vm10, %v4391_v54, 0.0 }
0x12c1   :  { %v4396_v61 = vrot.slane %v4395_v58, 4 }
0x12c3   :  { %v4397_v28 = vadd.f32 %v4396_v61, %v4395_v58 }
0x12c5   :  { %v4398_v35 = vrot.slane %v4397_v28, 2 }
0x12c7   :  { %v4399_v9 = vadd.f32 %v4398_v35, %v4397_v28 }
0x12c9   :  { %v4400_v10 = vrot.slane %v4399_v9, 1 }
0x12cb   :  { %v4401_v23 = vadd.f32 %v4400_v10, %v4399_v9 }
0x12cd   :  { %v4403_v13 = vmul.f32 0.125, %v4401_v23 }
0x12cf   :  { %v4404_v26 = vsub.f32 %v4391_v54, %v4403_v13 }
0x12d1   :  { %v4405_v49 = vmul.f32 %v4404_v26, %v4404_v26 }
0x12d3   :  { %v4406_v8 = vsel %vm4394_vm10, %v4405_v49, 0.0 }
0x12d4   :  { %v4407_v32 = vrot.slane %v4406_v8, 4 }
0x12d6   :  { %v4408_v2 = vadd.f32 %v4407_v32, %v4406_v8 }
0x12d8   :  { %v4409_v59 = vrot.slane %v4408_v2, 2 }
0x12da   :  { %v4410_v31 = vadd.f32 %v4409_v59, %v4408_v2 }
0x12dc   :  { %v4411_v4 = vrot.slane %v4410_v31, 1 }
0x12de   :  { %v4412_v11 = vadd.f32 %v4411_v4, %v4410_v31 }
0x12e0   :  { %v4413_v60 = vmul.f32 0.125, %v4412_v11 }
0x12e2   :  { %v4414_v20 = vadd.f32 1e-05, %v4413_v60 }
0x12e4   :  { %5865 = vrsqrt.f32 %v4414_v20 }
0x12f1   :  { %v5866_v16 = vpop.eup %5865 }
0x12f2   :  { %v4416_v0 = vmul.f32 %v5866_v16, %v4404_v26 }
0x12f4   :  { %4417 = vst.msk [vmem:[%s8694_s7] sm:$0xff] %vm4394_vm10, %v4416_v0 }
0x12f5   :  { %4422 = vsyncpa [#allocation3], 1 }
0x12f6   :  { %4423 = vsyncpa [#allocation5], 1 }

</bundles_post_ra>
